<compile_context>
chip_gen: v6e
topology: v6e:2x2x1
jax: 0.10.0
libtpu: 0.0.40
codegen_flags: <defaults>
</compile_context>

<pallas_src>
import functools

import jax
import jax.numpy as jnp
from jax.experimental import pallas as pl
from jax.experimental.pallas import tpu as pltpu

COMPUTE_DTYPE = jnp.bfloat16   # flip to jnp.float32 for near-exact f32 semantics


def _round_up(x, m):
    return ((x + m - 1) // m) * m


def _conv_out(n, k, stride, pad):
    return (n + 2 * pad - k) // stride + 1


# ------------------------------ Pallas kernel --------------------------------

def _conv_bias_relu_kernel(x_ref, w_ref, b_ref, o_ref, *,
                           kh, kw, stride, h_out, w_out, c_in, c_out, out_pad):
    """Direct conv (shift-and-matmul) with fused bias + ReLU.

    x_ref: (1, Hp/s, s, Wp/s, s*c_in)  compute dtype, spatially pre-padded and
           phase-split so every (dy, dx) tap is a contiguous slice.
    w_ref: (kh*kw, c_in, c_out_p)      compute dtype (c_out lane-padded to 128).
    b_ref: (1, c_out)                  float32.
    o_ref: (1, h_tot, w_tot, c_out)    conv result at [out_pad:out_pad+h_out,
           out_pad:out_pad+w_out]; border is zero-filled so this buffer doubles
           as the NEXT conv's spatially padded input.
    """
    c_out_p = w_ref.shape[-1]
    acc = jnp.zeros((h_out * w_out, c_out_p), jnp.float32)
    for dy in range(kh):
        ry, py = divmod(dy, stride)          # row block offset / row phase
        for dx in range(kw):
            rx, px = divmod(dx, stride)      # col block offset / col phase
            win = x_ref[0, pl.ds(ry, h_out), py, pl.ds(rx, w_out),
                        pl.ds(px * c_in, c_in)]                     # (h_out, w_out, c_in)
            acc = acc + jnp.dot(win.reshape(h_out * w_out, c_in),
                                w_ref[dy * kw + dx],
                                preferred_element_type=jnp.float32)
    res = jnp.maximum(acc[:, :c_out] + b_ref[...], 0.0)             # fused bias + ReLU
    res = res.reshape(h_out, w_out, c_out).astype(o_ref.dtype)
    if out_pad == 0 and o_ref.shape[1] == h_out and o_ref.shape[2] == w_out:
        o_ref[...] = res.reshape(o_ref.shape)
    else:
        o_ref[...] = jnp.zeros(o_ref.shape, o_ref.dtype)            # zero border = next conv's padding
        o_ref[0, pl.ds(out_pad, h_out), pl.ds(out_pad, w_out), :] = res


def _conv_relu_nhwc(xp, cw, *, stride, h_out, w_out, out_pad, h_tot, w_tot,
                    out_dtype):
    """xp: (B, Hp, Wp, c_in), already spatially zero-padded (Hp, Wp multiples of
    `stride`, large enough for every tap).  Returns (B, h_tot, w_tot, c_out) with
    relu(conv + bias) at offset (out_pad, out_pad) and zeros elsewhere."""
    B, hp, wp, c_in = xp.shape
    assert hp % stride == 0 and wp % stride == 0
    assert c_in == cw["c_in"]
    # Metadata-only phase split: makes every (dy, dx) tap a contiguous slice.
    xp5 = xp.reshape(B, hp // stride, stride, wp // stride, stride * c_in)
    w_taps, bias = cw["w_taps"], cw["bias"]
    ntaps, _, c_out_p = w_taps.shape
    kernel = functools.partial(
        _conv_bias_relu_kernel, kh=cw["kh"], kw=cw["kw"], stride=stride,
        h_out=h_out, w_out=w_out, c_in=c_in, c_out=cw["c_out"], out_pad=out_pad)
    return pl.pallas_call(
        kernel,
        out_shape=jax.ShapeDtypeStruct((B, h_tot, w_tot, cw["c_out"]), out_dtype),
        grid_spec=pltpu.PrefetchScalarGridSpec(
            num_scalar_prefetch=0,
            grid=(B,),
            in_specs=[
                pl.BlockSpec((1, hp // stride, stride, wp // stride, stride * c_in),
                             lambda b: (b, 0, 0, 0, 0)),            # per-batch image
                pl.BlockSpec((ntaps, c_in, c_out_p), lambda b: (0, 0, 0)),  # resident weights
                pl.BlockSpec((1, cw["c_out"]), lambda b: (0, 0)),           # resident bias
            ],
            out_specs=pl.BlockSpec((1, h_tot, w_tot, cw["c_out"]),
                                   lambda b: (b, 0, 0, 0)),
        ),
        compiler_params=pltpu.CompilerParams(
            dimension_semantics=("parallel",),     # batch elements split across TCs (v7x)
            vmem_limit_bytes=32 * 1024 * 1024,     # safe on v5e/v6e/v7x
        ),
    )(xp5, w_taps, bias)


# ------------------------- weight prep (hoisted to init) ----------------------

def prep_conv(w, b, compute_dtype=COMPUTE_DTYPE):
    """PyTorch-layout (C_out, C_in, kh, kw) -> per-tap (kh*kw, C_in, C_out_pad128),
    done ONCE at init, never in the forward pass."""
    c_out, c_in, kh, kw = w.shape
    c_out_p = _round_up(c_out, 128)
    taps = jnp.transpose(w, (2, 3, 1, 0)).reshape(kh * kw, c_in, c_out)
    w_taps = jnp.zeros((kh * kw, c_in, c_out_p), compute_dtype)
    w_taps = w_taps.at[:, :, :c_out].set(taps.astype(compute_dtype))
    bias = b.astype(jnp.float32).reshape(1, c_out)
    return dict(w_taps=w_taps, bias=bias, c_out=c_out, c_in=c_in, kh=kh, kw=kw)


def init_first_goctave(key, in_channels, out_channels, kernel_size,
                       alpha_in=0.0, alpha_out=0.5, stride=1, padding=1,
                       compute_dtype=COMPUTE_DTYPE):
    kh, kw = kernel_size
    c_h_out = int(out_channels * (1 - alpha_out))
    c_l_out = int(out_channels * alpha_out)
    c_h_in = int(in_channels * (1 - alpha_in))
    keys = jax.random.split(key, 4)
    scale = 0.1
    w_hh = jax.random.normal(keys[0], (c_h_out, c_h_in, kh, kw), jnp.float32) * scale
    w_hl = jax.random.normal(keys[1], (c_l_out, c_h_out, kh, kw), jnp.float32) * scale
    b_hh = jax.random.normal(keys[2], (c_h_out,), jnp.float32) * scale
    b_hl = jax.random.normal(keys[3], (c_l_out,), jnp.float32) * scale
    return dict(
        hh=prep_conv(w_hh, b_hh, compute_dtype),
        hl=prep_conv(w_hl, b_hl, compute_dtype),
        # raw params kept only for the pure-JAX reference check in __main__
        w_hh=w_hh, b_hh=b_hh, w_hl=w_hl, b_hl=b_hl,
        stride=stride, padding=padding,
    )


# ---------------------------------- forward -----------------------------------

def first_goctave_forward(params, x, *, compute_dtype=COMPUTE_DTYPE):
    """x: (B, C_in, H, W) float32 NCHW -> (X_h, X_l), both float32 NCHW."""
    B, _, H, W = x.shape
    hh, hl = params["hh"], params["hl"]
    s1, p1 = params["stride"], params["padding"]
    s2, p2 = 2, params["padding"]
    kh1, kw1, kh2, kw2 = hh["kh"], hh["kw"], hl["kh"], hl["kw"]

    h1, w1 = _conv_out(H, kh1, s1, p1), _conv_out(W, kw1, s1, p1)
    h2, w2 = _conv_out(h1, kh2, s2, p2), _conv_out(w1, kw2, s2, p2)

    # conv1 input: NHWC, compute dtype, spatially zero-padded (one small pass).
    hin = _round_up(max(H + 2 * p1, s1 * (h1 - 1) + kh1), s1)
    win = _round_up(max(W + 2 * p1, s1 * (w1 - 1) + kw1), s1)
    x_nhwc = jnp.transpose(x, (0, 2, 3, 1)).astype(compute_dtype)
    xp = jnp.pad(x_nhwc, ((0, 0), (p1, hin - p1 - H), (p1, win - p1 - W), (0, 0)))

    # conv1 output buffer doubles as conv2's pre-padded input (written once,
    # read once, compute dtype, true channel count, no re-pad pass).
    h1_tot = _round_up(max(h1 + 2 * p2, s2 * (h2 - 1) + kh2), s2)
    w1_tot = _round_up(max(w1 + 2 * p2, s2 * (w2 - 1) + kw2), s2)
    inter = _conv_relu_nhwc(xp, hh, stride=s1, h_out=h1, w_out=w1,
                            out_pad=p2, h_tot=h1_tot, w_tot=w1_tot,
                            out_dtype=compute_dtype)

    # user-facing X_h: one fused slice + cast + transpose at the API boundary.
    X_h = jnp.transpose(
        inter[:, p2:p2 + h1, p2:p2 + w1, :].astype(jnp.float32), (0, 3, 1, 2))

    # conv2 (h2l), stride 2, consumes the padded bf16 intermediate directly.
    y2 = _conv_relu_nhwc(inter, hl, stride=s2, h_out=h2, w_out=w2,
                         out_pad=0, h_tot=h2, w_tot=w2, out_dtype=jnp.float32)
    X_l = jnp.transpose(y2, (0, 3, 1, 2))
    return X_h, X_l


# --------------------------- pure-JAX reference -------------------------------

def _conv2d_ref(x, w, b, stride, padding, compute_dtype):
    y = jax.lax.conv_general_dilated(
        x.astype(compute_dtype), w.astype(compute_dtype),
        (stride, stride), [(padding, padding), (padding, padding)],
        dimension_numbers=("NCHW", "OIHW", "NCHW"),
        preferred_element_type=jnp.float32)
    return jnp.maximum(y + b.reshape(1, -1, 1, 1), 0.0)


# ------------------------------------ main ------------------------------------

if __name__ == "__main__":
    B, in_ch, H, W = 2, 4, 16, 16
    out_ch = 8                            # alpha_out=0.5 -> 4 high + 4 low channels
    key = jax.random.PRNGKey(0)
    k_param, k_x = jax.random.split(key)
    params = init_first_goctave(k_param, in_ch, out_ch, (3, 3))
    x = jax.random.normal(k_x, (B, in_ch, H, W), jnp.float32)

    fwd = jax.jit(lambda inp: first_goctave_forward(params, inp))
    x_h, x_l = fwd(x)
    jax.block_until_ready((x_h, x_l))

    assert x_h.shape == (B, out_ch // 2, H, W) and x_h.dtype == jnp.float32
    assert x_l.shape == (B, out_ch // 2, H // 2, W // 2) and x_l.dtype == jnp.float32

    # correctness vs pure-JAX reference (same bf16 operand cast, f32 accumulation;
    # the bf16 intermediate round-trip is intentional and documented).
    ref_h = _conv2d_ref(x, params["w_hh"], params["b_hh"],
                        params["stride"], params["padding"], COMPUTE_DTYPE)
    ref_l = _conv2d_ref(ref_h, params["w_hl"], params["b_hl"],
                        2, params["padding"], COMPUTE_DTYPE)
    assert bool(jnp.allclose(x_h, ref_h, rtol=2e-2, atol=3e-3)), "X_h mismatch"
    assert bool(jnp.allclose(x_l, ref_l, rtol=2e-2, atol=3e-3)), "X_l mismatch"

    print("KERNEL_OK")
</pallas_src>

<mosaic_0001>
module attributes {stable_mosaic.version = 11 : i64} {
  func.func @_conv_bias_relu_kernel(%arg0: i32, %arg1: memref<1x18x1x18x4xbf16, #tpu.memory_space<vmem>>, %arg2: memref<9x4x128xbf16, #tpu.memory_space<vmem>>, %arg3: memref<1x4xf32, #tpu.memory_space<vmem>>, %arg4: memref<1x18x18x4xbf16, #tpu.memory_space<vmem>>) attributes {dimension_semantics = [#tpu.dimension_semantics<parallel>], iteration_bounds = array<i64: 2>, scalar_prefetch = 0 : i64, scratch_operands = 0 : i64, tpu.core_type = #tpu.core_type<tc>, window_params = [{transform_indices = @transform_0, window_bounds = array<i64: 1, 18, 1, 18, 4>}, {pipeline_mode = #tpu.pipeline_mode<synchronous>, transform_indices = @transform_1, window_bounds = array<i64: 9, 4, 128>}, {pipeline_mode = #tpu.pipeline_mode<synchronous>, transform_indices = @transform_2, window_bounds = array<i64: 1, 4>}, {transform_indices = @transform_3, window_bounds = array<i64: 1, 18, 18, 4>}]} {
    %cst = arith.constant 0.000000e+00 : f32
    %0 = vector.broadcast %cst : f32 to vector<256x128xf32>
    %c0 = arith.constant 0 : index
    %c0_0 = arith.constant 0 : index
    %c0_1 = arith.constant 0 : index
    %c0_2 = arith.constant 0 : index
    %c0_3 = arith.constant 0 : index
    %1 = vector.load %arg1[%c0, %c0_0, %c0_1, %c0_2, %c0_3] : memref<1x18x1x18x4xbf16, #tpu.memory_space<vmem>>, vector<1x16x1x16x4xbf16>
    %2 = vector.shape_cast %1 : vector<1x16x1x16x4xbf16> to vector<16x16x4xbf16>
    %3 = vector.shape_cast %2 : vector<16x16x4xbf16> to vector<256x4xbf16>
    %c0_4 = arith.constant 0 : index
    %c0_5 = arith.constant 0 : index
    %c0_6 = arith.constant 0 : index
    %4 = vector.load %arg2[%c0_4, %c0_5, %c0_6] : memref<9x4x128xbf16, #tpu.memory_space<vmem>>, vector<1x4x128xbf16>
    %5 = vector.shape_cast %4 : vector<1x4x128xbf16> to vector<4x128xbf16>
    %cst_7 = arith.constant dense<0.000000e+00> : vector<256x128xf32>
    %6 = tpu.matmul %3, %5, %cst_7 {dimension_numbers = #tpu.dot_dimension_numbers<[1], [0], [0], [1], [0, 0, 1, 1], [], []>} : vector<256x4xbf16>, vector<4x128xbf16>, vector<256x128xf32> -> vector<256x128xf32>
    %7 = arith.addf %0, %6 : vector<256x128xf32>
    %c0_8 = arith.constant 0 : index
    %c0_9 = arith.constant 0 : index
    %c0_10 = arith.constant 0 : index
    %c1 = arith.constant 1 : index
    %c0_11 = arith.constant 0 : index
    %8 = vector.load %arg1[%c0_8, %c0_9, %c0_10, %c1, %c0_11] : memref<1x18x1x18x4xbf16, #tpu.memory_space<vmem>>, vector<1x16x1x16x4xbf16>
    %9 = vector.shape_cast %8 : vector<1x16x1x16x4xbf16> to vector<16x16x4xbf16>
    %10 = vector.shape_cast %9 : vector<16x16x4xbf16> to vector<256x4xbf16>
    %c1_12 = arith.constant 1 : index
    %c0_13 = arith.constant 0 : index
    %c0_14 = arith.constant 0 : index
    %11 = vector.load %arg2[%c1_12, %c0_13, %c0_14] : memref<9x4x128xbf16, #tpu.memory_space<vmem>>, vector<1x4x128xbf16>
    %12 = vector.shape_cast %11 : vector<1x4x128xbf16> to vector<4x128xbf16>
    %cst_15 = arith.constant dense<0.000000e+00> : vector<256x128xf32>
    %13 = tpu.matmul %10, %12, %cst_15 {dimension_numbers = #tpu.dot_dimension_numbers<[1], [0], [0], [1], [0, 0, 1, 1], [], []>} : vector<256x4xbf16>, vector<4x128xbf16>, vector<256x128xf32> -> vector<256x128xf32>
    %14 = arith.addf %7, %13 : vector<256x128xf32>
    %c0_16 = arith.constant 0 : index
    %c0_17 = arith.constant 0 : index
    %c0_18 = arith.constant 0 : index
    %c2 = arith.constant 2 : index
    %c0_19 = arith.constant 0 : index
    %15 = vector.load %arg1[%c0_16, %c0_17, %c0_18, %c2, %c0_19] : memref<1x18x1x18x4xbf16, #tpu.memory_space<vmem>>, vector<1x16x1x16x4xbf16>
    %16 = vector.shape_cast %15 : vector<1x16x1x16x4xbf16> to vector<16x16x4xbf16>
    %17 = vector.shape_cast %16 : vector<16x16x4xbf16> to vector<256x4xbf16>
    %c2_20 = arith.constant 2 : index
    %c0_21 = arith.constant 0 : index
    %c0_22 = arith.constant 0 : index
    %18 = vector.load %arg2[%c2_20, %c0_21, %c0_22] : memref<9x4x128xbf16, #tpu.memory_space<vmem>>, vector<1x4x128xbf16>
    %19 = vector.shape_cast %18 : vector<1x4x128xbf16> to vector<4x128xbf16>
    %cst_23 = arith.constant dense<0.000000e+00> : vector<256x128xf32>
    %20 = tpu.matmul %17, %19, %cst_23 {dimension_numbers = #tpu.dot_dimension_numbers<[1], [0], [0], [1], [0, 0, 1, 1], [], []>} : vector<256x4xbf16>, vector<4x128xbf16>, vector<256x128xf32> -> vector<256x128xf32>
    %21 = arith.addf %14, %20 : vector<256x128xf32>
    %c0_24 = arith.constant 0 : index
    %c1_25 = arith.constant 1 : index
    %c0_26 = arith.constant 0 : index
    %c0_27 = arith.constant 0 : index
    %c0_28 = arith.constant 0 : index
    %22 = vector.load %arg1[%c0_24, %c1_25, %c0_26, %c0_27, %c0_28] : memref<1x18x1x18x4xbf16, #tpu.memory_space<vmem>>, vector<1x16x1x16x4xbf16>
    %23 = vector.shape_cast %22 : vector<1x16x1x16x4xbf16> to vector<16x16x4xbf16>
    %24 = vector.shape_cast %23 : vector<16x16x4xbf16> to vector<256x4xbf16>
    %c3 = arith.constant 3 : index
    %c0_29 = arith.constant 0 : index
    %c0_30 = arith.constant 0 : index
    %25 = vector.load %arg2[%c3, %c0_29, %c0_30] : memref<9x4x128xbf16, #tpu.memory_space<vmem>>, vector<1x4x128xbf16>
    %26 = vector.shape_cast %25 : vector<1x4x128xbf16> to vector<4x128xbf16>
    %cst_31 = arith.constant dense<0.000000e+00> : vector<256x128xf32>
    %27 = tpu.matmul %24, %26, %cst_31 {dimension_numbers = #tpu.dot_dimension_numbers<[1], [0], [0], [1], [0, 0, 1, 1], [], []>} : vector<256x4xbf16>, vector<4x128xbf16>, vector<256x128xf32> -> vector<256x128xf32>
    %28 = arith.addf %21, %27 : vector<256x128xf32>
    %c0_32 = arith.constant 0 : index
    %c1_33 = arith.constant 1 : index
    %c0_34 = arith.constant 0 : index
    %c1_35 = arith.constant 1 : index
    %c0_36 = arith.constant 0 : index
    %29 = vector.load %arg1[%c0_32, %c1_33, %c0_34, %c1_35, %c0_36] : memref<1x18x1x18x4xbf16, #tpu.memory_space<vmem>>, vector<1x16x1x16x4xbf16>
    %30 = vector.shape_cast %29 : vector<1x16x1x16x4xbf16> to vector<16x16x4xbf16>
    %31 = vector.shape_cast %30 : vector<16x16x4xbf16> to vector<256x4xbf16>
    %c4 = arith.constant 4 : index
    %c0_37 = arith.constant 0 : index
    %c0_38 = arith.constant 0 : index
    %32 = vector.load %arg2[%c4, %c0_37, %c0_38] : memref<9x4x128xbf16, #tpu.memory_space<vmem>>, vector<1x4x128xbf16>
    %33 = vector.shape_cast %32 : vector<1x4x128xbf16> to vector<4x128xbf16>
    %cst_39 = arith.constant dense<0.000000e+00> : vector<256x128xf32>
    %34 = tpu.matmul %31, %33, %cst_39 {dimension_numbers = #tpu.dot_dimension_numbers<[1], [0], [0], [1], [0, 0, 1, 1], [], []>} : vector<256x4xbf16>, vector<4x128xbf16>, vector<256x128xf32> -> vector<256x128xf32>
    %35 = arith.addf %28, %34 : vector<256x128xf32>
    %c0_40 = arith.constant 0 : index
    %c1_41 = arith.constant 1 : index
    %c0_42 = arith.constant 0 : index
    %c2_43 = arith.constant 2 : index
    %c0_44 = arith.constant 0 : index
    %36 = vector.load %arg1[%c0_40, %c1_41, %c0_42, %c2_43, %c0_44] : memref<1x18x1x18x4xbf16, #tpu.memory_space<vmem>>, vector<1x16x1x16x4xbf16>
    %37 = vector.shape_cast %36 : vector<1x16x1x16x4xbf16> to vector<16x16x4xbf16>
    %38 = vector.shape_cast %37 : vector<16x16x4xbf16> to vector<256x4xbf16>
    %c5 = arith.constant 5 : index
    %c0_45 = arith.constant 0 : index
    %c0_46 = arith.constant 0 : index
    %39 = vector.load %arg2[%c5, %c0_45, %c0_46] : memref<9x4x128xbf16, #tpu.memory_space<vmem>>, vector<1x4x128xbf16>
    %40 = vector.shape_cast %39 : vector<1x4x128xbf16> to vector<4x128xbf16>
    %cst_47 = arith.constant dense<0.000000e+00> : vector<256x128xf32>
    %41 = tpu.matmul %38, %40, %cst_47 {dimension_numbers = #tpu.dot_dimension_numbers<[1], [0], [0], [1], [0, 0, 1, 1], [], []>} : vector<256x4xbf16>, vector<4x128xbf16>, vector<256x128xf32> -> vector<256x128xf32>
    %42 = arith.addf %35, %41 : vector<256x128xf32>
    %c0_48 = arith.constant 0 : index
    %c2_49 = arith.constant 2 : index
    %c0_50 = arith.constant 0 : index
    %c0_51 = arith.constant 0 : index
    %c0_52 = arith.constant 0 : index
    %43 = vector.load %arg1[%c0_48, %c2_49, %c0_50, %c0_51, %c0_52] : memref<1x18x1x18x4xbf16, #tpu.memory_space<vmem>>, vector<1x16x1x16x4xbf16>
    %44 = vector.shape_cast %43 : vector<1x16x1x16x4xbf16> to vector<16x16x4xbf16>
    %45 = vector.shape_cast %44 : vector<16x16x4xbf16> to vector<256x4xbf16>
    %c6 = arith.constant 6 : index
    %c0_53 = arith.constant 0 : index
    %c0_54 = arith.constant 0 : index
    %46 = vector.load %arg2[%c6, %c0_53, %c0_54] : memref<9x4x128xbf16, #tpu.memory_space<vmem>>, vector<1x4x128xbf16>
    %47 = vector.shape_cast %46 : vector<1x4x128xbf16> to vector<4x128xbf16>
    %cst_55 = arith.constant dense<0.000000e+00> : vector<256x128xf32>
    %48 = tpu.matmul %45, %47, %cst_55 {dimension_numbers = #tpu.dot_dimension_numbers<[1], [0], [0], [1], [0, 0, 1, 1], [], []>} : vector<256x4xbf16>, vector<4x128xbf16>, vector<256x128xf32> -> vector<256x128xf32>
    %49 = arith.addf %42, %48 : vector<256x128xf32>
    %c0_56 = arith.constant 0 : index
    %c2_57 = arith.constant 2 : index
    %c0_58 = arith.constant 0 : index
    %c1_59 = arith.constant 1 : index
    %c0_60 = arith.constant 0 : index
    %50 = vector.load %arg1[%c0_56, %c2_57, %c0_58, %c1_59, %c0_60] : memref<1x18x1x18x4xbf16, #tpu.memory_space<vmem>>, vector<1x16x1x16x4xbf16>
    %51 = vector.shape_cast %50 : vector<1x16x1x16x4xbf16> to vector<16x16x4xbf16>
    %52 = vector.shape_cast %51 : vector<16x16x4xbf16> to vector<256x4xbf16>
    %c7 = arith.constant 7 : index
    %c0_61 = arith.constant 0 : index
    %c0_62 = arith.constant 0 : index
    %53 = vector.load %arg2[%c7, %c0_61, %c0_62] : memref<9x4x128xbf16, #tpu.memory_space<vmem>>, vector<1x4x128xbf16>
    %54 = vector.shape_cast %53 : vector<1x4x128xbf16> to vector<4x128xbf16>
    %cst_63 = arith.constant dense<0.000000e+00> : vector<256x128xf32>
    %55 = tpu.matmul %52, %54, %cst_63 {dimension_numbers = #tpu.dot_dimension_numbers<[1], [0], [0], [1], [0, 0, 1, 1], [], []>} : vector<256x4xbf16>, vector<4x128xbf16>, vector<256x128xf32> -> vector<256x128xf32>
    %56 = arith.addf %49, %55 : vector<256x128xf32>
    %c0_64 = arith.constant 0 : index
    %c2_65 = arith.constant 2 : index
    %c0_66 = arith.constant 0 : index
    %c2_67 = arith.constant 2 : index
    %c0_68 = arith.constant 0 : index
    %57 = vector.load %arg1[%c0_64, %c2_65, %c0_66, %c2_67, %c0_68] : memref<1x18x1x18x4xbf16, #tpu.memory_space<vmem>>, vector<1x16x1x16x4xbf16>
    %58 = vector.shape_cast %57 : vector<1x16x1x16x4xbf16> to vector<16x16x4xbf16>
    %59 = vector.shape_cast %58 : vector<16x16x4xbf16> to vector<256x4xbf16>
    %c8 = arith.constant 8 : index
    %c0_69 = arith.constant 0 : index
    %c0_70 = arith.constant 0 : index
    %60 = vector.load %arg2[%c8, %c0_69, %c0_70] : memref<9x4x128xbf16, #tpu.memory_space<vmem>>, vector<1x4x128xbf16>
    %61 = vector.shape_cast %60 : vector<1x4x128xbf16> to vector<4x128xbf16>
    %cst_71 = arith.constant dense<0.000000e+00> : vector<256x128xf32>
    %62 = tpu.matmul %59, %61, %cst_71 {dimension_numbers = #tpu.dot_dimension_numbers<[1], [0], [0], [1], [0, 0, 1, 1], [], []>} : vector<256x4xbf16>, vector<4x128xbf16>, vector<256x128xf32> -> vector<256x128xf32>
    %63 = arith.addf %56, %62 : vector<256x128xf32>
    %64 = vector.extract_strided_slice %63 {offsets = [0, 0], sizes = [256, 4], strides = [1, 1]} : vector<256x128xf32> to vector<256x4xf32>
    %c0_72 = arith.constant 0 : index
    %c0_73 = arith.constant 0 : index
    %65 = vector.load %arg3[%c0_72, %c0_73] : memref<1x4xf32, #tpu.memory_space<vmem>>, vector<1x4xf32>
    %66 = vector.broadcast %65 : vector<1x4xf32> to vector<256x4xf32>
    %67 = arith.addf %64, %66 : vector<256x4xf32>
    %cst_74 = arith.constant 0.000000e+00 : f32
    %68 = vector.broadcast %cst_74 : f32 to vector<256x4xf32>
    %69 = arith.maximumf %67, %68 : vector<256x4xf32>
    %70 = vector.shape_cast %69 : vector<256x4xf32> to vector<16x16x4xf32>
    %71 = arith.truncf %70 : vector<16x16x4xf32> to vector<16x16x4xbf16>
    %cst_75 = arith.constant 0.000000e+00 : bf16
    %72 = vector.broadcast %cst_75 : bf16 to vector<1x18x18x4xbf16>
    %c0_76 = arith.constant 0 : index
    %c0_77 = arith.constant 0 : index
    %c0_78 = arith.constant 0 : index
    %c0_79 = arith.constant 0 : index
    %73 = vector.load %arg4[%c0_76, %c0_77, %c0_78, %c0_79] : memref<1x18x18x4xbf16, #tpu.memory_space<vmem>>, vector<1x18x18x4xbf16>
    tpu.vector_store %arg4[%c0_76, %c0_77, %c0_78, %c0_79], %72 {strides = array<i32>} : memref<1x18x18x4xbf16, #tpu.memory_space<vmem>>, vector<1x18x18x4xbf16>,
    %c0_80 = arith.constant 0 : index
    %c1_81 = arith.constant 1 : index
    %c1_82 = arith.constant 1 : index
    %c0_83 = arith.constant 0 : index
    %74 = vector.load %arg4[%c0_80, %c1_81, %c1_82, %c0_83] : memref<1x18x18x4xbf16, #tpu.memory_space<vmem>>, vector<1x16x16x4xbf16>
    %75 = vector.shape_cast %74 : vector<1x16x16x4xbf16> to vector<16x16x4xbf16>
    %76 = vector.shape_cast %71 : vector<16x16x4xbf16> to vector<1x16x16x4xbf16>
    tpu.vector_store %arg4[%c0_80, %c1_81, %c1_82, %c0_83], %76 {strides = array<i32>} : memref<1x18x18x4xbf16, #tpu.memory_space<vmem>>, vector<1x16x16x4xbf16>,
    return
  }
  func.func @transform_0(%arg0: i32) -> (i32, i32, i32, i32, i32) {
    %c0_i32 = arith.constant 0 : i32
    %c0_i32_0 = arith.constant 0 : i32
    %c0_i32_1 = arith.constant 0 : i32
    %c0_i32_2 = arith.constant 0 : i32
    %c0_i32_3 = arith.constant 0 : i32
    return %arg0, %c0_i32, %c0_i32_0, %c0_i32_1, %c0_i32_2 : i32, i32, i32, i32, i32
  }
  func.func @transform_1(%arg0: i32) -> (i32, i32, i32) {
    %c0_i32 = arith.constant 0 : i32
    %c0_i32_0 = arith.constant 0 : i32
    %c0_i32_1 = arith.constant 0 : i32
    %c0_i32_2 = arith.constant 0 : i32
    return %c0_i32, %c0_i32_0, %c0_i32_1 : i32, i32, i32
  }
  func.func @transform_2(%arg0: i32) -> (i32, i32) {
    %c0_i32 = arith.constant 0 : i32
    %c0_i32_0 = arith.constant 0 : i32
    %c0_i32_1 = arith.constant 0 : i32
    return %c0_i32, %c0_i32_0 : i32, i32
  }
  func.func @transform_3(%arg0: i32) -> (i32, i32, i32, i32) {
    %c0_i32 = arith.constant 0 : i32
    %c0_i32_0 = arith.constant 0 : i32
    %c0_i32_1 = arith.constant 0 : i32
    %c0_i32_2 = arith.constant 0 : i32
    return %arg0, %c0_i32, %c0_i32_0, %c0_i32_1 : i32, i32, i32, i32
  }
}

module attributes {stable_mosaic.version = 11 : i64} {
  func.func @_conv_bias_relu_kernel(%arg0: i32, %arg1: memref<1x9x2x9x8xbf16, #tpu.memory_space<vmem>>, %arg2: memref<9x4x128xbf16, #tpu.memory_space<vmem>>, %arg3: memref<1x4xf32, #tpu.memory_space<vmem>>, %arg4: memref<1x8x8x4xf32, #tpu.memory_space<vmem>>) attributes {dimension_semantics = [#tpu.dimension_semantics<parallel>], iteration_bounds = array<i64: 2>, scalar_prefetch = 0 : i64, scratch_operands = 0 : i64, tpu.core_type = #tpu.core_type<tc>, window_params = [{transform_indices = @transform_0, window_bounds = array<i64: 1, 9, 2, 9, 8>}, {pipeline_mode = #tpu.pipeline_mode<synchronous>, transform_indices = @transform_1, window_bounds = array<i64: 9, 4, 128>}, {pipeline_mode = #tpu.pipeline_mode<synchronous>, transform_indices = @transform_2, window_bounds = array<i64: 1, 4>}, {transform_indices = @transform_3, window_bounds = array<i64: 1, 8, 8, 4>}]} {
    %cst = arith.constant 0.000000e+00 : f32
    %0 = vector.broadcast %cst : f32 to vector<64x128xf32>
    %c0 = arith.constant 0 : index
    %c0_0 = arith.constant 0 : index
    %c0_1 = arith.constant 0 : index
    %c0_2 = arith.constant 0 : index
    %c0_3 = arith.constant 0 : index
    %1 = vector.load %arg1[%c0, %c0_0, %c0_1, %c0_2, %c0_3] : memref<1x9x2x9x8xbf16, #tpu.memory_space<vmem>>, vector<1x8x1x8x4xbf16>
    %2 = vector.shape_cast %1 : vector<1x8x1x8x4xbf16> to vector<8x8x4xbf16>
    %3 = vector.shape_cast %2 : vector<8x8x4xbf16> to vector<64x4xbf16>
    %c0_4 = arith.constant 0 : index
    %c0_5 = arith.constant 0 : index
    %c0_6 = arith.constant 0 : index
    %4 = vector.load %arg2[%c0_4, %c0_5, %c0_6] : memref<9x4x128xbf16, #tpu.memory_space<vmem>>, vector<1x4x128xbf16>
    %5 = vector.shape_cast %4 : vector<1x4x128xbf16> to vector<4x128xbf16>
    %cst_7 = arith.constant dense<0.000000e+00> : vector<64x128xf32>
    %6 = tpu.matmul %3, %5, %cst_7 {dimension_numbers = #tpu.dot_dimension_numbers<[1], [0], [0], [1], [0, 0, 1, 1], [], []>} : vector<64x4xbf16>, vector<4x128xbf16>, vector<64x128xf32> -> vector<64x128xf32>
    %7 = arith.addf %0, %6 : vector<64x128xf32>
    %c0_8 = arith.constant 0 : index
    %c0_9 = arith.constant 0 : index
    %c0_10 = arith.constant 0 : index
    %c0_11 = arith.constant 0 : index
    %c4 = arith.constant 4 : index
    %8 = vector.load %arg1[%c0_8, %c0_9, %c0_10, %c0_11, %c4] : memref<1x9x2x9x8xbf16, #tpu.memory_space<vmem>>, vector<1x8x1x8x4xbf16>
    %9 = vector.shape_cast %8 : vector<1x8x1x8x4xbf16> to vector<8x8x4xbf16>
    %10 = vector.shape_cast %9 : vector<8x8x4xbf16> to vector<64x4xbf16>
    %c1 = arith.constant 1 : index
    %c0_12 = arith.constant 0 : index
    %c0_13 = arith.constant 0 : index
    %11 = vector.load %arg2[%c1, %c0_12, %c0_13] : memref<9x4x128xbf16, #tpu.memory_space<vmem>>, vector<1x4x128xbf16>
    %12 = vector.shape_cast %11 : vector<1x4x128xbf16> to vector<4x128xbf16>
    %cst_14 = arith.constant dense<0.000000e+00> : vector<64x128xf32>
    %13 = tpu.matmul %10, %12, %cst_14 {dimension_numbers = #tpu.dot_dimension_numbers<[1], [0], [0], [1], [0, 0, 1, 1], [], []>} : vector<64x4xbf16>, vector<4x128xbf16>, vector<64x128xf32> -> vector<64x128xf32>
    %14 = arith.addf %7, %13 : vector<64x128xf32>
    %c0_15 = arith.constant 0 : index
    %c0_16 = arith.constant 0 : index
    %c0_17 = arith.constant 0 : index
    %c1_18 = arith.constant 1 : index
    %c0_19 = arith.constant 0 : index
    %15 = vector.load %arg1[%c0_15, %c0_16, %c0_17, %c1_18, %c0_19] : memref<1x9x2x9x8xbf16, #tpu.memory_space<vmem>>, vector<1x8x1x8x4xbf16>
    %16 = vector.shape_cast %15 : vector<1x8x1x8x4xbf16> to vector<8x8x4xbf16>
    %17 = vector.shape_cast %16 : vector<8x8x4xbf16> to vector<64x4xbf16>
    %c2 = arith.constant 2 : index
    %c0_20 = arith.constant 0 : index
    %c0_21 = arith.constant 0 : index
    %18 = vector.load %arg2[%c2, %c0_20, %c0_21] : memref<9x4x128xbf16, #tpu.memory_space<vmem>>, vector<1x4x128xbf16>
    %19 = vector.shape_cast %18 : vector<1x4x128xbf16> to vector<4x128xbf16>
    %cst_22 = arith.constant dense<0.000000e+00> : vector<64x128xf32>
    %20 = tpu.matmul %17, %19, %cst_22 {dimension_numbers = #tpu.dot_dimension_numbers<[1], [0], [0], [1], [0, 0, 1, 1], [], []>} : vector<64x4xbf16>, vector<4x128xbf16>, vector<64x128xf32> -> vector<64x128xf32>
    %21 = arith.addf %14, %20 : vector<64x128xf32>
    %c0_23 = arith.constant 0 : index
    %c0_24 = arith.constant 0 : index
    %c1_25 = arith.constant 1 : index
    %c0_26 = arith.constant 0 : index
    %c0_27 = arith.constant 0 : index
    %22 = vector.load %arg1[%c0_23, %c0_24, %c1_25, %c0_26, %c0_27] : memref<1x9x2x9x8xbf16, #tpu.memory_space<vmem>>, vector<1x8x1x8x4xbf16>
    %23 = vector.shape_cast %22 : vector<1x8x1x8x4xbf16> to vector<8x8x4xbf16>
    %24 = vector.shape_cast %23 : vector<8x8x4xbf16> to vector<64x4xbf16>
    %c3 = arith.constant 3 : index
    %c0_28 = arith.constant 0 : index
    %c0_29 = arith.constant 0 : index
    %25 = vector.load %arg2[%c3, %c0_28, %c0_29] : memref<9x4x128xbf16, #tpu.memory_space<vmem>>, vector<1x4x128xbf16>
    %26 = vector.shape_cast %25 : vector<1x4x128xbf16> to vector<4x128xbf16>
    %cst_30 = arith.constant dense<0.000000e+00> : vector<64x128xf32>
    %27 = tpu.matmul %24, %26, %cst_30 {dimension_numbers = #tpu.dot_dimension_numbers<[1], [0], [0], [1], [0, 0, 1, 1], [], []>} : vector<64x4xbf16>, vector<4x128xbf16>, vector<64x128xf32> -> vector<64x128xf32>
    %28 = arith.addf %21, %27 : vector<64x128xf32>
    %c0_31 = arith.constant 0 : index
    %c0_32 = arith.constant 0 : index
    %c1_33 = arith.constant 1 : index
    %c0_34 = arith.constant 0 : index
    %c4_35 = arith.constant 4 : index
    %29 = vector.load %arg1[%c0_31, %c0_32, %c1_33, %c0_34, %c4_35] : memref<1x9x2x9x8xbf16, #tpu.memory_space<vmem>>, vector<1x8x1x8x4xbf16>
    %30 = vector.shape_cast %29 : vector<1x8x1x8x4xbf16> to vector<8x8x4xbf16>
    %31 = vector.shape_cast %30 : vector<8x8x4xbf16> to vector<64x4xbf16>
    %c4_36 = arith.constant 4 : index
    %c0_37 = arith.constant 0 : index
    %c0_38 = arith.constant 0 : index
    %32 = vector.load %arg2[%c4_36, %c0_37, %c0_38] : memref<9x4x128xbf16, #tpu.memory_space<vmem>>, vector<1x4x128xbf16>
    %33 = vector.shape_cast %32 : vector<1x4x128xbf16> to vector<4x128xbf16>
    %cst_39 = arith.constant dense<0.000000e+00> : vector<64x128xf32>
    %34 = tpu.matmul %31, %33, %cst_39 {dimension_numbers = #tpu.dot_dimension_numbers<[1], [0], [0], [1], [0, 0, 1, 1], [], []>} : vector<64x4xbf16>, vector<4x128xbf16>, vector<64x128xf32> -> vector<64x128xf32>
    %35 = arith.addf %28, %34 : vector<64x128xf32>
    %c0_40 = arith.constant 0 : index
    %c0_41 = arith.constant 0 : index
    %c1_42 = arith.constant 1 : index
    %c1_43 = arith.constant 1 : index
    %c0_44 = arith.constant 0 : index
    %36 = vector.load %arg1[%c0_40, %c0_41, %c1_42, %c1_43, %c0_44] : memref<1x9x2x9x8xbf16, #tpu.memory_space<vmem>>, vector<1x8x1x8x4xbf16>
    %37 = vector.shape_cast %36 : vector<1x8x1x8x4xbf16> to vector<8x8x4xbf16>
    %38 = vector.shape_cast %37 : vector<8x8x4xbf16> to vector<64x4xbf16>
    %c5 = arith.constant 5 : index
    %c0_45 = arith.constant 0 : index
    %c0_46 = arith.constant 0 : index
    %39 = vector.load %arg2[%c5, %c0_45, %c0_46] : memref<9x4x128xbf16, #tpu.memory_space<vmem>>, vector<1x4x128xbf16>
    %40 = vector.shape_cast %39 : vector<1x4x128xbf16> to vector<4x128xbf16>
    %cst_47 = arith.constant dense<0.000000e+00> : vector<64x128xf32>
    %41 = tpu.matmul %38, %40, %cst_47 {dimension_numbers = #tpu.dot_dimension_numbers<[1], [0], [0], [1], [0, 0, 1, 1], [], []>} : vector<64x4xbf16>, vector<4x128xbf16>, vector<64x128xf32> -> vector<64x128xf32>
    %42 = arith.addf %35, %41 : vector<64x128xf32>
    %c0_48 = arith.constant 0 : index
    %c1_49 = arith.constant 1 : index
    %c0_50 = arith.constant 0 : index
    %c0_51 = arith.constant 0 : index
    %c0_52 = arith.constant 0 : index
    %43 = vector.load %arg1[%c0_48, %c1_49, %c0_50, %c0_51, %c0_52] : memref<1x9x2x9x8xbf16, #tpu.memory_space<vmem>>, vector<1x8x1x8x4xbf16>
    %44 = vector.shape_cast %43 : vector<1x8x1x8x4xbf16> to vector<8x8x4xbf16>
    %45 = vector.shape_cast %44 : vector<8x8x4xbf16> to vector<64x4xbf16>
    %c6 = arith.constant 6 : index
    %c0_53 = arith.constant 0 : index
    %c0_54 = arith.constant 0 : index
    %46 = vector.load %arg2[%c6, %c0_53, %c0_54] : memref<9x4x128xbf16, #tpu.memory_space<vmem>>, vector<1x4x128xbf16>
    %47 = vector.shape_cast %46 : vector<1x4x128xbf16> to vector<4x128xbf16>
    %cst_55 = arith.constant dense<0.000000e+00> : vector<64x128xf32>
    %48 = tpu.matmul %45, %47, %cst_55 {dimension_numbers = #tpu.dot_dimension_numbers<[1], [0], [0], [1], [0, 0, 1, 1], [], []>} : vector<64x4xbf16>, vector<4x128xbf16>, vector<64x128xf32> -> vector<64x128xf32>
    %49 = arith.addf %42, %48 : vector<64x128xf32>
    %c0_56 = arith.constant 0 : index
    %c1_57 = arith.constant 1 : index
    %c0_58 = arith.constant 0 : index
    %c0_59 = arith.constant 0 : index
    %c4_60 = arith.constant 4 : index
    %50 = vector.load %arg1[%c0_56, %c1_57, %c0_58, %c0_59, %c4_60] : memref<1x9x2x9x8xbf16, #tpu.memory_space<vmem>>, vector<1x8x1x8x4xbf16>
    %51 = vector.shape_cast %50 : vector<1x8x1x8x4xbf16> to vector<8x8x4xbf16>
    %52 = vector.shape_cast %51 : vector<8x8x4xbf16> to vector<64x4xbf16>
    %c7 = arith.constant 7 : index
    %c0_61 = arith.constant 0 : index
    %c0_62 = arith.constant 0 : index
    %53 = vector.load %arg2[%c7, %c0_61, %c0_62] : memref<9x4x128xbf16, #tpu.memory_space<vmem>>, vector<1x4x128xbf16>
    %54 = vector.shape_cast %53 : vector<1x4x128xbf16> to vector<4x128xbf16>
    %cst_63 = arith.constant dense<0.000000e+00> : vector<64x128xf32>
    %55 = tpu.matmul %52, %54, %cst_63 {dimension_numbers = #tpu.dot_dimension_numbers<[1], [0], [0], [1], [0, 0, 1, 1], [], []>} : vector<64x4xbf16>, vector<4x128xbf16>, vector<64x128xf32> -> vector<64x128xf32>
    %56 = arith.addf %49, %55 : vector<64x128xf32>
    %c0_64 = arith.constant 0 : index
    %c1_65 = arith.constant 1 : index
    %c0_66 = arith.constant 0 : index
    %c1_67 = arith.constant 1 : index
    %c0_68 = arith.constant 0 : index
    %57 = vector.load %arg1[%c0_64, %c1_65, %c0_66, %c1_67, %c0_68] : memref<1x9x2x9x8xbf16, #tpu.memory_space<vmem>>, vector<1x8x1x8x4xbf16>
    %58 = vector.shape_cast %57 : vector<1x8x1x8x4xbf16> to vector<8x8x4xbf16>
    %59 = vector.shape_cast %58 : vector<8x8x4xbf16> to vector<64x4xbf16>
    %c8 = arith.constant 8 : index
    %c0_69 = arith.constant 0 : index
    %c0_70 = arith.constant 0 : index
    %60 = vector.load %arg2[%c8, %c0_69, %c0_70] : memref<9x4x128xbf16, #tpu.memory_space<vmem>>, vector<1x4x128xbf16>
    %61 = vector.shape_cast %60 : vector<1x4x128xbf16> to vector<4x128xbf16>
    %cst_71 = arith.constant dense<0.000000e+00> : vector<64x128xf32>
    %62 = tpu.matmul %59, %61, %cst_71 {dimension_numbers = #tpu.dot_dimension_numbers<[1], [0], [0], [1], [0, 0, 1, 1], [], []>} : vector<64x4xbf16>, vector<4x128xbf16>, vector<64x128xf32> -> vector<64x128xf32>
    %63 = arith.addf %56, %62 : vector<64x128xf32>
    %64 = vector.extract_strided_slice %63 {offsets = [0, 0], sizes = [64, 4], strides = [1, 1]} : vector<64x128xf32> to vector<64x4xf32>
    %c0_72 = arith.constant 0 : index
    %c0_73 = arith.constant 0 : index
    %65 = vector.load %arg3[%c0_72, %c0_73] : memref<1x4xf32, #tpu.memory_space<vmem>>, vector<1x4xf32>
    %66 = vector.broadcast %65 : vector<1x4xf32> to vector<64x4xf32>
    %67 = arith.addf %64, %66 : vector<64x4xf32>
    %cst_74 = arith.constant 0.000000e+00 : f32
    %68 = vector.broadcast %cst_74 : f32 to vector<64x4xf32>
    %69 = arith.maximumf %67, %68 : vector<64x4xf32>
    %70 = vector.shape_cast %69 : vector<64x4xf32> to vector<8x8x4xf32>
    %71 = vector.shape_cast %70 : vector<8x8x4xf32> to vector<1x8x8x4xf32>
    %c0_75 = arith.constant 0 : index
    %c0_76 = arith.constant 0 : index
    %c0_77 = arith.constant 0 : index
    %c0_78 = arith.constant 0 : index
    %72 = vector.load %arg4[%c0_75, %c0_76, %c0_77, %c0_78] : memref<1x8x8x4xf32, #tpu.memory_space<vmem>>, vector<1x8x8x4xf32>
    tpu.vector_store %arg4[%c0_75, %c0_76, %c0_77, %c0_78], %71 {strides = array<i32>} : memref<1x8x8x4xf32, #tpu.memory_space<vmem>>, vector<1x8x8x4xf32>,
    return
  }
  func.func @transform_0(%arg0: i32) -> (i32, i32, i32, i32, i32) {
    %c0_i32 = arith.constant 0 : i32
    %c0_i32_0 = arith.constant 0 : i32
    %c0_i32_1 = arith.constant 0 : i32
    %c0_i32_2 = arith.constant 0 : i32
    %c0_i32_3 = arith.constant 0 : i32
    return %arg0, %c0_i32, %c0_i32_0, %c0_i32_1, %c0_i32_2 : i32, i32, i32, i32, i32
  }
  func.func @transform_1(%arg0: i32) -> (i32, i32, i32) {
    %c0_i32 = arith.constant 0 : i32
    %c0_i32_0 = arith.constant 0 : i32
    %c0_i32_1 = arith.constant 0 : i32
    %c0_i32_2 = arith.constant 0 : i32
    return %c0_i32, %c0_i32_0, %c0_i32_1 : i32, i32, i32
  }
  func.func @transform_2(%arg0: i32) -> (i32, i32) {
    %c0_i32 = arith.constant 0 : i32
    %c0_i32_0 = arith.constant 0 : i32
    %c0_i32_1 = arith.constant 0 : i32
    return %c0_i32, %c0_i32_0 : i32, i32
  }
  func.func @transform_3(%arg0: i32) -> (i32, i32, i32, i32) {
    %c0_i32 = arith.constant 0 : i32
    %c0_i32_0 = arith.constant 0 : i32
    %c0_i32_1 = arith.constant 0 : i32
    %c0_i32_2 = arith.constant 0 : i32
    return %arg0, %c0_i32, %c0_i32_0, %c0_i32_1 : i32, i32, i32, i32
  }
}

</mosaic_0001>

<bundles_post_ra>
// kernel: _lambda_.3
= control target key start
LH: loop header
LB: loop body
LE: loop exit
PB: predicated region body
PF: predicated region fallthrough
CT: control target
= control target key end

     0   :  { %s1912_s12 = smov 0   ;;  %s2247_s0 = inlined_call_operand.vmem [shape: bf16[2,9,2,9,8], index: 0, kind: input, shape index: {}]   ;;  %s2248_s1 = inlined_call_operand.vmem [shape: bf16[9,4,128], index: 1, kind: input, shape index: {}]   ;;  %s2249_s2 = inlined_call_operand.vmem [shape: f32[1,4], index: 2, kind: input, shape index: {}]   ;;  %s2250_s3 = inlined_call_operand.vmem [shape: f32[2,8,8,4], index: 3, kind: output, shape index: {}]  }
   0x1 LB: > { %s1586_s13 = sadd.s32 4294967295, %s1889_s12   ;;  %p1590_p0 = scmp.ge.s32.totalorder %s1889_s12, 1  ;;  %s1889_s12 = sphi %s1912_s12, %s13_s12  }
   0x2   : > { %p137_p1 = scmp.lt.s32.totalorder %s1889_s12, 3 }
   0x4   : > { %p138_p2 = pnand %p1590_p0, %p137_p1 }
   0x5   : > { %p161_p3 = scmp.lt.s32.totalorder (!%p138_p2), %s1586_s13, 1  ;;  %s1891_s24 = smov (!%p138_p2), 124  }
   0x6   : > { %141 = sbr.rel (%p138_p2) target bundleno = 407 (0x197), region = 32 }
   0xb   : > { %v1594_v0 = vld [vmem:[%s2248_s1 + $0x2] sm:$0x3]  ;;  %vm224_vm0 = vcmask 1041408   ;;  %v1929_v2 = vld [vmem:[%s2248_s1] sm:$0x3]  ;;  %s2254_s13 = smov (!%p161_p3, %s1586_s13), 1 }
   0xc   : > { %1852 = vmatprep.subr.msk.bf16.mxu1 %vm224_vm0, %v1594_v0  ;;  %1851 = vmatprep.subr.msk.bf16.mxu0 %vm224_vm0, %v1594_v0  ;;  %v226_v1 = vsel %vm224_vm0, %v1594_v0, 0  ;;  %v1934_v3 = vld [vmem:[%s2248_s1 + $0x4] sm:$0x3]  ;;  %s1861_s20 = smul.u32 144, %s2254_s13  ;;  %vm211_vm1 = vcmask 31744   ;;  %s1713_s14 = sshll.u32 %s2254_s13, 6 }
   0xd   : > { %1850 = vmatpush3.bf16.msra.mxu1 %v226_v1  ;;  %1760 = vmatpush3.bf16.msra.mxu0 %v226_v1  ;;  %vm389_vm2 = vsmask.f32 3328  ;;  %vm390_vm3 = vsmask.f32 7440  ;;  %s2219_s13 = scalar_lea.vmem %s2250_s3, %s1713_s14 }
   0xe   : > { %1853 = vmatprep.subr.msk.bf16.mxu1 %vm224_vm0, %v1929_v2  ;;  %1854 = vmatprep.subr.msk.bf16.mxu0 %vm224_vm0, %v1934_v3  ;;  %s1946_s23 = scalar_lea.vmem %s2247_s0, %s1861_s20  ;;  %vm2010_vm4 = vmor %vm389_vm2, %vm390_vm3 }
   0xf   : > { %v1949_v4 = vld [vmem:[%s1946_s23 + $0x40] ss:$16 sps:$4 sm:$0xff]   ;;  %v1964_v8 = vld [vmem:[%s1946_s23 + $0x8] ss:$16 sps:$4 sm:$0xff]   ;;  %v374_v23 = vld [vmem:[%s1946_s23 + $0x4] sm:$0x1] }
  0x10   : > { %v1952_v5 = vld [vmem:[%s1946_s23] ss:$16 sps:$4 sm:$0xff]   ;;  %207 = vrot.lane.b32.xlu0 %v1949_v4, %s1891_s24  ;;  %v1968_v9 = vld [vmem:[%s1946_s23 + $0x28] ss:$16 sps:$4 sm:$0xff]   ;;  %v376_v25 = vld [vmem:[%s1946_s23 + $0x14] sm:$0x1] }
  0x11   : > { %v1956_v6 = vld [vmem:[%s1946_s23 + $0x60] ss:$16 sps:$4 sm:$0xff]   ;;  %203 = vrot.lane.b32.xlu1 %v1952_v5, %s1891_s24  ;;  %v1972_v10 = vld [vmem:[%s1946_s23 + $0x48] ss:$16 sps:$4 sm:$0xff]   ;;  %v402_v36 = vshll.u32 %v374_v23, 16  ;;  %v416_v37 = vshll.u32 %v376_v25, 16 }
  0x12   : > { %v1960_v7 = vld [vmem:[%s1946_s23 + $0x20] ss:$16 sps:$4 sm:$0xff]   ;;  %v1976_v11 = vld [vmem:[%s1946_s23 + $0x68] ss:$16 sps:$4 sm:$0xff]   ;;  %v378_v50 = vld [vmem:[%s1946_s23 + $0x24] sm:$0x1] }
  0x13   : > { %v1980_v12 = vld [vmem:[%s1946_s23 + $0x10] ss:$16 sps:$4 sm:$0xff]   ;;  %v404_v48 = vrot.slane %v402_v36, 5  ;;  %v418_v49 = vrot.slane %v416_v37, 5  ;;  %v380_v51 = vld [vmem:[%s1946_s23 + $0x34] sm:$0x1] }
  0x14   : > { %209 = vrot.lane.b32.xlu0 %v1956_v6, %s1891_s24  ;;  %v1984_v13 = vld [vmem:[%s1946_s23 + $0x30] ss:$16 sps:$4 sm:$0xff]   ;;  %v430_v62 = vshll.u32 %v378_v50, 16  ;;  %v444_v0 = vshll.u32 %v380_v51, 16  ;;  %v382_v1 = vld [vmem:[%s1946_s23 + $0x44] sm:$0x1] }
  0x15   : > { %205 = vrot.lane.b32.xlu1 %v1960_v7, %s1891_s24  ;;  %v1988_v14 = vld [vmem:[%s1946_s23 + $0x50] ss:$16 sps:$4 sm:$0xff]   ;;  %v1638_v50 = vld [vmem:[%s1946_s23 + $0x8] sm:$0xf] }
  0x16   : > { %v1992_v15 = vld [vmem:[%s1946_s23 + $0x70] ss:$16 sps:$4 sm:$0xff]  }
  0x17   : > { %v373_v16 = vld [vmem:[%s1946_s23] sm:$0xf]  ;;  %v375_v17 = vld [vmem:[%s1946_s23 + $0x10] sm:$0xf] }
  0x18   : > { %727 = vrot.lane.b32.xlu0 %v1964_v8, %s1891_s24  ;;  %v393_v18 = vshrl.u32 %v373_v16, 16  ;;  %v396_v19 = vshll.u32 %v373_v16, 16  ;;  %v407_v20 = vshrl.u32 %v375_v17, 16  ;;  %v410_v21 = vshll.u32 %v375_v17, 16  ;;  %v377_v22 = vld [vmem:[%s1946_s23 + $0x20] sm:$0xf] }
  0x19   : > { %729 = vrot.lane.b32.xlu1 %v1968_v9, %s1891_s24  ;;  %v379_v24 = vld [vmem:[%s1946_s23 + $0x30] sm:$0xf]  ;;  %v421_v30 = vshrl.u32 %v377_v22, 16  ;;  %v424_v31 = vshll.u32 %v377_v22, 16  ;;  %v381_v34 = vld [vmem:[%s1946_s23 + $0x40] sm:$0xf] }
  0x1a   : > { %v395_v26 = vrot.slane %v393_v18, 4  ;;  %v398_v27 = vrot.slane %v396_v19, 5  ;;  %v409_v28 = vrot.slane %v407_v20, 4  ;;  %v412_v29 = vrot.slane %v410_v21, 5  ;;  %v383_v35 = vld [vmem:[%s1946_s23 + $0x50] sm:$0xf] }
  0x1b   : > { %v435_v32 = vshrl.u32 %v379_v24, 16  ;;  %v438_v33 = vshll.u32 %v379_v24, 16  ;;  %v449_v40 = vshrl.u32 %v381_v34, 16  ;;  %v452_v41 = vshll.u32 %v381_v34, 16  ;;  %v385_v54 = vld [vmem:[%s1946_s23 + $0x60] sm:$0xf] }
  0x1c   : > { %731 = vrot.lane.b32.xlu0 %v1972_v10, %s1891_s24  ;;  %v399_v38 = vor.u32 %v398_v27, %v395_v26  ;;  %v413_v39 = vor.u32 %v412_v29, %v409_v28  ;;  %v463_v42 = vshrl.u32 %v383_v35, 16  ;;  %v466_v43 = vshll.u32 %v383_v35, 16  ;;  %v387_v55 = vld [vmem:[%s1946_s23 + $0x70] sm:$0xf]  ;;  %v384_v16 = vld [vmem:[%s1946_s23 + $0x54] sm:$0x1] }
  0x1d   : > { %733 = vrot.lane.b32.xlu1 %v1976_v11, %s1891_s24  ;;  %v423_v44 = vrot.slane %v421_v30, 4  ;;  %v426_v45 = vrot.slane %v424_v31, 5  ;;  %v437_v46 = vrot.slane %v435_v32, 4  ;;  %v440_v47 = vrot.slane %v438_v33, 5 }
  0x1e   : > { %v400_v52 = vrot.slane %v399_v38, 4  ;;  %v414_v53 = vrot.slane %v413_v39, 4  ;;  %v451_v57 = vrot.slane %v449_v40, 4  ;;  %v454_v58 = vrot.slane %v452_v41, 5  ;;  %v386_v40 = vld [vmem:[%s1946_s23 + $0x64] sm:$0x1] }
  0x1f   : > { %v465_v59 = vrot.slane %v463_v42, 4  ;;  %v468_v60 = vrot.slane %v466_v43, 5  ;;  %v427_v61 = vor.u32 %v426_v45, %v423_v44  ;;  %v441_v63 = vor.u32 %v440_v47, %v437_v46  ;;  %v388_v41 = vld [vmem:[%s1946_s23 + $0x74] sm:$0x1]  ;;  %v1624_v43 = vld [vmem:[%s2248_s1 + $0x6] sm:$0x3] }
  0x20   : > { %1174 = vrot.lane.b32.xlu0 %v1980_v12, %s1891_s24  ;;  %v477_v17 = vshrl.u32 %v385_v54, 16  ;;  %v480_v18 = vshll.u32 %v385_v54, 16  ;;  %v491_v19 = vshrl.u32 %v387_v55, 16  ;;  %v494_v20 = vshll.u32 %v387_v55, 16 }
  0x21   : > { %1176 = vrot.lane.b32.xlu1 %v1984_v13, %s1891_s24  ;;  %v306_v22 = vsel %vm224_vm0, %v1929_v2, 0  ;;  %v405_v23 = vsel %vm2010_vm4, %v400_v52, %v404_v48  ;;  %v419_v24 = vsel %vm2010_vm4, %v414_v53, %v418_v49  ;;  %v455_v26 = vor.u32 %v454_v58, %v451_v57  ;;  %v1633_v49 = vld [vmem:[%s2248_s1 + $0x8] sm:$0x3] }
  0x22   : > { %v458_v27 = vshll.u32 %v382_v1, 16  ;;  %v469_v28 = vor.u32 %v468_v60, %v465_v59  ;;  %v472_v29 = vshll.u32 %v384_v16, 16  ;;  %v428_v30 = vrot.slane %v427_v61, 4  ;;  %v1640_v61 = vld [vmem:[%s1946_s23 + $0x18] sm:$0xf] }
  0x23   : > { %v432_v31 = vrot.slane %v430_v62, 5  ;;  %v442_v2 = vrot.slane %v441_v63, 4  ;;  %v446_v32 = vrot.slane %v444_v0, 5  ;;  %v479_v33 = vrot.slane %v477_v17, 4  ;;  %v1642_v16 = vld [vmem:[%s1946_s23 + $0x28] sm:$0xf] }
  0x24   : > { %1178 = vrot.lane.b32.xlu0 %v1988_v14, %s1891_s24  ;;  %v482_v34 = vrot.slane %v480_v18, 5  ;;  %v493_v35 = vrot.slane %v491_v19, 4  ;;  %v496_v36 = vrot.slane %v494_v20, 5  ;;  %v531_v38 = vsel %vm224_vm0, %v1934_v3, 0  ;;  %v1654_v19 = vld [vmem:[%s2248_s1 + $0xa] sm:$0x3] }
  0x25   : > { %1180 = vrot.lane.b32.xlu1 %v1992_v15, %s1891_s24  ;;  %v1608_v39 = vcombine.low %v405_v23, %v419_v24  ;;  %v456_v44 = vrot.slane %v455_v26, 4  ;;  %v460_v45 = vrot.slane %v458_v27, 5  ;;  %v470_v46 = vrot.slane %v469_v28, 4  ;;  %v1671_v20 = vld [vmem:[%s2248_s1 + $0xc] sm:$0x3] }
  0x26   : > { %v474_v47 = vrot.slane %v472_v29, 5  ;;  %v433_v3 = vsel %vm2010_vm4, %v428_v30, %v432_v31  ;;  %v447_v48 = vsel %vm2010_vm4, %v442_v2, %v446_v32  ;;  %v483_v51 = vor.u32 %v482_v34, %v479_v33  ;;  %v1644_v24 = vld [vmem:[%s1946_s23 + $0x38] sm:$0xf]  ;;  %v1641_v2 = vld [vmem:[%s1946_s23 + $0x1c] sm:$0x1] }
  0x27   : > { %v486_v52 = vshll.u32 %v386_v40, 16  ;;  %v497_v53 = vor.u32 %v496_v36, %v493_v35  ;;  %v500_v54 = vshll.u32 %v388_v41, 16  ;;  %v461_v55 = vsel %vm2010_vm4, %v456_v44, %v460_v45  ;;  %v1646_v34 = vld [vmem:[%s1946_s23 + $0x48] sm:$0xf] }
  0x28   : > { %v475_v57 = vsel %vm2010_vm4, %v470_v46, %v474_v47  ;;  %v840_v58 = vshrl.u32 %v1638_v50, 16  ;;  %v843_v59 = vshll.u32 %v1638_v50, 16  ;;  %v650_v60 = vsel %vm224_vm0, %v1624_v43, 0  ;;  %v1645_v47 = vld [vmem:[%s1946_s23 + $0x3c] sm:$0x1] }
  0x29   : > { %v484_v62 = vrot.slane %v483_v51, 4  ;;  %v488_v63 = vrot.slane %v486_v52, 5  ;;  %v498_v0 = vrot.slane %v497_v53, 4  ;;  %v502_v1 = vrot.slane %v500_v54, 5 }
  0x2a   : > { %v748_v17 = vsel %vm224_vm0, %v1633_v49, 0  ;;  %v1610_v18 = vcombine.low %v461_v55, %v475_v57  ;;  %v854_v23 = vshrl.u32 %v1640_v61, 16  ;;  %v857_v26 = vshll.u32 %v1640_v61, 16  ;;  %v1647_v61 = vld [vmem:[%s1946_s23 + $0x4c] sm:$0x1] }
  0x2b   : > { %v868_v27 = vshrl.u32 %v1642_v16, 16  ;;  %v871_v28 = vshll.u32 %v1642_v16, 16  ;;  %v503_v29 = vsel %vm2010_vm4, %v498_v0, %v502_v1  ;;  %v882_v30 = vshrl.u32 %v1644_v24, 16  ;;  %v1652_v16 = vld [vmem:[%s1946_s23 + $0x78] sm:$0xf] }
  0x2c   : > { %v885_v31 = vshll.u32 %v1644_v24, 16  ;;  %v859_v36 = vrot.slane %v857_v26, 5  ;;  %v896_v44 = vshrl.u32 %v1646_v34, 16  ;;  %v899_v45 = vshll.u32 %v1646_v34, 16 }
  0x2d   : > { %v884_v41 = vrot.slane %v882_v30, 4  ;;  %v863_v46 = vshll.u32 %v1641_v2, 16  ;;  %v1097_v52 = vsel %vm224_vm0, %v1671_v20, 0  ;;  %v938_v30 = vshrl.u32 %v1652_v16, 16 }
  0x2e   : > { %v898_v57 = vrot.slane %v896_v44, 4 }
  0x82   : > { %v208_v21 = vpop.permute.xlu0 %207 }
  0x83   : > { %v204_v25 = vpop.permute.xlu1 %203  ;;  %1765 = vmatprep.mubr.msk.bf16.mxu1 %vm211_vm1, %v208_v21  ;;  %v842_v21 = vrot.slane %v840_v58, 4  ;;  %v901_v58 = vrot.slane %v899_v45, 5  ;;  %v1686_v45 = vld [vmem:[%s1946_s23 + $0x14] sm:$0x1] }
  0x84   : > { %1761 = vmatprep.mubr.msk.bf16.mxu0 %vm211_vm1, %v204_v25  ;;  %v1639_v25 = vld [vmem:[%s1946_s23 + $0xc] sm:$0x1] }
  0x85   : > { %v849_v33 = vshll.u32 %v1639_v25, 16  ;;  %v2106_v25 = vld [vmem:[%s2248_s1 + $0xe] sm:$0x3] }
  0x86   : > { %v210_v37 = vpop.permute.xlu0 %209 }
  0x87   : > { %v206_v42 = vpop.permute.xlu1 %205  ;;  %1766 = vmatmul.mubr.msk.bf16.vlgmr.msra.gmra.mxu1 %vm211_vm1, %v210_v37  ;;  %v1643_v37 = vld [vmem:[%s1946_s23 + $0x2c] sm:$0x1] }
  0x88   : > { %1762 = vmatmul.mubr.msk.bf16.vlgmr.msra.gmra.mxu0 %vm211_vm1, %v206_v42  ;;  %1770 = vmatpush3.bf16.msra.mxu1 %v306_v22  ;;  %v845_v22 = vrot.slane %v843_v59, 5  ;;  %v887_v42 = vrot.slane %v885_v31, 5  ;;  %v1650_v59 = vld [vmem:[%s1946_s23 + $0x68] sm:$0xf]  ;;  %v941_v31 = vshll.u32 %v1652_v16, 16 }
  0x89   : > { %1780 = vmatpush3.bf16.msra.mxu0 %v531_v38  ;;  %1771 = vmatprep.mubr.msk.bf16.mxu1 %vm211_vm1, %v1952_v5  ;;  %v1609_v5 = vcombine.low %v433_v3, %v447_v48  ;;  %v870_v38 = vrot.slane %v868_v27, 4  ;;  %v877_v3 = vshll.u32 %v1643_v37, 16  ;;  %v1695_v16 = vld [vmem:[%s1946_s23 + $0x60] sm:$0xf] }
  0x8a   : > { %1781 = vmatprep.mubr.msk.bf16.mxu0 %vm211_vm1, %v1608_v39  ;;  %1855 = vmatprep.subr.msk.bf16.mxu1 %vm224_vm0, %v1624_v43  ;;  %v846_v32 = vor.u32 %v845_v22, %v842_v21  ;;  %v873_v39 = vrot.slane %v871_v28, 5  ;;  %v728_v40 = vpop.permute.xlu0 %727  ;;  %v1648_v43 = vld [vmem:[%s1946_s23 + $0x58] sm:$0xf]  ;;  %v888_v55 = vor.u32 %v887_v42, %v884_v41  ;;  %v924_v21 = vshrl.u32 %v1650_v59, 16 }
  0x8b   : > { %1856 = vmatprep.subr.msk.bf16.mxu0 %vm224_vm0, %v1633_v49  ;;  %v2086_v49 = vrot.slane %v849_v33, 5  ;;  %v910_v53 = vshrl.u32 %v1648_v43, 16  ;;  %v913_v54 = vshll.u32 %v1648_v43, 16  ;;  %v927_v22 = vshll.u32 %v1650_v59, 16 }
  0x8c   : > { %v2084_v48 = vrot.slane %v846_v32, 4  ;;  %v874_v51 = vor.u32 %v873_v39, %v870_v38  ;;  %v889_v26 = vrot.slane %v888_v55, 4  ;;  %v902_v28 = vor.u32 %v901_v58, %v898_v57  ;;  %v1653_v38 = vld [vmem:[%s1946_s23 + $0x7c] sm:$0x1]  ;;  %v1691_v58 = vld [vmem:[%s1946_s23 + $0x40] sm:$0xf] }
  0x8d   : > { %v926_v39 = vrot.slane %v924_v21, 4  ;;  %v1296_v57 = vshll.u32 %v1686_v45, 16 }
  0x8e   : > { %v875_v1 = vrot.slane %v874_v51, 4  ;;  %v732_v24 = vpop.permute.xlu0 %731  ;;  %v903_v42 = vrot.slane %v902_v28, 4  ;;  %v1360_v28 = vshll.u32 %v1695_v16, 16 }
  0x8f   : > { %1772 = vmatmul.mubr.msk.bf16.vlgmr.msra.gmra.mxu1 %vm211_vm1, %v1960_v7  ;;  %v489_v7 = vsel %vm2010_vm4, %v484_v62, %v488_v63  ;;  %v1649_v62 = vld [vmem:[%s1946_s23 + $0x5c] sm:$0x1]  ;;  %v852_v63 = vsel %vm2010_vm4, %v2084_v48, %v2086_v49 }
  0x90   : > { %1782 = vmatmul.mubr.msk.bf16.vlgmr.msra.gmra.mxu0 %vm211_vm1, %v1609_v5  ;;  %1790 = vmatpush3.bf16.msra.mxu1 %v650_v60  ;;  %v1611_v35 = vcombine.low %v489_v7, %v503_v29  ;;  %v865_v5 = vrot.slane %v863_v46, 5  ;;  %v2092_v60 = vrot.slane %v877_v3, 5  ;;  %v905_v7 = vshll.u32 %v1647_v61, 16  ;;  %v1651_v29 = vld [vmem:[%s1946_s23 + $0x6c] sm:$0x1] }
  0x91   : > { %1800 = vmatpush3.bf16.msra.mxu0 %v748_v17  ;;  %1775 = vmatprep.mubr.msk.bf16.mxu1 %vm211_vm1, %v1949_v4  ;;  %v856_v4 = vrot.slane %v854_v23, 4  ;;  %v1685_v17 = vld [vmem:[%s1946_s23 + $0x10] sm:$0xf]  ;;  %v1687_v23 = vld [vmem:[%s1946_s23 + $0x20] sm:$0xf]  ;;  %v919_v34 = vshll.u32 %v1649_v62, 16 }
  0x92   : > { %1785 = vmatprep.mubr.msk.bf16.mxu0 %vm211_vm1, %v1610_v18  ;;  %1857 = vmatprep.subr.msk.bf16.mxu1 %vm224_vm0, %v1654_v19  ;;  %v730_v18 = vpop.permute.xlu1 %729  ;;  %v1287_v2 = vshrl.u32 %v1685_v17, 16  ;;  %v1290_v32 = vshll.u32 %v1685_v17, 16  ;;  %v907_v43 = vrot.slane %v905_v7, 5  ;;  %v933_v44 = vshll.u32 %v1651_v29, 16  ;;  %v1688_v3 = vld [vmem:[%s1946_s23 + $0x24] sm:$0x1] }
  0x93   : > { %1858 = vmatprep.subr.msk.bf16.mxu0 %vm224_vm0, %v1671_v20  ;;  %v860_v50 = vor.u32 %v859_v36, %v856_v4  ;;  %v915_v20 = vrot.slane %v913_v54, 5  ;;  %v2117_v4 = vld [vmem:[%s2248_s1 + $0x10] sm:$0x3]  ;;  %v880_v36 = vsel %vm2010_vm4, %v875_v1, %v2092_v60  ;;  %v940_v46 = vrot.slane %v938_v30, 4 }
  0x94   : > { %v1289_v48 = vrot.slane %v1287_v2, 4  ;;  %v2138_v60 = vrot.slane %v933_v44, 5  ;;  %v1693_v1 = vld [vmem:[%s1946_s23 + $0x50] sm:$0xf] }
  0x95   : > { %v861_v0 = vrot.slane %v860_v50, 4  ;;  %v921_v50 = vrot.slane %v919_v34, 5 }
  0x97   : > { %1776 = vmatmul.mubr.msk.bf16.gmra.mxu1 %vm211_vm1, %v1956_v6  ;;  %v978_v6 = vsel %vm224_vm0, %v1654_v19, 0  ;;  %v912_v19 = vrot.slane %v910_v53, 4  ;;  %v866_v33 = vsel %vm2010_vm4, %v861_v0, %v865_v5  ;;  %v734_v53 = vpop.permute.xlu1 %733  ;;  %v908_v5 = vsel %vm2010_vm4, %v903_v42, %v907_v43  ;;  %v1699_v43 = vld [vmem:[%s1946_s23 + $0x80] sm:$0xf] }
  0x98   : > { %1786 = vmatmul.mubr.msk.bf16.gmra.mxu0 %vm211_vm1, %v1611_v35  ;;  %1791 = vmatprep.mubr.msk.bf16.mxu1 %vm211_vm1, %v1964_v8  ;;  %v891_v8 = vshll.u32 %v1645_v47, 16  ;;  %v1304_v35 = vshll.u32 %v1687_v23, 16  ;;  %v943_v47 = vrot.slane %v941_v31, 5  ;;  %v1655_v49 = vcombine.low %v852_v63, %v866_v33 }
  0x99   : > { %1801 = vmatprep.mubr.msk.bf16.mxu0 %vm211_vm1, %v728_v40  ;;  %v916_v37 = vor.u32 %v915_v20, %v912_v19  ;;  %v929_v40 = vrot.slane %v927_v22, 5  ;;  %v1310_v63 = vshll.u32 %v1688_v3, 16  ;;  %v1329_v19 = vshrl.u32 %v1691_v58, 16 }
  0x9a   : > { %v893_v27 = vrot.slane %v891_v8, 5  ;;  %v947_v8 = vshll.u32 %v1653_v38, 16  ;;  %v944_v61 = vor.u32 %v943_v47, %v940_v46  ;;  %v1332_v20 = vshll.u32 %v1691_v58, 16  ;;  %v1697_v38 = vld [vmem:[%s1946_s23 + $0x70] sm:$0xf] }
  0x9b   : > { %v917_v54 = vrot.slane %v916_v37, 4  ;;  %v930_v55 = vor.u32 %v929_v40, %v926_v39  ;;  %v1312_v30 = vrot.slane %v1310_v63, 5  ;;  %v1331_v33 = vrot.slane %v1329_v19, 4  ;;  %v1692_v37 = vld [vmem:[%s1946_s23 + $0x44] sm:$0x1] }
  0x9c   : > { %v894_v41 = vsel %vm2010_vm4, %v889_v26, %v893_v27  ;;  %v949_v22 = vrot.slane %v947_v8, 5  ;;  %v1346_v26 = vshll.u32 %v1693_v1, 16  ;;  %v1357_v27 = vshrl.u32 %v1695_v16, 16  ;;  %v1694_v46 = vld [vmem:[%s1946_s23 + $0x54] sm:$0x1] }
  0x9d   : > { %v1656_v59 = vcombine.low %v880_v36, %v894_v41  ;;  %v931_v21 = vrot.slane %v930_v55, 4  ;;  %v945_v7 = vrot.slane %v944_v61, 4  ;;  %v1334_v34 = vrot.slane %v1332_v20, 5  ;;  %v1696_v47 = vld [vmem:[%s1946_s23 + $0x64] sm:$0x1]  ;;  %v1175_v61 = vpop.permute.xlu0 %1174 }
  0x9e   : > { %v1348_v40 = vrot.slane %v1346_v26, 5  ;;  %v1359_v41 = vrot.slane %v1357_v27, 4  ;;  %v1362_v42 = vrot.slane %v1360_v28, 5  ;;  %v1366_v55 = vshll.u32 %v1696_v47, 16  ;;  %v1700_v20 = vld [vmem:[%s1946_s23 + $0x84] sm:$0x1]  ;;  %v1177_v28 = vpop.permute.xlu1 %1176 }
  0x9f   : > { %1792 = vmatmul.mubr.msk.bf16.vlgmr.msra.gmra.mxu1 %vm211_vm1, %v1968_v9  ;;  %v1301_v9 = vshrl.u32 %v1687_v23, 16  ;;  %v1298_v23 = vrot.slane %v1296_v57, 5  ;;  %v936_v44 = vsel %vm2010_vm4, %v931_v21, %v2138_v60  ;;  %v1394_v26 = vshll.u32 %v1700_v20, 16 }
  0xa0   : > { %1802 = vmatmul.mubr.msk.bf16.vlgmr.msra.gmra.mxu0 %vm211_vm1, %v730_v18  ;;  %1810 = vmatpush3.bf16.msra.mxu1 %v978_v6  ;;  %v1306_v6 = vrot.slane %v1304_v35, 5  ;;  %v1425_v35 = vsel %vm224_vm0, %v2117_v4, 0  ;;  %v1368_v19 = vrot.slane %v1366_v55, 5 }
  0xa1   : > { %1820 = vmatpush3.bf16.msra.mxu0 %v1097_v52  ;;  %1805 = vmatprep.mubr.msk.bf16.mxu0 %vm211_vm1, %v732_v24  ;;  %v1303_v51 = vrot.slane %v1301_v9, 4  ;;  %v1689_v52 = vld [vmem:[%s1946_s23 + $0x30] sm:$0xf]  ;;  %v1343_v24 = vshrl.u32 %v1693_v1, 16  ;;  %v1195_v9 = vsel %vm224_vm0, %v2106_v25, 0 }
  0xa2   : > { %1795 = vmatprep.mubr.msk.bf16.mxu1 %vm211_vm1, %v1972_v10  ;;  %1859 = vmatprep.subr.msk.bf16.mxu1 %vm224_vm0, %v2106_v25  ;;  %v1292_v10 = vrot.slane %v1290_v32, 5  ;;  %v1315_v0 = vshrl.u32 %v1689_v52, 16  ;;  %v1318_v18 = vshll.u32 %v1689_v52, 16  ;;  %v1690_v32 = vld [vmem:[%s1946_s23 + $0x34] sm:$0x1]  ;;  %v950_v25 = vsel %vm2010_vm4, %v945_v7, %v949_v22 }
  0xa3   : > { %1860 = vmatprep.subr.msk.bf16.mxu0 %vm224_vm0, %v2117_v4  ;;  %v1307_v17 = vor.u32 %v1306_v6, %v1303_v51  ;;  %v1345_v39 = vrot.slane %v1343_v24, 4  ;;  %v1324_v45 = vshll.u32 %v1690_v32, 16  ;;  %v1374_v51 = vshll.u32 %v1697_v38, 16 }
  0xa4   : > { %v1293_v62 = vor.u32 %v1292_v10, %v1289_v48  ;;  %v1317_v31 = vrot.slane %v1315_v0, 4  ;;  %v1335_v10 = vor.u32 %v1334_v34, %v1331_v33  ;;  %v1385_v6 = vshrl.u32 %v1699_v43, 16 }
  0xa5   : > { %v1308_v2 = vrot.slane %v1307_v17, 4  ;;  %v1388_v52 = vshll.u32 %v1699_v43, 16  ;;  %v1658_v8 = vcombine.low %v936_v44, %v950_v25  ;;  %v1326_v57 = vrot.slane %v1324_v45, 5 }
  0xa6   : > { %v1294_v29 = vrot.slane %v1293_v62, 4  ;;  %v1698_v62 = vld [vmem:[%s1946_s23 + $0x74] sm:$0x1]  ;;  %v1376_v0 = vrot.slane %v1374_v51, 5  ;;  %v1387_v1 = vrot.slane %v1385_v6, 4 }
  0xa7   : > { %1796 = vmatmul.mubr.msk.bf16.gmra.mxu1 %vm211_vm1, %v1976_v11  ;;  %v922_v11 = vsel %vm2010_vm4, %v917_v54, %v921_v50  ;;  %v1313_v3 = vsel %vm2010_vm4, %v1308_v2, %v1312_v30  ;;  %v1371_v50 = vshrl.u32 %v1697_v38, 16  ;;  %v1363_v54 = vor.u32 %v1362_v42, %v1359_v41  ;;  %v1179_v30 = vpop.permute.xlu0 %1178 }
  0xa8   : > { %1806 = vmatmul.mubr.msk.bf16.gmra.mxu0 %vm211_vm1, %v734_v53  ;;  %1811 = vmatprep.mubr.msk.bf16.mxu1 %vm211_vm1, %v1655_v49  ;;  %v1657_v36 = vcombine.low %v908_v5, %v922_v11  ;;  %v1299_v4 = vsel %vm2010_vm4, %v1294_v29, %v1298_v23  ;;  %v1338_v49 = vshll.u32 %v1692_v37, 16  ;;  %v1349_v53 = vor.u32 %v1348_v40, %v1345_v39 }
  0xa9   : > { %1821 = vmatprep.mubr.msk.bf16.mxu0 %vm211_vm1, %v1980_v12  ;;  %v1320_v12 = vrot.slane %v1318_v18, 5  ;;  %v1702_v58 = vcombine.low %v1299_v4, %v1313_v3  ;;  %v1336_v5 = vrot.slane %v1335_v10, 4  ;;  %v1373_v63 = vrot.slane %v1371_v50, 4 }
  0xaa   : > { %v1340_v60 = vrot.slane %v1338_v49, 5  ;;  %v1390_v16 = vrot.slane %v1388_v52, 5  ;;  %v1350_v17 = vrot.slane %v1349_v53, 4  ;;  %v1380_v21 = vshll.u32 %v1698_v62, 16 }
  0xab   : > { %v1321_v48 = vor.u32 %v1320_v12, %v1317_v31  ;;  %v1377_v23 = vor.u32 %v1376_v0, %v1373_v63  ;;  %v1396_v12 = vrot.slane %v1394_v26, 5 }
  0xac   : > { %v1341_v22 = vsel %vm2010_vm4, %v1336_v5, %v1340_v60  ;;  %v1391_v24 = vor.u32 %v1390_v16, %v1387_v1  ;;  %v1382_v29 = vrot.slane %v1380_v21, 5 }
  0xad   : > { %v1378_v2 = vrot.slane %v1377_v23, 4 }
  0xae   : > { %v1392_v32 = vrot.slane %v1391_v24, 4 }
  0xaf   : > { %1812 = vmatmul.mubr.msk.bf16.vlgmr.msra.gmra.mxu1 %vm211_vm1, %v1656_v59  ;;  %v1322_v59 = vrot.slane %v1321_v48, 4  ;;  %v1383_v33 = vsel %vm2010_vm4, %v1378_v2, %v1382_v29 }
  0xb0   : > { %1822 = vmatmul.mubr.msk.bf16.vlgmr.msra.gmra.mxu0 %vm211_vm1, %v1984_v13  ;;  %1830 = vmatpush3.bf16.msra.mxu1 %v1195_v9  ;;  %v1352_v13 = vshll.u32 %v1694_v46, 16  ;;  %v1397_v34 = vsel %vm2010_vm4, %v1392_v32, %v1396_v12  ;;  %v1181_v9 = vpop.permute.xlu1 %1180 }
  0xb1   : > { %1840 = vmatpush3.bf16.msra.mxu0 %v1425_v35  ;;  %1815 = vmatprep.mubr.msk.bf16.mxu1 %vm211_vm1, %v1657_v36  ;;  %v1327_v11 = vsel %vm2010_vm4, %v1322_v59, %v1326_v57  ;;  %v1705_v35 = vcombine.low %v1383_v33, %v1397_v34 }
  0xb2   : > { %1825 = vmatprep.mubr.msk.bf16.mxu0 %vm211_vm1, %v1988_v14  ;;  %v1354_v18 = vrot.slane %v1352_v13, 5  ;;  %v1364_v14 = vrot.slane %v1363_v54, 4  ;;  %v1703_v7 = vcombine.low %v1327_v11, %v1341_v22 }
  0xb4   : > { %v1355_v27 = vsel %vm2010_vm4, %v1350_v17, %v1354_v18 }
  0xb7   : > { %1816 = vmatmul.mubr.msk.bf16.gmra.mxu1 %vm211_vm1, %v1658_v8 }
  0xb8   : > { %1826 = vmatmul.mubr.msk.bf16.gmra.mxu0 %vm211_vm1, %v1992_v15  ;;  %1831 = vmatprep.mubr.msk.bf16.mxu1 %vm211_vm1, %v1175_v61  ;;  %v1369_v15 = vsel %vm2010_vm4, %v1364_v14, %v1368_v19 }
  0xb9   : > { %1841 = vmatprep.mubr.msk.bf16.mxu0 %vm211_vm1, %v1702_v58  ;;  %v1704_v31 = vcombine.low %v1355_v27, %v1369_v15 }
  0xbf   : > { %1832 = vmatmul.mubr.msk.bf16.vlgmr.msra.gmra.mxu1 %vm211_vm1, %v1177_v28 }
  0xc0   : > { %1842 = vmatmul.mubr.msk.bf16.vlgmr.msra.gmra.mxu0 %vm211_vm1, %v1703_v7  ;;  %1835 = vmatprep.mubr.msk.bf16.mxu1 %vm211_vm1, %v1179_v30 }
  0xc1   : > { %1845 = vmatprep.mubr.msk.bf16.mxu0 %vm211_vm1, %v1704_v31 }
  0xc7   : > { %1836 = vmatmul.mubr.msk.bf16.gmra.mxu1 %vm211_vm1, %v1181_v9 }
  0xc8   : > { %1846 = vmatmul.mubr.msk.bf16.gmra.mxu0 %vm211_vm1, %v1705_v35 }
 0x147   : > { %v1767_v36 = vpop.f32.mrf.mxu1 }
 0x148   : > { %v1763_v37 = vpop.f32.mrf.mxu0 }
 0x149   : > { %v278_v38 = vpop.f32.mrf.mxu1 }
 0x14a   : > { %v262_v39 = vpop.f32.mrf.mxu0 }
 0x14b   : > { %v1768_v40 = vpop.f32.mrf.mxu1 }
 0x14c   : > { %v1764_v41 = vpop.f32.mrf.mxu0 }
 0x14d   : > { %v2200_v42 = vpop.f32.mrf.mxu1 }
 0x14e   : > { %v265_v43 = vpop.f32.mrf.mxu0 }
 0x14f   : > { %v1773_v44 = vpop.f32.mrf.mxu1 }
 0x150   : > { %v1783_v25 = vpop.f32.mrf.mxu0  ;;  %v351_v17 = vadd.f32 %v1773_v44, %v1763_v37 }
 0x151   : > { %v342_v4 = vpop.f32.mrf.mxu1 }
 0x152   : > { %v567_v56 = vpop.f32.mrf.mxu0  ;;  %v343_v19 = vadd.f32 %v342_v4, %v262_v39  ;;  %v600_v21 = vadd.f32 %v1783_v25, %v351_v17 }
 0x153   : > { %v1774_v45 = vpop.f32.mrf.mxu1 }
 0x154   : > { %v1784_v46 = vpop.f32.mrf.mxu0  ;;  %v354_v22 = vadd.f32 %v1774_v45, %v1764_v41  ;;  %v598_v26 = vadd.f32 %v567_v56, %v343_v19 }
 0x155   : > { %v345_v47 = vpop.f32.mrf.mxu1 }
 0x156   : > { %v570_v3 = vpop.f32.mrf.mxu0  ;;  %v346_v27 = vadd.f32 %v345_v47, %v265_v43  ;;  %v601_v30 = vadd.f32 %v1784_v46, %v354_v22 }
 0x157   : > { %v1777_v48 = vpop.f32.mrf.mxu1 }
 0x158   : > { %v1787_v10 = vpop.f32.mrf.mxu0  ;;  %v367_v7 = vadd.f32 %v1777_v48, %v1767_v36  ;;  %v599_v33 = vadd.f32 %v570_v3, %v346_v27 }
 0x159   : > { %v358_v49 = vpop.f32.mrf.mxu1 }
 0x15a   : > { %v583_v50 = vpop.f32.mrf.mxu0  ;;  %v359_v32 = vadd.f32 %v358_v49, %v278_v38  ;;  %v604_v37 = vadd.f32 %v1787_v10, %v367_v7 }
 0x15b   : > { %v1778_v51 = vpop.f32.mrf.mxu1 }
 0x15c   : > { %v1788_v6 = vpop.f32.mrf.mxu0  ;;  %v370_v39 = vadd.f32 %v1778_v51, %v1768_v40  ;;  %v602_v56 = vadd.f32 %v583_v50, %v359_v32 }
 0x15d   : > { %v361_v52 = vpop.f32.mrf.mxu1 }
 0x15e   : > { %v586_v53 = vpop.f32.mrf.mxu0  ;;  %v362_v36 = vadd.f32 %v361_v52, %v2200_v42  ;;  %v605_v49 = vadd.f32 %v1788_v6, %v370_v39  ;;  %v2210_v6 = vld [vmem:[%s2249_s2] ss:$0 sm:$0xff] }
 0x15f   : > { %v1793_v13 = vpop.f32.mrf.mxu1 }
 0x160   : > { %v1803_v54 = vpop.f32.mrf.mxu0  ;;  %v719_v15 = vadd.f32 %v1793_v13, %v600_v21  ;;  %v603_v51 = vadd.f32 %v586_v53, %v362_v36 }
 0x161   : > { %v686_v55 = vpop.f32.mrf.mxu1 }
 0x162   : > { %v784_v8 = vpop.f32.mrf.mxu0  ;;  %v717_v31 = vadd.f32 %v686_v55, %v598_v26  ;;  %v817_v34 = vadd.f32 %v1803_v54, %v719_v15 }
 0x163   : > { %v1794_v57 = vpop.f32.mrf.mxu1 }
 0x164   : > { %v1804_v58 = vpop.f32.mrf.mxu0  ;;  %v720_v9 = vadd.f32 %v1794_v57, %v601_v30  ;;  %v815_v44 = vadd.f32 %v784_v8, %v717_v31 }
 0x165   : > { %v689_v59 = vpop.f32.mrf.mxu1 }
 0x166   : > { %v787_v5 = vpop.f32.mrf.mxu0  ;;  %v718_v25 = vadd.f32 %v689_v59, %v599_v33  ;;  %v818_v47 = vadd.f32 %v1804_v58, %v720_v9 }
 0x167   : > { %v1797_v60 = vpop.f32.mrf.mxu1 }
 0x168   : > { %v1807_v61 = vpop.f32.mrf.mxu0  ;;  %v723_v45 = vadd.f32 %v1797_v60, %v604_v37  ;;  %v816_v54 = vadd.f32 %v787_v5, %v718_v25 }
 0x169   : > { %v702_v62 = vpop.f32.mrf.mxu1 }
 0x16a   : > { %v800_v63 = vpop.f32.mrf.mxu0  ;;  %v721_v3 = vadd.f32 %v702_v62, %v602_v56  ;;  %v821_v8 = vadd.f32 %v1807_v61, %v723_v45 }
 0x16b   : > { %v1798_v0 = vpop.f32.mrf.mxu1 }
 0x16c   : > { %v2202_v1 = vpop.f32.mrf.mxu0  ;;  %v724_v57 = vadd.f32 %v1798_v0, %v605_v49  ;;  %v819_v60 = vadd.f32 %v800_v63, %v721_v3 }
 0x16d   : > { %v705_v16 = vpop.f32.mrf.mxu1 }
 0x16e   : > { %v2204_v18 = vpop.f32.mrf.mxu0  ;;  %v722_v58 = vadd.f32 %v705_v16, %v603_v51  ;;  %v822_v0 = vadd.f32 %v2202_v1, %v724_v57 }
 0x16f   : > { %v1813_v14 = vpop.f32.mrf.mxu1 }
 0x170   : > { %v1823_v20 = vpop.f32.mrf.mxu0  ;;  %v1047_v4 = vadd.f32 %v1813_v14, %v817_v34 }
 0x171   : > { %v1014_v11 = vpop.f32.mrf.mxu1 }
 0x172   : > { %v1133_v23 = vpop.f32.mrf.mxu0  ;;  %v1045_v48 = vadd.f32 %v1014_v11, %v815_v44  ;;  %v1166_v55 = vadd.f32 %v1823_v20, %v1047_v4 }
 0x173   : > { %v1814_v24 = vpop.f32.mrf.mxu1 }
 0x174   : > { %v1824_v28 = vpop.f32.mrf.mxu0  ;;  %v1048_v10 = vadd.f32 %v1814_v24, %v818_v47  ;;  %v1164_v50 = vadd.f32 %v1133_v23, %v1045_v48  ;;  %v820_v24 = vadd.f32 %v2204_v18, %v722_v58 }
 0x175   : > { %v1017_v29 = vpop.f32.mrf.mxu1 }
 0x176   : > { %v1136_v2 = vpop.f32.mrf.mxu0  ;;  %v1046_v17 = vadd.f32 %v1017_v29, %v816_v54  ;;  %v1167_v62 = vadd.f32 %v1824_v28, %v1048_v10 }
 0x177   : > { %v1817_v12 = vpop.f32.mrf.mxu1 }
 0x178   : > { %v1827_v35 = vpop.f32.mrf.mxu0  ;;  %v1051_v14 = vadd.f32 %v1817_v12, %v821_v8  ;;  %v1165_v21 = vadd.f32 %v1136_v2, %v1046_v17 }
 0x179   : > { %v1030_v41 = vpop.f32.mrf.mxu1 }
 0x17a   : > { %v1149_v43 = vpop.f32.mrf.mxu0  ;;  %v1049_v20 = vadd.f32 %v1030_v41, %v819_v60  ;;  %v1170_v26 = vadd.f32 %v1827_v35, %v1051_v14 }
 0x17b   : > { %v1818_v46 = vpop.f32.mrf.mxu1 }
 0x17c   : > { %v1828_v38 = vpop.f32.mrf.mxu0  ;;  %v1052_v27 = vadd.f32 %v1818_v46, %v822_v0  ;;  %v1168_v31 = vadd.f32 %v1149_v43, %v1049_v20 }
 0x17d   : > { %v1033_v13 = vpop.f32.mrf.mxu1 }
 0x17e   : > { %v1152_v40 = vpop.f32.mrf.mxu0  ;;  %v1050_v2 = vadd.f32 %v1033_v13, %v820_v24  ;;  %v1171_v35 = vadd.f32 %v1828_v38, %v1052_v27 }
 0x17f   : > { %v1833_v59 = vpop.f32.mrf.mxu1 }
 0x180   : > { %v1264_v42 = vadd.f32 %v1833_v59, %v1166_v55  ;;  %v1843_v52 = vpop.f32.mrf.mxu0  ;;  %v1169_v43 = vadd.f32 %v1152_v40, %v1050_v2 }
 0x181   : > { %v1231_v5 = vpop.f32.mrf.mxu1 }
 0x182   : > { %v1494_v19 = vadd.f32 %v1843_v52, %v1264_v42  ;;  %v1262_v53 = vadd.f32 %v1231_v5, %v1164_v50  ;;  %v1461_v61 = vpop.f32.mrf.mxu0 }
 0x183   : > { %v1834_v11 = vpop.f32.mrf.mxu1 }
 0x184   : > { %v1509_v63 = vadd.f32 %v2210_v6, %v1494_v19  ;;  %v1492_v16 = vadd.f32 %v1461_v61, %v1262_v53  ;;  %v1265_v22 = vadd.f32 %v1834_v11, %v1167_v62  ;;  %v1844_v23 = vpop.f32.mrf.mxu0 }
 0x185   : > { %v1234_v15 = vpop.f32.mrf.mxu1 }
 0x186   : > { %v1517_v1 = vmax.f32 %v1509_v63, 0.0  ;;  %v1507_v28 = vadd.f32 %v2210_v6, %v1492_v16  ;;  %v1495_v7 = vadd.f32 %v1844_v23, %v1265_v22  ;;  %v1263_v29 = vadd.f32 %v1234_v15, %v1165_v21  ;;  %v1464_v30 = vpop.f32.mrf.mxu0 }
 0x187   : > { %v1837_v32 = vpop.f32.mrf.mxu1 }
 0x188   : > { %1525 = vst.msk [vmem:[%s2219_s13 + $0x10] sm:$0xff] %vm211_vm1, %v1517_v1  ;;  %v1515_v18 = vmax.f32 %v1507_v28, 0.0  ;;  %v1510_v12 = vadd.f32 %v2210_v6, %v1495_v7  ;;  %v1493_v33 = vadd.f32 %v1464_v30, %v1263_v29  ;;  %v1268_v34 = vadd.f32 %v1837_v32, %v1170_v26  ;;  %v1847_v9 = vpop.f32.mrf.mxu0 }
 0x189   : > { %v1247_v37 = vpop.f32.mrf.mxu1 }
 0x18a   : > { %1523 = vst.msk [vmem:[%s2219_s13] sm:$0xff] %vm211_vm1, %v1515_v18  ;;  %v1518_v39 = vmax.f32 %v1510_v12, 0.0  ;;  %v1508_v41 = vadd.f32 %v2210_v6, %v1493_v33  ;;  %v1498_v44 = vadd.f32 %v1847_v9, %v1268_v34  ;;  %v1266_v25 = vadd.f32 %v1247_v37, %v1168_v31  ;;  %v1477_v4 = vpop.f32.mrf.mxu0 }
 0x18b   : > { %v1838_v56 = vpop.f32.mrf.mxu1 }
 0x18c   : > { %1526 = vst.msk [vmem:[%s2219_s13 + $0x18] sm:$0xff] %vm211_vm1, %v1518_v39  ;;  %v1516_v36 = vmax.f32 %v1508_v41, 0.0  ;;  %v1513_v45 = vadd.f32 %v2210_v6, %v1498_v44  ;;  %v1496_v46 = vadd.f32 %v1477_v4, %v1266_v25  ;;  %v1269_v47 = vadd.f32 %v1838_v56, %v1171_v35  ;;  %v1848_v48 = vpop.f32.mrf.mxu0 }
 0x18d   : > { %v1250_v38 = vpop.f32.mrf.mxu1 }
 0x18e   : > { %1524 = vst.msk [vmem:[%s2219_s13 + $0x8] sm:$0xff] %vm211_vm1, %v1516_v36  ;;  %v1521_v49 = vmax.f32 %v1513_v45, 0.0  ;;  %v1511_v3 = vadd.f32 %v2210_v6, %v1496_v46  ;;  %v1499_v13 = vadd.f32 %v1848_v48, %v1269_v47  ;;  %v1267_v54 = vadd.f32 %v1250_v38, %v1169_v43  ;;  %v1480_v55 = vpop.f32.mrf.mxu0 }
 0x190   : > { %1529 = vst.msk [vmem:[%s2219_s13 + $0x30] sm:$0xff] %vm211_vm1, %v1521_v49  ;;  %v1519_v10 = vmax.f32 %v1511_v3, 0.0  ;;  %v1514_v40 = vadd.f32 %v2210_v6, %v1499_v13  ;;  %v1497_v51 = vadd.f32 %v1480_v55, %v1267_v54 }
 0x192   : > { %1527 = vst.msk [vmem:[%s2219_s13 + $0x20] sm:$0xff] %vm211_vm1, %v1519_v10  ;;  %v1522_v8 = vmax.f32 %v1514_v40, 0.0  ;;  %v1512_v57 = vadd.f32 %v2210_v6, %v1497_v51 }
 0x194   : > { %1530 = vst.msk [vmem:[%s2219_s13 + $0x38] sm:$0xff] %vm211_vm1, %v1522_v8  ;;  %v1520_v59 = vmax.f32 %v1512_v57, 0.0 }
 0x196   : > { %1528 = vst.msk [vmem:[%s2219_s13 + $0x28] sm:$0xff] %vm211_vm1, %v1520_v59 }
 0x197 PF: > { %s13_s12 = sadd.s32 1, %s1889_s12  }
 0x198   : > { %p10_p4 = scmp.ge.s32.totalorder %s13_s12, 4  }
 0x19a   :  { %12 = sbr.rel (!%p10_p4) target bundleno = 1 (0x1), region = 72 }

// kernel: _lambda_.2
= control target key start
LH: loop header
LB: loop body
LE: loop exit
PB: predicated region body
PF: predicated region fallthrough
CT: control target
= control target key end

     0   :  { %s6700_s12 = smov 0   ;;  %s9712_s0 = inlined_call_operand.vmem [shape: bf16[2,18,1,18,4], index: 0, kind: input, shape index: {}]   ;;  %s9713_s1 = inlined_call_operand.vmem [shape: bf16[9,4,128], index: 1, kind: input, shape index: {}]   ;;  %s9714_s2 = inlined_call_operand.vmem [shape: f32[1,4], index: 2, kind: input, shape index: {}]   ;;  %s9715_s3 = inlined_call_operand.vmem [shape: bf16[2,18,18,4], index: 3, kind: output, shape index: {}]  }
   0x1 LB: > { %s5450_s13 = sadd.s32 4294967295, %s6677_s12   ;;  %p5454_p0 = scmp.ge.s32.totalorder %s6677_s12, 1  ;;  %s6677_s12 = sphi %s6700_s12, %s13_s12  }
   0x2   : > { %p137_p1 = scmp.lt.s32.totalorder %s6677_s12, 3 }
   0x4   : > { %p138_p2 = pnand %p5454_p0, %p137_p1 }
   0x6   : > { %141 = sbr.rel (%p138_p2) target bundleno = 588 (0x24c), region = 32 }
   0xb   : > { %v5457_v0 = vld [vmem:[%s9713_s1 + $0x2] sm:$0x3]  ;;  %vm707_vm0 = vcmask 1041408   ;;  %p161_p3 = scmp.lt.s32.totalorder %s5450_s13, 1  ;;  %v204_v2 = vld [vmem:[%s9713_s1] sm:$0x3] }
   0xc   : > { %6602 = vmatprep.subr.msk.bf16.mxu1 %vm707_vm0, %v5457_v0  ;;  %6601 = vmatprep.subr.msk.bf16.mxu0 %vm707_vm0, %v5457_v0  ;;  %v709_v1 = vsel %vm707_vm0, %v5457_v0, 0  ;;  %v5538_v3 = vld [vmem:[%s9713_s1 + $0x4] sm:$0x3]  ;;  %vm221_vm1 = vsmask.f32 3328  ;;  %v6733_v4 = vsel %vm707_vm0, %v204_v2, 0 }
   0xd   : > { %6600 = vmatpush3.bf16.msra.mxu1 %v709_v1  ;;  %6294 = vmatpush3.bf16.msra.mxu0 %v709_v1  ;;  %s9913_s13 = smov (!%p161_p3, %s5450_s13), 1  ;;  %vm222_vm2 = vsmask.f32 7440  ;;  %vm658_vm3 = vcmask 31744   ;;  %v6759_v16 = vsel %vm707_vm0, %v5538_v3, 0  ;;  %vm1212_vm5 = vcmask 1042432  }
   0xe   : > { %6603 = vmatprep.subr.msk.bf16.mxu1 %vm707_vm0, %v204_v2  ;;  %6604 = vmatprep.subr.msk.bf16.mxu0 %vm707_vm0, %v5538_v3  ;;  %s6611_s20 = smul.u32 216, %s9913_s13  ;;  %vm6774_vm4 = vmor %vm221_vm1, %vm222_vm2  ;;  %vm1213_vm6 = vcmask 1046532   ;;  %vm4818_vm8 = vcmask 27648   ;;  %vm4821_vm9 = vcmask 24576   ;;  %vm5279_vm10 = vsmask.f32 7938 }
   0xf   : > { %vm7060_vm7 = vmor %vm1212_vm5, %vm1213_vm6  ;;  %vm4954_vm11 = vsmask.f32 256  ;;  %vm4955_vm12 = vsmask.f32 4368 }
  0x10   : > { %s6730_s23 = scalar_lea.vmem %s9712_s0, %s6611_s20  ;;  %s8970_s11 = scalar_lea.vmem %s9715_s3, %s6611_s20  ;;  %vm9358_vm13 = vmand %vm4818_vm8, %vm5279_vm10 }
  0x11   : > { %v6736_v5 = vld [vmem:[%s6730_s23] sm:$0xf]  ;;  %v6739_v6 = vld [vmem:[%s6730_s23 + $0x4] sm:$0xf]  ;;  %v6742_v7 = vld [vmem:[%s6730_s23 + $0x8] sm:$0x1] }
  0x12   : > { %v225_v8 = vshrl.u32 %v6736_v5, 16  ;;  %v228_v9 = vshll.u32 %v6736_v5, 16  ;;  %v234_v10 = vshll.u32 %v6739_v6, 16  ;;  %v238_v11 = vshrl.u32 %v6739_v6, 16  ;;  %v6749_v12 = vld [vmem:[%s6730_s23 + $0x60] sm:$0xf]  ;;  %vm9373_vm14 = vmor %vm4954_vm11, %vm4955_vm12 }
  0x13   : > { %v244_v13 = vshll.u32 %v6742_v7, 16  ;;  %v6753_v14 = vld [vmem:[%s6730_s23 + $0x64] sm:$0xf]  ;;  %v6756_v15 = vld [vmem:[%s6730_s23 + $0x68] sm:$0x1]  ;;  %v417_v22 = vshrl.u32 %v6749_v12, 16  ;;  %vm9382_vm15 = vmand %vm4821_vm9, %vm4954_vm11 }
  0x14   : > { %v227_v17 = vrot.slane %v225_v8, 4  ;;  %v230_v18 = vrot.slane %v228_v9, 5  ;;  %v236_v19 = vrot.slane %v234_v10, 5  ;;  %v240_v20 = vrot.slane %v238_v11, 4  ;;  %v6767_v29 = vld [vmem:[%s6730_s23 + $0xc] sm:$0xf] }
  0x15   : > { %v246_v21 = vrot.slane %v244_v13, 5  ;;  %v420_v23 = vshll.u32 %v6749_v12, 16  ;;  %v426_v24 = vshll.u32 %v6753_v14, 16  ;;  %v430_v27 = vshrl.u32 %v6753_v14, 16  ;;  %v6770_v30 = vld [vmem:[%s6730_s23 + $0x10] sm:$0xf] }
  0x16   : > { %v231_v25 = vor.u32 %v230_v18, %v227_v17  ;;  %v241_v26 = vor.u32 %v240_v20, %v236_v19  ;;  %v436_v28 = vshll.u32 %v6756_v15, 16  ;;  %v419_v33 = vrot.slane %v417_v22, 4  ;;  %v6780_v41 = vld [vmem:[%s6730_s23 + $0x14] sm:$0x1]  ;;  %v6791_v53 = vld [vmem:[%s6730_s23 + $0x6c] sm:$0xf] }
  0x17   : > { %v422_v34 = vrot.slane %v420_v23, 5  ;;  %v428_v35 = vrot.slane %v426_v24, 5  ;;  %v432_v38 = vrot.slane %v430_v27, 4  ;;  %v249_v42 = vshrl.u32 %v6767_v29, 16  ;;  %v6795_v58 = vld [vmem:[%s6730_s23 + $0x70] sm:$0xf] }
  0x18   : > { %v232_v36 = vrot.slane %v231_v25, 4  ;;  %v242_v37 = vrot.slane %v241_v26, 4  ;;  %v438_v39 = vrot.slane %v436_v28, 5  ;;  %v252_v43 = vshll.u32 %v6767_v29, 16  ;;  %v6803_v63 = vld [vmem:[%s6730_s23 + $0x74] sm:$0x1] }
  0x19   : > { %v423_v40 = vor.u32 %v422_v34, %v419_v33  ;;  %v258_v44 = vshll.u32 %v6770_v30, 16  ;;  %v433_v47 = vor.u32 %v432_v38, %v428_v35  ;;  %v262_v48 = vshrl.u32 %v6770_v30, 16  ;;  %v6809_v8 = vld [vmem:[%s6730_s23 + $0x18] sm:$0xf]  ;;  %v6822_v25 = vld [vmem:[%s6730_s23 + $0x20] sm:$0x1] }
  0x1a   : > { %v237_v45 = vsel %vm6774_vm4, %v232_v36, %v236_v19  ;;  %v247_v46 = vsel %vm6774_vm4, %v242_v37, %v246_v21  ;;  %v251_v51 = vrot.slane %v249_v42, 4  ;;  %v254_v52 = vrot.slane %v252_v43, 5  ;;  %v6816_v21 = vld [vmem:[%s6730_s23 + $0x1c] sm:$0xf] }
  0x1b   : > { %v5458_v49 = vcombine.low %v237_v45, %v247_v46  ;;  %v424_v50 = vrot.slane %v423_v40, 4  ;;  %v434_v54 = vrot.slane %v433_v47, 4  ;;  %v260_v55 = vrot.slane %v258_v44, 5  ;;  %v6835_v40 = vld [vmem:[%s9713_s1 + $0x8] sm:$0x3] }
  0x1c   : > { %v264_v56 = vrot.slane %v262_v48, 4  ;;  %v268_v57 = vshll.u32 %v6780_v41, 16  ;;  %v255_v60 = vor.u32 %v254_v52, %v251_v51  ;;  %v441_v3 = vshrl.u32 %v6791_v53, 16  ;;  %v6840_v46 = vld [vmem:[%s6730_s23 + $0x7c] sm:$0xf] }
  0x1d   : > { %6295 = vmatprep.mubr.msk.bf16.mxu0 %vm658_vm3, %v5458_v49  ;;  %v429_v59 = vsel %vm6774_vm4, %v424_v50, %v428_v35  ;;  %v439_v0 = vsel %vm6774_vm4, %v434_v54, %v438_v39  ;;  %v444_v11 = vshll.u32 %v6791_v53, 16  ;;  %v450_v13 = vshll.u32 %v6795_v58, 16  ;;  %v6829_v35 = vld [vmem:[%s6730_s23 + $0x78] sm:$0xf] }
  0x1e   : > { %v265_v1 = vor.u32 %v264_v56, %v260_v55  ;;  %v270_v2 = vrot.slane %v268_v57, 5  ;;  %v5466_v9 = vcombine.low %v429_v59, %v439_v0  ;;  %v256_v10 = vrot.slane %v255_v60, 4  ;;  %v6847_v56 = vld [vmem:[%s6730_s23 + $0x80] sm:$0x1] }
  0x1f   : > { %v443_v18 = vrot.slane %v441_v3, 4  ;;  %v454_v19 = vshrl.u32 %v6795_v58, 16  ;;  %v460_v20 = vshll.u32 %v6803_v63, 16  ;;  %v446_v23 = vrot.slane %v444_v11, 5  ;;  %9751 = vst [vmem:[#allocation2_spill] sm:$0xff] %v6847_v56 }
  0x20   : > { %v266_v17 = vrot.slane %v265_v1, 4  ;;  %6311 = vmatprep.mubr.msk.bf16.mxu1 %vm658_vm3, %v5466_v9  ;;  %v261_v22 = vsel %vm6774_vm4, %v256_v10, %v260_v55  ;;  %v452_v24 = vrot.slane %v450_v13, 5  ;;  %v273_v26 = vshrl.u32 %v6809_v8, 16  ;;  %v6853_v1 = vld [vmem:[%s6730_s23 + $0x24] sm:$0xf] }
  0x21   : > { %v456_v28 = vrot.slane %v454_v19, 4  ;;  %v462_v33 = vrot.slane %v460_v20, 5  ;;  %v276_v34 = vshll.u32 %v6809_v8, 16  ;;  %v447_v37 = vor.u32 %v446_v23, %v443_v18  ;;  %v6861_v10 = vld [vmem:[%s6730_s23 + $0x28] sm:$0xf] }
  0x22   : > { %v271_v27 = vsel %vm6774_vm4, %v266_v17, %v270_v2  ;;  %v275_v38 = vrot.slane %v273_v26, 4  ;;  %v282_v39 = vshll.u32 %v6816_v21, 16  ;;  %v286_v44 = vshrl.u32 %v6816_v21, 16  ;;  %v6867_v19 = vld [vmem:[%s9713_s1 + $0x6] sm:$0x3] }
  0x23   : > { %v5459_v36 = vcombine.low %v261_v22, %v271_v27  ;;  %v457_v42 = vor.u32 %v456_v28, %v452_v24  ;;  %v278_v43 = vrot.slane %v276_v34, 5  ;;  %v292_v45 = vshll.u32 %v6822_v25, 16 }
  0x24   : > { %v448_v47 = vrot.slane %v447_v37, 4  ;;  %v284_v48 = vrot.slane %v282_v39, 5  ;;  %v465_v49 = vshrl.u32 %v6829_v35, 16  ;;  %v468_v50 = vshll.u32 %v6829_v35, 16 }
  0x25   : > { %6296 = vmatmul.mubr.msk.bf16.vlgmr.msra.gmra.mxu0 %vm658_vm3, %v5459_v36  ;;  %v458_v51 = vrot.slane %v457_v42, 4  ;;  %v279_v52 = vor.u32 %v278_v43, %v275_v38  ;;  %v288_v54 = vrot.slane %v286_v44, 4  ;;  %v294_v55 = vrot.slane %v292_v45, 5  ;;  %v6879_v36 = vld [vmem:[%s6730_s23 + $0x84] sm:$0xf] }
  0x26   : > { %6362 = vmatpush3.bf16.msra.mxu0 %v6759_v16  ;;  %v453_v57 = vsel %vm6774_vm4, %v448_v47, %v452_v24  ;;  %v467_v59 = vrot.slane %v465_v49, 4  ;;  %v470_v60 = vrot.slane %v468_v50, 5  ;;  %v474_v0 = vshll.u32 %v6840_v46, 16  ;;  %v6872_v24 = vld [vmem:[%s6730_s23 + $0x2c] sm:$0x1] }
  0x27   : > { %6606 = vmatprep.subr.msk.bf16.mxu0 %vm707_vm0, %v6835_v40  ;;  %v463_v16 = vsel %vm6774_vm4, %v458_v51, %v462_v33  ;;  %v280_v2 = vrot.slane %v279_v52, 4  ;;  %v289_v3 = vor.u32 %v288_v54, %v284_v48  ;;  %v478_v9 = vshrl.u32 %v6840_v46, 16  ;;  %v6886_v43 = vld [vmem:[%s6730_s23 + $0x88] sm:$0xf]  ;;  %v6894_v51 = vld [vmem:[%s6730_s23 + $0x8c] sm:$0x1] }
  0x28   : > { %v5467_v11 = vcombine.low %v453_v57, %v463_v16  ;;  %v471_v13 = vor.u32 %v470_v60, %v467_v59  ;;  %v476_v17 = vrot.slane %v474_v0, 5  ;;  %v484_v18 = vshll.u32 %v6847_v56, 16  ;;  %9752 = vst [vmem:[#allocation3_spill] sm:$0xff] %v6894_v51  ;;  %v6902_v60 = vld [vmem:[%s6730_s23 + $0x30] sm:$0xf] }
  0x29   : > { %v285_v20 = vsel %vm6774_vm4, %v280_v2, %v284_v48  ;;  %v290_v22 = vrot.slane %v289_v3, 4  ;;  %v480_v23 = vrot.slane %v478_v9, 4  ;;  %v297_v26 = vshrl.u32 %v6853_v1, 16  ;;  %v6907_v9 = vld [vmem:[%s6730_s23 + $0x34] sm:$0xf] }
  0x2a   : > { %6312 = vmatmul.mubr.msk.bf16.vlgmr.msra.gmra.mxu1 %vm658_vm3, %v5467_v11  ;;  %v472_v27 = vrot.slane %v471_v13, 4  ;;  %v486_v28 = vrot.slane %v484_v18, 5  ;;  %v300_v33 = vshll.u32 %v6853_v1, 16  ;;  %v306_v34 = vshll.u32 %v6861_v10, 16 }
  0x2b   : > { %6328 = vmatpush3.bf16.msra.mxu1 %v6733_v4  ;;  %v295_v37 = vsel %vm6774_vm4, %v290_v22, %v294_v55  ;;  %v481_v38 = vor.u32 %v480_v23, %v476_v17  ;;  %v299_v39 = vrot.slane %v297_v26, 4  ;;  %v310_v42 = vshrl.u32 %v6861_v10, 16 }
  0x2c   : > { %v5460_v44 = vcombine.low %v285_v20, %v295_v37  ;;  %v477_v45 = vsel %vm6774_vm4, %v472_v27, %v476_v17  ;;  %v302_v47 = vrot.slane %v300_v33, 5  ;;  %v308_v48 = vrot.slane %v306_v34, 5  ;;  %6605 = vmatprep.subr.msk.bf16.mxu1 %vm707_vm0, %v6867_v19  ;;  %v6915_v33 = vld [vmem:[%s6730_s23 + $0x38] sm:$0x1] }
  0x2d   : > { %v482_v4 = vrot.slane %v481_v38, 4  ;;  %v312_v49 = vrot.slane %v310_v42, 4  ;;  %v316_v50 = vshll.u32 %v6872_v24, 16  ;;  %v489_v52 = vshrl.u32 %v6879_v36, 16  ;;  %v6920_v38 = vld [vmem:[%s6730_s23 + $0x90] sm:$0xf] }
  0x2e   : > { %6299 = vmatprep.mubr.msk.bf16.mxu0 %vm658_vm3, %v5460_v44  ;;  %v303_v54 = vor.u32 %v302_v47, %v299_v39  ;;  %v492_v55 = vshll.u32 %v6879_v36, 16  ;;  %v498_v57 = vshll.u32 %v6886_v43, 16  ;;  %v502_v59 = vshrl.u32 %v6886_v43, 16  ;;  %9753 = vst [vmem:[#allocation4_spill] sm:$0xff] %v6920_v38  ;;  %v6925_v47 = vld [vmem:[%s6730_s23 + $0x94] sm:$0xf] }
  0x2f   : > { %v487_v0 = vsel %vm6774_vm4, %v482_v4, %v486_v28  ;;  %v313_v16 = vor.u32 %v312_v49, %v308_v48  ;;  %v318_v2 = vrot.slane %v316_v50, 5  ;;  %v491_v3 = vrot.slane %v489_v52, 4  ;;  %9754 = vst [vmem:[#allocation5_spill] sm:$0xff] %v6925_v47 }
  0x30   : > { %v5468_v11 = vcombine.low %v477_v45, %v487_v0  ;;  %v304_v13 = vrot.slane %v303_v54, 4  ;;  %v494_v17 = vrot.slane %v492_v55, 5  ;;  %v500_v18 = vrot.slane %v498_v57, 5 }
  0x31   : > { %v314_v20 = vrot.slane %v313_v16, 4  ;;  %v504_v22 = vrot.slane %v502_v59, 4  ;;  %v508_v23 = vshll.u32 %v6894_v51, 16  ;;  %v321_v26 = vshrl.u32 %v6902_v60, 16  ;;  %v6934_v16 = vld [vmem:[%s6730_s23 + $0x98] sm:$0x1] }
  0x32   : > { %6315 = vmatprep.mubr.msk.bf16.mxu1 %vm658_vm3, %v5468_v11  ;;  %v309_v27 = vsel %vm6774_vm4, %v304_v13, %v308_v48  ;;  %v495_v28 = vor.u32 %v494_v17, %v491_v3  ;;  %v324_v34 = vshll.u32 %v6902_v60, 16  ;;  %v330_v37 = vshll.u32 %v6907_v9, 16  ;;  %9755 = vst [vmem:[#allocation6_spill] sm:$0xff] %v6934_v16  ;;  %v6939_v11 = vld [vmem:[%s6730_s23 + $0x3c] sm:$0xf] }
  0x33   : > { %v319_v39 = vsel %vm6774_vm4, %v314_v20, %v318_v2  ;;  %v505_v42 = vor.u32 %v504_v22, %v500_v18  ;;  %v510_v44 = vrot.slane %v508_v23, 5  ;;  %v323_v45 = vrot.slane %v321_v26, 4  ;;  %v6944_v23 = vld [vmem:[%s6730_s23 + $0x40] sm:$0xf]  ;;  %v1165_v51 = vld [vmem:[%s6730_s23 + $0xc] sm:$0xe] }
  0x34   : > { %v5461_v48 = vcombine.low %v309_v27, %v319_v39  ;;  %v496_v4 = vrot.slane %v495_v28, 4  ;;  %v326_v49 = vrot.slane %v324_v34, 5  ;;  %v332_v50 = vrot.slane %v330_v37, 5 }
  0x35   : > { %v506_v52 = vrot.slane %v505_v42, 4  ;;  %v334_v54 = vshrl.u32 %v6907_v9, 16  ;;  %v340_v55 = vshll.u32 %v6915_v33, 16  ;;  %v513_v57 = vshrl.u32 %v6920_v38, 16 }
  0x36   : > { %6300 = vmatmul.mubr.msk.bf16.gmra.mxu0 %vm658_vm3, %v5461_v48  ;;  %v501_v59 = vsel %vm6774_vm4, %v496_v4, %v500_v18  ;;  %v327_v0 = vor.u32 %v326_v49, %v323_v45  ;;  %v516_v2 = vshll.u32 %v6920_v38, 16  ;;  %v522_v3 = vshll.u32 %v6925_v47, 16  ;;  %v6953_v48 = vld [vmem:[%s6730_s23 + $0x44] sm:$0x1] }
  0x37   : > { %v511_v13 = vsel %vm6774_vm4, %v506_v52, %v510_v44  ;;  %v336_v17 = vrot.slane %v334_v54, 4  ;;  %v342_v20 = vrot.slane %v340_v55, 5  ;;  %v515_v22 = vrot.slane %v513_v57, 4  ;;  %v6958_v52 = vld [vmem:[%s6730_s23 + $0x9c] sm:$0xf] }
  0x38   : > { %v5469_v18 = vcombine.low %v501_v59, %v511_v13  ;;  %v328_v26 = vrot.slane %v327_v0, 4  ;;  %v518_v27 = vrot.slane %v516_v2, 5  ;;  %v524_v28 = vrot.slane %v522_v3, 5  ;;  %9756 = vst [vmem:[#allocation7_spill] sm:$0xff] %v6958_v52  ;;  %v6962_v13 = vld [vmem:[%s6730_s23 + $0xa0] sm:$0xf] }
  0x39   : > { %v337_v34 = vor.u32 %v336_v17, %v332_v50  ;;  %v526_v37 = vshrl.u32 %v6925_v47, 16  ;;  %v532_v39 = vshll.u32 %v6934_v16, 16  ;;  %v345_v42 = vshrl.u32 %v6939_v11, 16  ;;  %9757 = vst [vmem:[#allocation8_spill] sm:$0xff] %v6962_v13 }
  0x3a   : > { %6316 = vmatmul.mubr.msk.bf16.gmra.mxu1 %vm658_vm3, %v5469_v18  ;;  %v333_v44 = vsel %vm6774_vm4, %v328_v26, %v332_v50  ;;  %v519_v45 = vor.u32 %v518_v27, %v515_v22  ;;  %v348_v4 = vshll.u32 %v6939_v11, 16  ;;  %v354_v49 = vshll.u32 %v6944_v23, 16  ;;  %v6968_v26 = vld [vmem:[%s6730_s23 + $0xa4] sm:$0x1] }
  0x3b   : > { %v338_v54 = vrot.slane %v337_v34, 4  ;;  %v528_v55 = vrot.slane %v526_v37, 4  ;;  %v534_v57 = vrot.slane %v532_v39, 5  ;;  %v347_v59 = vrot.slane %v345_v42, 4  ;;  %9758 = vst [vmem:[#allocation9_spill] sm:$0xff] %v6968_v26 }
  0x3c   : > { %v520_v0 = vrot.slane %v519_v45, 4  ;;  %v350_v2 = vrot.slane %v348_v4, 5  ;;  %v356_v3 = vrot.slane %v354_v49, 5  ;;  %v358_v50 = vshrl.u32 %v6944_v23, 16  ;;  %v6972_v34 = vld [vmem:[%s6730_s23 + $0x48] sm:$0xf] }
  0x3d   : > { %v343_v17 = vsel %vm6774_vm4, %v338_v54, %v342_v20  ;;  %v529_v22 = vor.u32 %v528_v55, %v524_v28  ;;  %v364_v18 = vshll.u32 %v6953_v48, 16  ;;  %v537_v27 = vshrl.u32 %v6958_v52, 16 }
  0x3e   : > { %v5462_v37 = vcombine.low %v333_v44, %v343_v17  ;;  %v525_v39 = vsel %vm6774_vm4, %v520_v0, %v524_v28  ;;  %v351_v42 = vor.u32 %v350_v2, %v347_v59  ;;  %v360_v45 = vrot.slane %v358_v50, 4  ;;  %v6981_v17 = vld [vmem:[%s6730_s23 + $0x4c] sm:$0xf]  ;;  %v6987_v2 = vld [vmem:[%s6730_s23 + $0x50] sm:$0x1] }
  0x3f   : > { %v530_v4 = vrot.slane %v529_v22, 4  ;;  %v366_v49 = vrot.slane %v364_v18, 5  ;;  %v539_v20 = vrot.slane %v537_v27, 4  ;;  %v540_v54 = vshll.u32 %v6958_v52, 16 }
  0x40   : > { %6303 = vmatprep.mubr.msk.bf16.mxu0 %vm658_vm3, %v5462_v37  ;;  %v352_v55 = vrot.slane %v351_v42, 4  ;;  %v361_v62 = vor.u32 %v360_v45, %v356_v3  ;;  %v546_v32 = vshll.u32 %v6962_v13, 16  ;;  %v550_v44 = vshrl.u32 %v6962_v13, 16  ;;  %v6993_v42 = vld [vmem:[%s6730_s23 + $0xa8] sm:$0xf] }
  0x41   : > { %v535_v28 = vsel %vm6774_vm4, %v530_v4, %v534_v57  ;;  %v542_v59 = vrot.slane %v540_v54, 5  ;;  %v556_v0 = vshll.u32 %v6968_v26, 16  ;;  %v369_v50 = vshrl.u32 %v6972_v34, 16  ;;  %9759 = vst [vmem:[#allocation10_spill] sm:$0xff] %v6993_v42 }
  0x42   : > { %v5470_v22 = vcombine.low %v525_v39, %v535_v28  ;;  %v357_v18 = vsel %vm6774_vm4, %v352_v55, %v356_v3  ;;  %v362_v27 = vrot.slane %v361_v62, 4  ;;  %v548_v37 = vrot.slane %v546_v32, 5 }
  0x43   : > { %v543_v45 = vor.u32 %v542_v59, %v539_v20  ;;  %v552_v61 = vrot.slane %v550_v44, 4  ;;  %v558_v57 = vrot.slane %v556_v0, 5  ;;  %v371_v4 = vrot.slane %v369_v50, 4  ;;  %v7003_v44 = vld [vmem:[%s6730_s23 + $0xac] sm:$0xf] }
  0x44   : > { %6319 = vmatprep.mubr.msk.bf16.mxu1 %vm658_vm3, %v5470_v22  ;;  %v367_v54 = vsel %vm6774_vm4, %v362_v27, %v366_v49  ;;  %v372_v39 = vshll.u32 %v6972_v34, 16  ;;  %v378_v28 = vshll.u32 %v6981_v17, 16  ;;  %v382_v62 = vshrl.u32 %v6981_v17, 16  ;;  %9760 = vst [vmem:[#allocation11_spill] sm:$0xff] %v7003_v44  ;;  %v7006_v22 = vld [vmem:[%s6730_s23 + $0xb0] sm:$0x1] }
  0x45   : > { %v5463_v3 = vcombine.low %v357_v18, %v367_v54  ;;  %v544_v32 = vrot.slane %v543_v45, 4  ;;  %v553_v55 = vor.u32 %v552_v61, %v548_v37  ;;  %v388_v20 = vshll.u32 %v6987_v2, 16  ;;  %9761 = vst [vmem:[#allocation12_spill] sm:$0xff] %v7006_v22 }
  0x46   : > { %v374_v59 = vrot.slane %v372_v39, 5  ;;  %v380_v0 = vrot.slane %v378_v28, 5  ;;  %v384_v50 = vrot.slane %v382_v62, 4  ;;  %v561_v49 = vshrl.u32 %v6993_v42, 16  ;;  %v7015_v62 = vld [vmem:[%s6730_s23 + $0x54] sm:$0xf] }
  0x47   : > { %6304 = vmatmul.mubr.msk.bf16.gmra.mxu0 %vm658_vm3, %v5463_v3  ;;  %v549_v18 = vsel %vm6774_vm4, %v544_v32, %v548_v37  ;;  %v554_v27 = vrot.slane %v553_v55, 4  ;;  %v390_v61 = vrot.slane %v388_v20, 5  ;;  %v564_v45 = vshll.u32 %v6993_v42, 16  ;;  %v7022_v55 = vld [vmem:[%s6730_s23 + $0x58] sm:$0xf] }
  0x48   : > { %v375_v54 = vor.u32 %v374_v59, %v371_v4  ;;  %v385_v56 = vor.u32 %v384_v50, %v380_v0  ;;  %v563_v39 = vrot.slane %v561_v49, 4  ;;  %v570_v28 = vshll.u32 %v7003_v44, 16  ;;  %v7025_v49 = vld [vmem:[%s6730_s23 + $0x5c] sm:$0x1] }
  0x49   : > { %v559_v3 = vsel %vm6774_vm4, %v554_v27, %v558_v57  ;;  %v566_v26 = vrot.slane %v564_v45, 5  ;;  %v574_v37 = vshrl.u32 %v7003_v44, 16  ;;  %v580_v32 = vshll.u32 %v7006_v22, 16  ;;  %v1164_v22 = vld [vmem:[%s6730_s23] sm:$0xe] }
  0x4a   : > { %v5471_v4 = vcombine.low %v549_v18, %v559_v3  ;;  %v376_v20 = vrot.slane %v375_v54, 4  ;;  %v386_v59 = vrot.slane %v385_v56, 4  ;;  %v572_v50 = vrot.slane %v570_v28, 5  ;;  %v7036_v54 = vld [vmem:[%s6730_s23 + $0xb4] sm:$0xf] }
  0x4b   : > { %v567_v42 = vor.u32 %v566_v26, %v563_v39  ;;  %v576_v52 = vrot.slane %v574_v37, 4  ;;  %v582_v13 = vrot.slane %v580_v32, 5  ;;  %v393_v57 = vshrl.u32 %v7015_v62, 16  ;;  %9762 = vst [vmem:[#allocation13_spill] sm:$0xff] %v7036_v54  ;;  %v7039_v37 = vld [vmem:[%s6730_s23 + $0xb8] sm:$0xf] }
  0x4c   : > { %6320 = vmatmul.mubr.msk.bf16.gmra.mxu1 %vm658_vm3, %v5471_v4  ;;  %v381_v27 = vsel %vm6774_vm4, %v376_v20, %v380_v0  ;;  %v391_v18 = vsel %vm6774_vm4, %v386_v59, %v390_v61  ;;  %v396_v56 = vshll.u32 %v7015_v62, 16  ;;  %v402_v45 = vshll.u32 %v7022_v55, 16  ;;  %v7044_v61 = vld [vmem:[%s6730_s23 + $0xbc] sm:$0x1] }
  0x4d   : > { %v5464_v26 = vcombine.low %v381_v27, %v391_v18  ;;  %v568_v39 = vrot.slane %v567_v42, 4  ;;  %v577_v28 = vor.u32 %v576_v52, %v572_v50  ;;  %v395_v3 = vrot.slane %v393_v57, 4 }
  0x4e   : > { %v398_v32 = vrot.slane %v396_v56, 5  ;;  %v404_v4 = vrot.slane %v402_v45, 5  ;;  %v406_v0 = vshrl.u32 %v7022_v55, 16  ;;  %v412_v20 = vshll.u32 %v7025_v49, 16 }
  0x4f   : > { %6307 = vmatprep.mubr.msk.bf16.mxu0 %vm658_vm3, %v5464_v26  ;;  %v573_v59 = vsel %vm6774_vm4, %v568_v39, %v572_v50  ;;  %v578_v27 = vrot.slane %v577_v28, 4  ;;  %v585_v52 = vshrl.u32 %v7036_v54, 16  ;;  %v588_v42 = vshll.u32 %v7036_v54, 16 }
  0x50   : > { %v399_v57 = vor.u32 %v398_v32, %v395_v3  ;;  %v408_v18 = vrot.slane %v406_v0, 4  ;;  %v414_v56 = vrot.slane %v412_v20, 5  ;;  %v594_v45 = vshll.u32 %v7039_v37, 16 }
  0x51   : > { %v583_v44 = vsel %vm6774_vm4, %v578_v27, %v582_v13  ;;  %v587_v16 = vrot.slane %v585_v52, 4  ;;  %v590_v26 = vrot.slane %v588_v42, 5  ;;  %v598_v38 = vshrl.u32 %v7039_v37, 16 }
  0x52   : > { %v5472_v50 = vcombine.low %v573_v59, %v583_v44  ;;  %v400_v39 = vrot.slane %v399_v57, 4  ;;  %v409_v28 = vor.u32 %v408_v18, %v404_v4  ;;  %v596_v47 = vrot.slane %v594_v45, 5  ;;  %v1166_v57 = vld [vmem:[%s6730_s23 + $0x18] sm:$0xe] }
  0x53   : > { %v591_v54 = vor.u32 %v590_v26, %v587_v16  ;;  %v600_v3 = vrot.slane %v598_v38, 4  ;;  %v604_v32 = vshll.u32 %v7044_v61, 16  ;;  %v5522_v13 = vrot.slane %v1164_v22, 9 }
  0x54   : > { %6323 = vmatprep.mubr.msk.bf16.mxu1 %vm658_vm3, %v5472_v50  ;;  %v405_v44 = vsel %vm6774_vm4, %v400_v39, %v404_v4  ;;  %v410_v20 = vrot.slane %v409_v28, 4  ;;  %v1217_v59 = vrot.slane %v6739_v6, 5  ;;  %v5491_v38 = vcombine.low %v6767_v29, %v6770_v30 }
  0x55   : > { %v592_v16 = vrot.slane %v591_v54, 4  ;;  %v601_v27 = vor.u32 %v600_v3, %v596_v47  ;;  %v606_v52 = vrot.slane %v604_v32, 5  ;;  %v5523_v42 = vrot.slane %v1165_v51, 9 }
  0x56   : > { %v415_v18 = vsel %vm6774_vm4, %v410_v20, %v414_v56  ;;  %v1218_v22 = vsel %vm7060_vm7, %v5522_v13, %v1217_v59  ;;  %v1219_v45 = vrot.slane %v1217_v59, 4  ;;  %v9765_v4 = vrot.slane %v6770_v30, 5 }
  0x57   : > { %v5465_v50 = vcombine.low %v405_v44, %v415_v18  ;;  %v597_v54 = vsel %vm6774_vm4, %v592_v16, %v596_v47  ;;  %v602_v39 = vrot.slane %v601_v27, 4  ;;  %v5490_v51 = vcombine.low %v6736_v5, %v6739_v6  ;;  %v1167_v27 = vld [vmem:[%s6730_s23 + $0x24] sm:$0xe] }
  0x58   : > { %v1226_v26 = vrot.slane %v9765_v4, 4  ;;  %v9766_v28 = vrot.slane %v6742_v7, 5  ;;  %v9767_v3 = vmov %v9765_v4  ;;  %v5492_v13 = vcombine.low %v6809_v8, %v6816_v21  ;;  %v1169_v4 = vld [vmem:[%s6730_s23 + $0x3c] sm:$0xe] }
  0x59   : > { %v1225_v32 = vsel %vm7060_vm7, %v5523_v42, %v9767_v3  ;;  %v5524_v44 = vrot.slane %v1166_v57, 9  ;;  %6308 = vmatmul.mubr.msk.bf16.gmra.mxu0 %vm658_vm3, %v5465_v50  ;;  %v607_v47 = vsel %vm6774_vm4, %v602_v39, %v606_v52  ;;  %v9768_v6 = vrot.slane %v6780_v41, 5  ;;  %v1168_v42 = vld [vmem:[%s6730_s23 + $0x30] sm:$0xe]  ;;  %v1170_v39 = vld [vmem:[%s6730_s23 + $0x48] sm:$0xe] }
  0x5a   : > { %v1221_v56 = vsel %vm7060_vm7, %v1219_v45, %v9766_v28  ;;  %v1231_v20 = vrot.slane %v6816_v21, 5  ;;  %v5473_v59 = vcombine.low %v597_v54, %v607_v47  ;;  %v1234_v16 = vrot.slane %v6822_v25, 5  ;;  %v1171_v47 = vld [vmem:[%s6730_s23 + $0x54] sm:$0xe]  ;;  %v7355_v21 = vld [vmem:[%s6730_s23 + $0x2c] sm:$0x1] }
  0x5b   : > { %v5539_v5 = vcombine.low %v1218_v22, %v1221_v56  ;;  %v1228_v7 = vsel %vm7060_vm7, %v1226_v26, %v9768_v6  ;;  %v1785_v52 = vsel %vm707_vm0, %v6867_v19, 0  ;;  %v1238_v18 = vrot.slane %v6861_v10, 5 }
  0x5c   : > { %v1232_v41 = vsel %vm7060_vm7, %v5524_v44, %v1231_v20  ;;  %v1233_v57 = vrot.slane %v1231_v20, 4  ;;  %6324 = vmatmul.mubr.msk.bf16.gmra.mxu1 %vm658_vm3, %v5473_v59  ;;  %v5540_v22 = vcombine.low %v1225_v32, %v1228_v7  ;;  %v2511_v25 = vsel %vm707_vm0, %v6835_v40, 0 }
  0x5d   : > { %6363 = vmatprep.mubr.msk.bf16.mxu0 %vm658_vm3, %v5539_v5  ;;  %v1245_v45 = vrot.slane %v6907_v9, 5  ;;  %6329 = vmatprep.mubr.msk.bf16.mxu1 %vm658_vm3, %v5490_v51  ;;  %v5525_v26 = vrot.slane %v1167_v27, 9  ;;  %v1241_v50 = vrot.slane %v6872_v24, 5  ;;  %v5526_v54 = vrot.slane %v1168_v42, 9  ;;  %v7127_v24 = vld [vmem:[%s9713_s1 + $0xc] sm:$0x3] }
  0x5e   : > { %v1235_v19 = vsel %vm7060_vm7, %v1233_v57, %v1234_v16  ;;  %v1240_v56 = vrot.slane %v1238_v18, 4  ;;  %v1248_v32 = vrot.slane %v6915_v33, 5  ;;  %v5527_v44 = vrot.slane %v1169_v4, 9 }
  0x5f   : > { %v5541_v28 = vcombine.low %v1232_v41, %v1235_v19  ;;  %v1247_v3 = vrot.slane %v1245_v45, 4  ;;  %v1252_v40 = vrot.slane %v6944_v23, 5  ;;  %v1276_v5 = vrot.slane %v6756_v15, 5 }
  0x60   : > { %v1255_v51 = vrot.slane %v6953_v48, 5  ;;  %v5528_v6 = vrot.slane %v1170_v39, 9  ;;  %v1259_v7 = vrot.slane %v6981_v17, 5  ;;  %v5493_v33 = vcombine.low %v6853_v1, %v6861_v10  ;;  %v1172_v1 = vld [vmem:[%s6730_s23 + $0x60] sm:$0xe] }
  0x61   : > { %6364 = vmatmul.mubr.msk.bf16.vlgmr.msra.gmra.mxu0 %vm658_vm3, %v5540_v22  ;;  %v1239_v20 = vsel %vm7060_vm7, %v5525_v26, %v1238_v18  ;;  %v1254_v59 = vrot.slane %v1252_v40, 4  ;;  %v1262_v16 = vrot.slane %v6987_v2, 5  ;;  %v1242_v48 = vsel %vm7060_vm7, %v1240_v56, %v1241_v50  ;;  %v7155_v22 = vld [vmem:[%s9713_s1 + $0xa] sm:$0x3]  ;;  %v7180_v50 = vld [vmem:[%s6730_s23 + $0x6c] sm:$0xe] }
  0x62   : > { %6430 = vmatpush3.bf16.msra.mxu0 %v2511_v25  ;;  %6367 = vmatprep.mubr.msk.bf16.mxu0 %vm658_vm3, %v5541_v28  ;;  %v1246_v27 = vsel %vm7060_vm7, %v5526_v54, %v1245_v45  ;;  %v1249_v42 = vsel %vm7060_vm7, %v1247_v3, %v1248_v32  ;;  %v1261_v41 = vrot.slane %v1259_v7, 4  ;;  %v7145_v10 = vsel %vm7060_vm7, %v5527_v44, %v1252_v40  ;;  %v1175_v39 = vld [vmem:[%s6730_s23 + $0x84] sm:$0xe]  ;;  %v7209_v44 = vld [vmem:[%s6730_s23 + $0x78] sm:$0xe] }
  0x63   : > { %v7149_v2 = vsel %vm7060_vm7, %v5528_v6, %v1259_v7  ;;  %v5529_v57 = vrot.slane %v1171_v47, 9  ;;  %v1266_v18 = vrot.slane %v7022_v55, 5  ;;  %6608 = vmatprep.subr.msk.bf16.mxu0 %vm707_vm0, %v7127_v24  ;;  %v7165_v25 = vsel %vm7060_vm7, %v1254_v59, %v1255_v51  ;;  %v1176_v40 = vld [vmem:[%s6730_s23 + $0x90] sm:$0xe] }
  0x64   : > { %6330 = vmatmul.mubr.msk.bf16.vlgmr.msra.gmra.mxu1 %vm658_vm3, %v5491_v38  ;;  %v7169_v45 = vsel %vm7060_vm7, %v1261_v41, %v1262_v16  ;;  %v1269_v4 = vrot.slane %v7025_v49, 5  ;;  %v1273_v19 = vrot.slane %v6753_v14, 5  ;;  %v5542_v29 = vcombine.low %v1239_v20, %v1242_v48  ;;  %v9769_v48 = vld [vmem:[#allocation3_spill] sm:$0xff] }
  0x65   : > { %6396 = vmatpush3.bf16.msra.mxu1 %v1785_v52  ;;  %6333 = vmatprep.mubr.msk.bf16.mxu1 %vm658_vm3, %v5492_v13  ;;  %v5494_v30 = vcombine.low %v6902_v60, %v6907_v9  ;;  %v1268_v38 = vrot.slane %v1266_v18, 4  ;;  %v5530_v26 = vrot.slane %v1172_v1, 9  ;;  %v5543_v49 = vcombine.low %v1246_v27, %v1249_v42  ;;  %v1177_v42 = vld [vmem:[%s6730_s23 + $0x9c] sm:$0xe] }
  0x66   : > { %v5495_v52 = vcombine.low %v6939_v11, %v6944_v23  ;;  %v5496_v8 = vcombine.low %v6972_v34, %v6981_v17  ;;  %6607 = vmatprep.subr.msk.bf16.mxu1 %vm707_vm0, %v7155_v22  ;;  %v5544_v60 = vcombine.low %v7145_v10, %v7165_v25  ;;  %v5545_v9 = vcombine.low %v7149_v2, %v7169_v45  ;;  %v9770_v10 = vld [vmem:[#allocation5_spill] sm:$0xff]  ;;  %v9771_v2 = vld [vmem:[#allocation4_spill] sm:$0xff] }
  0x67   : > { %v1275_v54 = vrot.slane %v1273_v19, 4  ;;  %v7199_v28 = vsel %vm7060_vm7, %v5529_v57, %v1266_v18  ;;  %v7203_v56 = vsel %vm7060_vm7, %v1268_v38, %v1269_v4  ;;  %v5531_v32 = vrot.slane %v7180_v50, 9  ;;  %v1178_v18 = vld [vmem:[%s6730_s23 + $0xa8] sm:$0xe]  ;;  %v9773_v38 = vld [vmem:[#allocation8_spill] sm:$0xff] }
  0x68   : > { %v7215_v47 = vsel %vm7060_vm7, %v5530_v26, %v1273_v19  ;;  %v1280_v51 = vrot.slane %v6795_v58, 5  ;;  %v1283_v6 = vrot.slane %v6803_v63, 5  ;;  %v5533_v59 = vrot.slane %v1175_v39, 9  ;;  %v9772_v19 = vld [vmem:[#allocation6_spill] sm:$0xff]  ;;  %v9774_v26 = vld [vmem:[#allocation7_spill] sm:$0xff] }
  0x69   : > { %6368 = vmatmul.mubr.msk.bf16.gmra.mxu0 %vm658_vm3, %v5542_v29  ;;  %v1294_v16 = vrot.slane %v6886_v43, 5  ;;  %v1297_v27 = vrot.slane %v9769_v48, 5  ;;  %v5546_v41 = vcombine.low %v7199_v28, %v7203_v56  ;;  %v7233_v63 = vsel %vm7060_vm7, %v1275_v54, %v1276_v5  ;;  %v9776_v48 = vld [vmem:[#allocation11_spill] sm:$0xff] }
  0x6a   : > { %6371 = vmatprep.mubr.msk.bf16.mxu0 %vm658_vm3, %v5543_v49  ;;  %v5532_v1 = vrot.slane %v7209_v44, 9  ;;  %v5534_v4 = vrot.slane %v1176_v40, 9  ;;  %v1301_v15 = vrot.slane %v9770_v10, 5  ;;  %v1282_v5 = vrot.slane %v1280_v51, 4  ;;  %v5636_v57 = vld [vmem:[%s6730_s23 + $0xc] sm:$0xf] }
  0x6b   : > { %v7242_v25 = vsel %vm7060_vm7, %v5533_v59, %v1294_v16  ;;  %v1296_v45 = vrot.slane %v1294_v16, 4  ;;  %v1304_v29 = vrot.slane %v9772_v19, 5  ;;  %v5535_v49 = vrot.slane %v1177_v42, 9  ;;  %v9775_v59 = vld [vmem:[#allocation9_spill] sm:$0xff]  ;;  %v9777_v42 = vld [vmem:[#allocation10_spill] sm:$0xff] }
  0x6c   : > { %6334 = vmatmul.mubr.msk.bf16.gmra.mxu1 %vm658_vm3, %v5493_v33  ;;  %v1287_v33 = vrot.slane %v6840_v46, 5  ;;  %v7256_v39 = vsel %vm7060_vm7, %v5534_v4, %v1301_v15  ;;  %v1303_v44 = vrot.slane %v1301_v15, 4  ;;  %v1308_v40 = vrot.slane %v9773_v38, 5  ;;  %v9778_v15 = vld [vmem:[#allocation12_spill] sm:$0xff] }
  0x6d   : > { %6337 = vmatprep.mubr.msk.bf16.mxu1 %vm658_vm3, %v5494_v30  ;;  %v7252_v54 = vsel %vm7060_vm7, %v1296_v45, %v1297_v27  ;;  %v1311_v16 = vrot.slane %v9775_v59, 5  ;;  %v5536_v45 = vrot.slane %v1178_v18, 9  ;;  %v1315_v4 = vrot.slane %v9776_v48, 5 }
  0x6e   : > { %v7266_v27 = vsel %vm7060_vm7, %v1303_v44, %v1304_v29  ;;  %v1318_v50 = vrot.slane %v9778_v15, 5  ;;  %v7276_v19 = vsel %vm7060_vm7, %v5535_v49, %v1308_v40  ;;  %v1310_v7 = vrot.slane %v1308_v40, 4  ;;  %v9779_v29 = vld [vmem:[#allocation13_spill] sm:$0xff]  ;;  %v9780_v15 = vld [vmem:[#allocation2_spill] sm:$0xff]  ;;  %v7291_v49 = vld [vmem:[%s6730_s23 + $0x10] sm:$0xf] }
  0x6f   : > { %v7283_v18 = vsel %vm7060_vm7, %v5531_v32, %v1280_v51  ;;  %v7288_v59 = vsel %vm7060_vm7, %v5536_v45, %v1315_v4  ;;  %v1317_v30 = vrot.slane %v1315_v4, 4  ;;  %v5639_v40 = vld [vmem:[%s6730_s23 + $0x18] sm:$0xf]  ;;  %v1289_v20 = vrot.slane %v1287_v33, 4 }
  0x70   : > { %v2029_v44 = vshrl.u32 %v5636_v57, 16  ;;  %v2032_v32 = vshll.u32 %v5636_v57, 16  ;;  %v5547_v51 = vcombine.low %v7215_v47, %v7233_v63  ;;  %v7306_v45 = vsel %vm7060_vm7, %v1282_v5, %v1283_v6  ;;  %v1179_v57 = vld [vmem:[%s6730_s23 + $0xb4] sm:$0xe]  ;;  %v7327_v47 = vld [vmem:[%s6730_s23 + $0x14] sm:$0x1] }
  0x71   : > { %6372 = vmatmul.mubr.msk.bf16.gmra.mxu0 %vm658_vm3, %v5544_v60  ;;  %v1290_v60 = vrot.slane %v9780_v15, 5  ;;  %v7321_v11 = vsel %vm7060_vm7, %v5532_v1, %v1287_v33  ;;  %v2038_v6 = vshll.u32 %v7291_v49, 16  ;;  %v5640_v63 = vld [vmem:[%s6730_s23 + $0x1c] sm:$0xf]  ;;  %v2042_v17 = vshrl.u32 %v7291_v49, 16 }
  0x72   : > { %6375 = vmatprep.mubr.msk.bf16.mxu0 %vm658_vm3, %v5545_v9  ;;  %v7296_v9 = vsel %vm7060_vm7, %v1310_v7, %v1311_v16  ;;  %v7312_v7 = vsel %vm7060_vm7, %v1317_v30, %v1318_v50  ;;  %v2031_v5 = vrot.slane %v2029_v44, 4  ;;  %v2034_v34 = vrot.slane %v2032_v32, 5  ;;  %v5642_v15 = vld [vmem:[%s6730_s23 + $0x24] sm:$0xf]  ;;  %v7340_v44 = vld [vmem:[%s6730_s23 + $0x28] sm:$0xf] }
  0x73   : > { %v2053_v50 = vshrl.u32 %v5639_v40, 16  ;;  %v1291_v1 = vsel %vm7060_vm7, %v1289_v20, %v1290_v60  ;;  %v5537_v33 = vrot.slane %v1179_v57, 9  ;;  %v7335_v30 = vrot.slane %v2038_v6, 5 }
  0x74   : > { %6338 = vmatmul.mubr.msk.bf16.gmra.mxu1 %vm658_vm3, %v5495_v52  ;;  %v1322_v52 = vrot.slane %v7039_v37, 5  ;;  %v2056_v16 = vshll.u32 %v5639_v40, 16  ;;  %v1325_v23 = vrot.slane %v7044_v61, 5  ;;  %v2044_v4 = vrot.slane %v2042_v17, 4 }
  0x75   : > { %6341 = vmatprep.mubr.msk.bf16.mxu1 %vm658_vm3, %v5496_v8  ;;  %v5641_v8 = vld [vmem:[%s6730_s23 + $0x20] sm:$0x1]  ;;  %v2055_v3 = vrot.slane %v2053_v50, 4  ;;  %v2062_v13 = vshll.u32 %v5640_v63, 16  ;;  %v2048_v20 = vshll.u32 %v7327_v47, 16  ;;  %v2066_v57 = vshrl.u32 %v5640_v63, 16 }
  0x76   : > { %v1324_v32 = vrot.slane %v1322_v52, 4  ;;  %v2058_v60 = vrot.slane %v2056_v16, 5  ;;  %v5548_v61 = vcombine.low %v7283_v18, %v7306_v45  ;;  %v5549_v40 = vcombine.low %v7321_v11, %v1291_v1 }
  0x77   : > { %v2035_v6 = vor.u32 %v2034_v34, %v2031_v5  ;;  %v7351_v17 = vrot.slane %v2062_v13, 5  ;;  %v2045_v28 = vor.u32 %v2044_v4, %v7335_v30  ;;  %v2072_v50 = vshll.u32 %v5641_v8, 16  ;;  %v7378_v5 = vld [vmem:[%s6730_s23 + $0x34] sm:$0xf] }
  0x78   : > { %v2059_v56 = vor.u32 %v2058_v60, %v2055_v3  ;;  %v7363_v18 = vsel %vm7060_vm7, %v5537_v33, %v1322_v52  ;;  %v2077_v13 = vshrl.u32 %v5642_v15, 16  ;;  %v2080_v45 = vshll.u32 %v5642_v15, 16  ;;  %v5645_v52 = vld [vmem:[%s6730_s23 + $0x30] sm:$0xf] }
  0x79   : > { %6376 = vmatmul.mubr.msk.bf16.gmra.mxu0 %vm658_vm3, %v5546_v41  ;;  %v2068_v41 = vrot.slane %v2066_v57, 4  ;;  %v2086_v11 = vshll.u32 %v7340_v44, 16  ;;  %v9782_v3 = vcombine.low %v6749_v12, %v6753_v14  ;;  %v7372_v4 = vsel %vm7060_vm7, %v1324_v32, %v1325_v23 }
  0x7a   : > { %6379 = vmatprep.mubr.msk.bf16.mxu0 %vm658_vm3, %v5547_v51  ;;  %v9781_v51 = vcombine.low %v7015_v62, %v7022_v55  ;;  %v2050_v62 = vrot.slane %v2048_v20, 5  ;;  %v2090_v63 = vshrl.u32 %v7340_v44, 16  ;;  %v2036_v34 = vrot.slane %v2035_v6, 4 }
  0x7b   : > { %v2069_v55 = vor.u32 %v2068_v41, %v7351_v17  ;;  %v2079_v8 = vrot.slane %v2077_v13, 4  ;;  %v2082_v1 = vrot.slane %v2080_v45, 5  ;;  %v7380_v33 = vrot.slane %v2086_v11, 5  ;;  %v7386_v41 = vld [vmem:[%s6730_s23 + $0x38] sm:$0x1] }
  0x7c   : > { %6342 = vmatmul.mubr.msk.bf16.gmra.mxu1 %vm658_vm3, %v9781_v51  ;;  %v2046_v12 = vrot.slane %v2045_v28, 4  ;;  %v2060_v14 = vrot.slane %v2059_v56, 4  ;;  %v2074_v16 = vrot.slane %v2072_v50, 5  ;;  %v2092_v23 = vrot.slane %v2090_v63, 4  ;;  %v5648_v13 = vld [vmem:[%s6730_s23 + $0x3c] sm:$0xf] }
  0x7d   : > { %6345 = vmatprep.mubr.msk.bf16.mxu1 %vm658_vm3, %v9782_v3  ;;  %v2070_v15 = vrot.slane %v2069_v55, 4  ;;  %v2096_v32 = vshll.u32 %v7355_v21, 16  ;;  %v2101_v20 = vshrl.u32 %v5645_v52, 16  ;;  %v2104_v60 = vshll.u32 %v5645_v52, 16 }
  0x7e   : > { %v2083_v57 = vor.u32 %v2082_v1, %v2079_v8  ;;  %v2093_v6 = vor.u32 %v2092_v23, %v7380_v33  ;;  %v2110_v28 = vshll.u32 %v7378_v5, 16  ;;  %v2114_v56 = vshrl.u32 %v7378_v5, 16  ;;  %v5651_v8 = vld [vmem:[%s6730_s23 + $0x48] sm:$0xf]  ;;  %v7413_v1 = vld [vmem:[%s6730_s23 + $0x4c] sm:$0xf] }
  0x7f   : > { %v2103_v50 = vrot.slane %v2101_v20, 4  ;;  %v2106_v51 = vrot.slane %v2104_v60, 5  ;;  %v9783_v3 = vcombine.low %v6791_v53, %v6795_v58  ;;  %v5554_v55 = vcombine.low %v7363_v18, %v7372_v4 }
  0x80   : > { %v7392_v45 = vrot.slane %v2110_v28, 5  ;;  %v2116_v11 = vrot.slane %v2114_v56, 4  ;;  %v2051_v63 = vsel %vm6774_vm4, %v2046_v12, %v2050_v62  ;;  %v2065_v52 = vsel %vm6774_vm4, %v2060_v14, %v7351_v17 }
  0x81   : > { %6380 = vmatmul.mubr.msk.bf16.gmra.mxu0 %vm658_vm3, %v5548_v61  ;;  %v7395_v61 = vld [vmem:[%s6730_s23 + $0x40] sm:$0xf]  ;;  %v9784_v53 = vcombine.low %v6829_v35, %v6840_v46  ;;  %v2075_v58 = vsel %vm6774_vm4, %v2070_v15, %v2074_v16  ;;  %v2084_v23 = vrot.slane %v2083_v57, 4  ;;  %v2107_v20 = vor.u32 %v2106_v51, %v2103_v50  ;;  %v7447_v50 = vld [vmem:[%s6730_s23 + $0x44] sm:$0x1] }
  0x82   : > { %6383 = vmatprep.mubr.msk.bf16.mxu0 %vm658_vm3, %v5549_v40  ;;  %v2041_v40 = vsel %vm6774_vm4, %v2036_v34, %v7335_v30  ;;  %v2094_v30 = vrot.slane %v2093_v6, 4  ;;  %v2098_v34 = vrot.slane %v2096_v32, 5  ;;  %v2120_v62 = vshll.u32 %v7386_v41, 16  ;;  %v5654_v51 = vld [vmem:[%s6730_s23 + $0x54] sm:$0xf] }
  0x83   : > { %v2125_v12 = vshrl.u32 %v5648_v13, 16  ;;  %v2128_v17 = vshll.u32 %v5648_v13, 16  ;;  %v7424_v14 = vsel %vm707_vm0, %v7155_v22, 0  ;;  %v2117_v35 = vor.u32 %v2116_v11, %v7392_v45 }
  0x84   : > { %6346 = vmatmul.mubr.msk.bf16.gmra.mxu1 %vm658_vm3, %v9783_v3  ;;  %v2134_v46 = vshll.u32 %v7395_v61, 16  ;;  %v2138_v16 = vshrl.u32 %v7395_v61, 16  ;;  %v7429_v15 = vcombine.low %v2041_v40, %v2051_v63  ;;  %v7433_v32 = vsel %vm707_vm0, %v7127_v24, 0  ;;  %v7456_v40 = vld [vmem:[%s6730_s23 + $0x58] sm:$0xf] }
  0x85   : > { %6349 = vmatprep.mubr.msk.bf16.mxu1 %vm658_vm3, %v9784_v53  ;;  %v2149_v60 = vshrl.u32 %v5651_v8, 16  ;;  %v2152_v57 = vshll.u32 %v5651_v8, 16  ;;  %v9785_v6 = vcombine.low %v7242_v25, %v7252_v54  ;;  %v7439_v22 = vcombine.low %v2065_v52, %v2075_v58  ;;  %v7461_v8 = vld [vmem:[%s6730_s23 + $0x50] sm:$0x1] }
  0x86   : > { %v2089_v28 = vsel %vm6774_vm4, %v2084_v23, %v7380_v33  ;;  %v2099_v56 = vsel %vm6774_vm4, %v2094_v30, %v2098_v34  ;;  %v2158_v24 = vshll.u32 %v7413_v1, 16  ;;  %v9786_v25 = vcombine.low %v7256_v39, %v7266_v27  ;;  %v5657_v34 = vld [vmem:[%s6730_s23 + $0x60] sm:$0xf] }
  0x87   : > { %v2108_v54 = vrot.slane %v2107_v20, 4  ;;  %v2122_v13 = vrot.slane %v2120_v62, 5  ;;  %v2127_v11 = vrot.slane %v2125_v12, 4  ;;  %v2130_v3 = vrot.slane %v2128_v17, 5 }
  0x88   : > { %v2118_v33 = vrot.slane %v2117_v35, 4  ;;  %v7458_v63 = vrot.slane %v2134_v46, 5  ;;  %v2140_v52 = vrot.slane %v2138_v16, 4  ;;  %v2162_v53 = vshrl.u32 %v7413_v1, 16  ;;  %v7478_v35 = vld [vmem:[%s6730_s23 + $0x5c] sm:$0x1] }
  0x89   : > { %6384 = vmatmul.mubr.msk.bf16.gmra.mxu0 %vm658_vm3, %v9785_v6  ;;  %v9787_v39 = vcombine.low %v6879_v36, %v6886_v43  ;;  %v2151_v27 = vrot.slane %v2149_v60, 4  ;;  %v2154_v58 = vrot.slane %v2152_v57, 5  ;;  %v2173_v23 = vshrl.u32 %v5654_v51, 16 }
  0x8a   : > { %6387 = vmatprep.mubr.msk.bf16.mxu0 %vm658_vm3, %v9786_v25  ;;  %v2176_v30 = vshll.u32 %v5654_v51, 16  ;;  %v9788_v20 = vcombine.low %v9771_v2, %v9770_v10  ;;  %v7473_v62 = vcombine.low %v2089_v28, %v2099_v56  ;;  %v7475_v12 = vrot.slane %v2158_v24, 5  ;;  %v7491_v28 = vld [vmem:[%s6730_s23 + $0x64] sm:$0xf] }
  0x8b   : > { %v2164_v17 = vrot.slane %v2162_v53, 4  ;;  %v2182_v36 = vshll.u32 %v7456_v40, 16  ;;  %v2144_v43 = vshll.u32 %v7447_v50, 16  ;;  %v2175_v46 = vrot.slane %v2173_v23, 4 }
  0x8c   : > { %6350 = vmatmul.mubr.msk.bf16.gmra.mxu1 %vm658_vm3, %v9787_v39  ;;  %v2178_v16 = vrot.slane %v2176_v30, 5  ;;  %v2186_v60 = vshrl.u32 %v7456_v40, 16  ;;  %v2113_v10 = vsel %vm6774_vm4, %v2108_v54, %v7392_v45  ;;  %v2123_v2 = vsel %vm6774_vm4, %v2118_v33, %v2122_v13  ;;  %v7513_v30 = vld [vmem:[%s6730_s23 + $0x68] sm:$0x1] }
  0x8d   : > { %6353 = vmatprep.mubr.msk.bf16.mxu1 %vm658_vm3, %v9788_v20  ;;  %v2131_v57 = vor.u32 %v2130_v3, %v2127_v11  ;;  %v7488_v6 = vrot.slane %v2182_v36, 5  ;;  %v2141_v56 = vor.u32 %v2140_v52, %v7458_v63  ;;  %v2155_v24 = vor.u32 %v2154_v58, %v2151_v27  ;;  %v5660_v3 = vld [vmem:[%s6730_s23 + $0x6c] sm:$0xf]  ;;  %v7510_v27 = vld [vmem:[%s6730_s23 + $0x70] sm:$0xf] }
  0x8e   : > { %v2168_v51 = vshll.u32 %v7461_v8, 16  ;;  %v2188_v25 = vrot.slane %v2186_v60, 4  ;;  %v9789_v53 = vcombine.low %v7276_v19, %v7296_v9  ;;  %v2165_v45 = vor.u32 %v2164_v17, %v7475_v12 }
  0x8f   : > { %v2179_v54 = vor.u32 %v2178_v16, %v2175_v46  ;;  %v2197_v13 = vshrl.u32 %v5657_v34, 16  ;;  %v2200_v11 = vshll.u32 %v5657_v34, 16  ;;  %v9790_v33 = vcombine.low %v7288_v59, %v7312_v7  ;;  %v5663_v16 = vld [vmem:[%s6730_s23 + $0x78] sm:$0xf] }
  0x90   : > { %v2189_v52 = vor.u32 %v2188_v25, %v7488_v6  ;;  %v2192_v39 = vshll.u32 %v7478_v35, 16  ;;  %v2206_v19 = vshll.u32 %v7491_v28, 16  ;;  %v2210_v9 = vshrl.u32 %v7491_v28, 16 }
  0x91   : > { %6388 = vmatmul.mubr.msk.bf16.gmra.mxu0 %vm658_vm3, %v9789_v53  ;;  %v2132_v58 = vrot.slane %v2131_v57, 4  ;;  %v2146_v23 = vrot.slane %v2144_v43, 5  ;;  %v2199_v34 = vrot.slane %v2197_v13, 4  ;;  %v2202_v20 = vrot.slane %v2200_v11, 5 }
  0x92   : > { %6391 = vmatprep.mubr.msk.bf16.mxu0 %vm658_vm3, %v9790_v33  ;;  %v9791_v59 = vcombine.low %v9774_v26, %v9773_v38  ;;  %v7519_v7 = vcombine.low %v2113_v10, %v2123_v2  ;;  %v2142_v17 = vrot.slane %v2141_v56, 4  ;;  %v2156_v36 = vrot.slane %v2155_v24, 4  ;;  %v7529_v2 = vld [vmem:[%s6730_s23 + $0x7c] sm:$0xf] }
  0x93   : > { %v7521_v46 = vrot.slane %v2206_v19, 5  ;;  %v9792_v43 = vcombine.low %v9777_v42, %v9776_v48  ;;  %v2166_v60 = vrot.slane %v2165_v45, 4  ;;  %v2170_v57 = vrot.slane %v2168_v51, 5  ;;  %9793 = vst [vmem:[#allocation3_spill] sm:$0xff] %v7529_v2  ;;  %v5666_v19 = vld [vmem:[%s6730_s23 + $0x84] sm:$0xf] }
  0x94   : > { %6354 = vmatmul.mubr.msk.bf16.gmra.mxu1 %vm658_vm3, %v9791_v59  ;;  %v2180_v25 = vrot.slane %v2179_v54, 4  ;;  %v2212_v38 = vrot.slane %v2210_v9, 4  ;;  %v2190_v26 = vrot.slane %v2189_v52, 4  ;;  %v2194_v53 = vrot.slane %v2192_v39, 5 }
  0x95   : > { %6357 = vmatprep.mubr.msk.bf16.mxu1 %vm658_vm3, %v9792_v43  ;;  %v2203_v13 = vor.u32 %v2202_v20, %v2199_v34  ;;  %v2221_v10 = vshrl.u32 %v5660_v3, 16  ;;  %v2137_v56 = vsel %vm6774_vm4, %v2132_v58, %v7458_v63  ;;  %v2224_v24 = vshll.u32 %v5660_v3, 16  ;;  %v6637_v63 = vld [vmem:[%s6730_s23 + $0xc] sm:$0xff]   ;;  %v7563_v34 = vld [vmem:[%s6730_s23 + $0x88] sm:$0xf] }
  0x96   : > { %v2230_v48 = vshll.u32 %v7510_v27, 16  ;;  %v2234_v42 = vshrl.u32 %v7510_v27, 16  ;;  %v2147_v51 = vsel %vm6774_vm4, %v2142_v17, %v2146_v23  ;;  %v2161_v45 = vsel %vm6774_vm4, %v2156_v36, %v7475_v12  ;;  %9794 = vst [vmem:[#allocation5_spill] sm:$0xff] %v7563_v34  ;;  %v7572_v36 = vld [vmem:[%s6730_s23 + $0x74] sm:$0x1] }
  0x97   : > { %v2213_v54 = vor.u32 %v2212_v38, %v7521_v46  ;;  %v2216_v11 = vshll.u32 %v7513_v30, 16  ;;  %v2171_v3 = vsel %vm6774_vm4, %v2166_v60, %v2170_v57  ;;  %v2185_v33 = vsel %vm6774_vm4, %v2180_v25, %v7488_v6  ;;  %9796 = vst [vmem:[#allocation4_spill] sm:$0xff] %v7572_v36  ;;  %v7582_v38 = vld [vmem:[%s6730_s23 + $0x80] sm:$0x1] }
  0x98   : > { %v2245_v52 = vshrl.u32 %v5663_v16, 16  ;;  %v2248_v12 = vshll.u32 %v5663_v16, 16  ;;  %v2195_v18 = vsel %vm6774_vm4, %v2190_v26, %v2194_v53  ;;  %v2204_v4 = vrot.slane %v2203_v13, 4  ;;  %9797 = vst [vmem:[#allocation6_spill] sm:$0xff] %v7582_v38  ;;  %v7585_v26 = vld [vmem:[%s6730_s23 + $0x8c] sm:$0x1] }
  0x99   : > { %6392 = vmatmul.mubr.msk.bf16.gmra.mxu0 %vm658_vm3, %v5554_v55  ;;  %v2223_v55 = vrot.slane %v2221_v10, 4  ;;  %v2254_v39 = vshll.u32 %v7529_v2, 16  ;;  %v2226_v9 = vrot.slane %v2224_v24, 5  ;;  %v7559_v58 = vrot.slane %v2230_v48, 5  ;;  %9798 = vst [vmem:[#allocation8_spill] sm:$0xff] %v7585_v26  ;;  %v6638_v10 = vld [vmem:[%s6730_s23 + $0x18] sm:$0xff]  }
  0x9a   : > { %6431 = vmatprep.mubr.msk.bf16.mxu0 %vm658_vm3, %v7429_v15  ;;  %v2236_v23 = vrot.slane %v2234_v42, 4  ;;  %v2258_v6 = vshrl.u32 %v7529_v2, 16  ;;  %v9795_v15 = vcombine.low %v9779_v29, %v7039_v37  ;;  %v7569_v20 = vcombine.low %v2137_v56, %v2147_v51  ;;  %v5669_v51 = vld [vmem:[%s6730_s23 + $0x90] sm:$0xf] }
  0x9b   : > { %v2214_v59 = vrot.slane %v2213_v54, 4  ;;  %v2218_v17 = vrot.slane %v2216_v11, 5  ;;  %v2247_v16 = vrot.slane %v2245_v52, 4  ;;  %v2250_v43 = vrot.slane %v2248_v12, 5 }
  0x9c   : > { %6358 = vmatmul.mubr.msk.bf16.gmra.mxu1 %vm658_vm3, %v9795_v15  ;;  %v7575_v60 = vrot.slane %v2254_v39, 5  ;;  %v2260_v57 = vrot.slane %v2258_v6, 4  ;;  %v2269_v25 = vshrl.u32 %v5666_v19, 16  ;;  %v7577_v37 = vcombine.low %v2161_v45, %v2171_v3  ;;  %v7596_v45 = vld [vmem:[%s6730_s23 + $0x94] sm:$0xf] }
  0x9d   : > { %6397 = vmatprep.mubr.msk.bf16.mxu1 %vm658_vm3, %v6637_v63  ;;  %v7579_v29 = vcombine.low %v2185_v33, %v2195_v18  ;;  %v2272_v53 = vshll.u32 %v5666_v19, 16  ;;  %v2278_v13 = vshll.u32 %v7563_v34, 16  ;;  %v2209_v56 = vsel %vm6774_vm4, %v2204_v4, %v7521_v46  ;;  %9799 = vst [vmem:[#allocation7_spill] sm:$0xff] %v7596_v45  ;;  %v7604_v33 = vld [vmem:[%s9713_s1 + $0x10] sm:$0x3]  ;;  %v6639_v46 = vld [vmem:[%s6730_s23 + $0x24] sm:$0xff]  }
  0x9e   : > { %v2227_v24 = vor.u32 %v2226_v9, %v2223_v55  ;;  %v2237_v48 = vor.u32 %v2236_v23, %v7559_v58  ;;  %v2240_v42 = vshll.u32 %v7572_v36, 16  ;;  %v2271_v54 = vrot.slane %v2269_v25, 4  ;;  %9800 = vst [vmem:[#allocation9_spill] sm:$0xff] %v7604_v33 }
  0x9f   : > { %v2274_v11 = vrot.slane %v2272_v53, 5  ;;  %v7598_v63 = vrot.slane %v2278_v13, 5  ;;  %v2282_v3 = vshrl.u32 %v7563_v34, 16  ;;  %v2219_v52 = vsel %vm6774_vm4, %v2214_v59, %v2218_v17 }
  0xa0   : > { %v2251_v12 = vor.u32 %v2250_v43, %v2247_v16  ;;  %v2261_v18 = vor.u32 %v2260_v57, %v7575_v60  ;;  %v2264_v4 = vshll.u32 %v7582_v38, 16  ;;  %v2293_v19 = vshrl.u32 %v5669_v51, 16  ;;  %v7638_v57 = vld [vmem:[%s6730_s23 + $0xa0] sm:$0xf] }
  0xa1   : > { %6432 = vmatmul.mubr.msk.bf16.vlgmr.msra.gmra.mxu0 %vm658_vm3, %v7439_v22  ;;  %v2275_v55 = vor.u32 %v2274_v11, %v2271_v54  ;;  %v2284_v39 = vrot.slane %v2282_v3, 4  ;;  %v2296_v9 = vshll.u32 %v5669_v51, 16  ;;  %v5672_v22 = vld [vmem:[%s6730_s23 + $0x9c] sm:$0xf]  ;;  %v7617_v23 = vrot.slane %v2227_v24, 4  ;;  %9802 = vst [vmem:[#allocation10_spill] sm:$0xff] %v7638_v57 }
  0xa2   : > { %6498 = vmatpush3.bf16.msra.mxu0 %v7433_v32  ;;  %6435 = vmatprep.mubr.msk.bf16.mxu0 %vm658_vm3, %v7473_v62  ;;  %v7619_v6 = vrot.slane %v2240_v42, 5  ;;  %v2288_v15 = vshll.u32 %v7585_v26, 16  ;;  %v2302_v59 = vshll.u32 %v7596_v45, 16  ;;  %v7626_v32 = vld [vmem:[%s9713_s1 + $0xe] sm:$0x3]  ;;  %v7631_v62 = vcombine.low %v2209_v56, %v2219_v52 }
  0xa3   : > { %9801 = vst [vmem:[#allocation11_spill] sm:$0xff] %v7626_v32  ;;  %6610 = vmatprep.subr.msk.bf16.mxu0 %vm707_vm0, %v7604_v33  ;;  %v7633_v17 = vrot.slane %v2237_v48, 4  ;;  %v2285_v16 = vor.u32 %v2284_v39, %v7598_v63  ;;  %v2306_v43 = vshrl.u32 %v7596_v45, 16  ;;  %v7642_v25 = vrot.slane %v2251_v12, 4  ;;  %v7651_v56 = vld [vmem:[%s6730_s23 + $0x98] sm:$0x1] }
  0xa4   : > { %6398 = vmatmul.mubr.msk.bf16.vlgmr.msra.gmra.mxu1 %vm658_vm3, %v6638_v10  ;;  %v7644_v53 = vrot.slane %v2261_v18, 4  ;;  %v7646_v13 = vrot.slane %v2264_v4, 5  ;;  %v7648_v10 = vrot.slane %v2275_v55, 4  ;;  %9803 = vst [vmem:[#allocation12_spill] sm:$0xff] %v7651_v56  ;;  %v2295_v24 = vrot.slane %v2293_v19, 4  ;;  %v6641_v19 = vld [vmem:[%s6730_s23 + $0x3c] sm:$0xff]  }
  0xa5   : > { %6464 = vmatpush3.bf16.msra.mxu1 %v7424_v14  ;;  %6401 = vmatprep.mubr.msk.bf16.mxu1 %vm658_vm3, %v6639_v46  ;;  %v2298_v48 = vrot.slane %v2296_v9, 5  ;;  %v2317_v42 = vshrl.u32 %v5672_v22, 16  ;;  %v2320_v51 = vshll.u32 %v5672_v22, 16  ;;  %v6640_v14 = vld [vmem:[%s6730_s23 + $0x30] sm:$0xff]   ;;  %v7660_v11 = vrot.slane %v2288_v15, 5 }
  0xa6   : > { %6609 = vmatprep.subr.msk.bf16.mxu1 %vm707_vm0, %v7626_v32  ;;  %v7662_v3 = vrot.slane %v2302_v59, 5  ;;  %v2326_v46 = vshll.u32 %v7638_v57, 16  ;;  %v5675_v52 = vld [vmem:[%s6730_s23 + $0xa8] sm:$0xf]  ;;  %v7666_v12 = vrot.slane %v2285_v16, 4  ;;  %v2308_v18 = vrot.slane %v2306_v43, 4 }
  0xa7   : > { %v2312_v4 = vshll.u32 %v7651_v56, 16  ;;  %v2330_v55 = vshrl.u32 %v7638_v57, 16  ;;  %v7671_v39 = vld [vmem:[%s6730_s23 + $0xac] sm:$0xf]  ;;  %v2299_v59 = vor.u32 %v2298_v48, %v2295_v24  ;;  %v7695_v16 = vld [vmem:[%s6730_s23 + $0xa4] sm:$0x1] }
  0xa8   : > { %9804 = vst [vmem:[#allocation13_spill] sm:$0xff] %v7671_v39  ;;  %9805 = vst [vmem:[#allocation2_spill] sm:$0xff] %v7695_v16  ;;  %v2319_v43 = vrot.slane %v2317_v42, 4  ;;  %v2322_v22 = vrot.slane %v2320_v51, 5  ;;  %v2341_v54 = vshrl.u32 %v5675_v52, 16  ;;  %v7697_v9 = vrot.slane %v2326_v46, 5 }
  0xa9   : > { %6436 = vmatmul.mubr.msk.bf16.gmra.mxu0 %vm658_vm3, %v7519_v7  ;;  %v2332_v32 = vrot.slane %v2330_v55, 4  ;;  %v2344_v15 = vshll.u32 %v5675_v52, 16  ;;  %v2350_v33 = vshll.u32 %v7671_v39, 16  ;;  %v5678_v57 = vld [vmem:[%s6730_s23 + $0xb4] sm:$0xf]  ;;  %v2309_v24 = vor.u32 %v2308_v18, %v7662_v3 }
  0xaa   : > { %6439 = vmatprep.mubr.msk.bf16.mxu0 %vm658_vm3, %v7569_v20  ;;  %v2291_v20 = vsel %vm6774_vm4, %v7666_v12, %v7660_v11  ;;  %v7707_v48 = vrot.slane %v2312_v4, 5  ;;  %v7710_v42 = vld [vmem:[%s6730_s23 + $0xb0] sm:$0x1]  ;;  %v2343_v51 = vrot.slane %v2341_v54, 4  ;;  %v7713_v46 = vld [vmem:[%s6730_s23 + $0xb8] sm:$0xf]  ;;  %v2323_v18 = vor.u32 %v2322_v22, %v2319_v43 }
  0xab   : > { %9806 = vst [vmem:[#allocation14_spill] sm:$0xff] %v7710_v42  ;;  %9807 = vst [vmem:[#allocation15_spill] sm:$0xff] %v7713_v46  ;;  %v2346_v52 = vrot.slane %v2344_v15, 5  ;;  %v7717_v55 = vrot.slane %v2350_v33, 5  ;;  %v2354_v11 = vshrl.u32 %v7671_v39, 16  ;;  %v7720_v12 = vrot.slane %v2299_v59, 4 }
  0xac   : > { %6402 = vmatmul.mubr.msk.bf16.gmra.mxu1 %vm658_vm3, %v6640_v14  ;;  %v2336_v14 = vshll.u32 %v7695_v16, 16  ;;  %v7723_v4 = vld [vmem:[%s6730_s23 + $0xbc] sm:$0x1]  ;;  %v2365_v54 = vshrl.u32 %v5678_v57, 16  ;;  %v2368_v7 = vshll.u32 %v5678_v57, 16  ;;  %v2333_v56 = vor.u32 %v2332_v32, %v7697_v9  ;;  %v6642_v16 = vld [vmem:[%s6730_s23 + $0x48] sm:$0xff]  }
  0xad   : > { %6405 = vmatprep.mubr.msk.bf16.mxu1 %vm658_vm3, %v6641_v19  ;;  %v2356_v45 = vrot.slane %v2354_v11, 4  ;;  %v2360_v19 = vshll.u32 %v7710_v42, 16  ;;  %v2374_v15 = vshll.u32 %v7713_v46, 16  ;;  %v5681_v33 = vld [vmem:[%s6730_s23 + $0xc0] sm:$0xf]  ;;  %v2347_v26 = vor.u32 %v2346_v52, %v2343_v51  ;;  %v6643_v57 = vld [vmem:[%s6730_s23 + $0x54] sm:$0xff]  }
  0xae   : > { %v2367_v39 = vrot.slane %v2365_v54, 4  ;;  %v2370_v34 = vrot.slane %v2368_v7, 5  ;;  %v2378_v59 = vshrl.u32 %v7713_v46, 16  ;;  %v7732_v22 = vld [vmem:[%s6730_s23 + $0xc4] sm:$0xf]  ;;  %v2310_v43 = vrot.slane %v2309_v24, 4 }
  0xaf   : > { %v2338_v32 = vrot.slane %v2336_v14, 5  ;;  %v2357_v11 = vor.u32 %v2356_v45, %v7717_v55  ;;  %v2376_v42 = vrot.slane %v2374_v15, 5  ;;  %v2384_v7 = vshll.u32 %v7723_v4, 16  ;;  %v7744_v45 = vld [vmem:[%s6730_s23 + $0xc8] sm:$0x1] }
  0xb0   : > { %v2371_v51 = vor.u32 %v2370_v34, %v2367_v39  ;;  %v2380_v52 = vrot.slane %v2378_v59, 4  ;;  %v2389_v54 = vshrl.u32 %v5681_v33, 16  ;;  %v2324_v46 = vrot.slane %v2323_v18, 4 }
  0xb1   : > { %6440 = vmatmul.mubr.msk.bf16.gmra.mxu0 %vm658_vm3, %v7577_v37  ;;  %v2334_v38 = vrot.slane %v2333_v56, 4  ;;  %v2392_v2 = vshll.u32 %v5681_v33, 16  ;;  %v2398_v37 = vshll.u32 %v7732_v22, 16  ;;  %v2348_v24 = vrot.slane %v2347_v26, 4 }
  0xb2   : > { %6443 = vmatprep.mubr.msk.bf16.mxu0 %vm658_vm3, %v7579_v29  ;;  %v2362_v14 = vrot.slane %v2360_v19, 5  ;;  %v2381_v36 = vor.u32 %v2380_v52, %v2376_v42  ;;  %v2391_v15 = vrot.slane %v2389_v54, 4  ;;  %v2358_v34 = vrot.slane %v2357_v11, 4 }
  0xb3   : > { %v2394_v29 = vrot.slane %v2392_v2, 5  ;;  %v7747_v39 = vrot.slane %v2398_v37, 5  ;;  %v2402_v56 = vshrl.u32 %v7732_v22, 16  ;;  %v9808_v26 = vsel %vm6774_vm4, %v7633_v17, %v7619_v6 }
  0xb4   : > { %6406 = vmatmul.mubr.msk.bf16.gmra.mxu1 %vm658_vm3, %v6642_v16  ;;  %v9809_v16 = vsel %vm6774_vm4, %v7617_v23, %v7559_v58  ;;  %v2372_v19 = vrot.slane %v2371_v51, 4  ;;  %v2382_v33 = vrot.slane %v2381_v36, 4  ;;  %v2386_v2 = vrot.slane %v2384_v7, 5  ;;  %v6644_v23 = vld [vmem:[%s6730_s23 + $0x60] sm:$0xff]  }
  0xb5   : > { %6409 = vmatprep.mubr.msk.bf16.mxu1 %vm658_vm3, %v6643_v57  ;;  %v5693_v18 = vcombine.low %v9809_v16, %v9808_v26  ;;  %v9810_v59 = vsel %vm6774_vm4, %v7644_v53, %v7646_v13  ;;  %v9811_v6 = vsel %vm6774_vm4, %v7642_v25, %v7575_v60  ;;  %v2395_v57 = vor.u32 %v2394_v29, %v2391_v15  ;;  %v5719_v13 = vld [vmem:[%s6730_s23 + $0x24] sm:$0xe]  ;;  %v5722_v26 = vld [vmem:[%s6730_s23 + $0x48] sm:$0xe] }
  0xb6   : > { %v5694_v17 = vcombine.low %v9811_v6, %v9810_v59  ;;  %v2404_v11 = vrot.slane %v2402_v56, 4  ;;  %v2408_v58 = vshll.u32 %v7744_v45, 16  ;;  %v9812_v36 = vsel %vm6774_vm4, %v7648_v10, %v7598_v63  ;;  %v6645_v63 = vld [vmem:[%s6730_s23 + $0x6c] sm:$0xff]   ;;  %v5723_v6 = vld [vmem:[%s6730_s23 + $0x54] sm:$0xe] }
  0xb7   : > { %v5695_v51 = vcombine.low %v9812_v36, %v2291_v20  ;;  %v2305_v53 = vsel %vm6774_vm4, %v7720_v12, %v7662_v3  ;;  %v2315_v60 = vsel %vm6774_vm4, %v2310_v43, %v7707_v48  ;;  %v2329_v25 = vsel %vm6774_vm4, %v2324_v46, %v7697_v9  ;;  %v7800_v12 = vld [vmem:[%s6730_s23 + $0xc] sm:$0xe] }
  0xb8   : > { %v2339_v10 = vsel %vm6774_vm4, %v2334_v38, %v2338_v32  ;;  %v2353_v3 = vsel %vm6774_vm4, %v2348_v24, %v7717_v55  ;;  %v2363_v20 = vsel %vm6774_vm4, %v2358_v34, %v2362_v14  ;;  %v2405_v48 = vor.u32 %v2404_v11, %v7747_v39  ;;  %v5720_v55 = vld [vmem:[%s6730_s23 + $0x30] sm:$0xe]  ;;  %v5721_v14 = vld [vmem:[%s6730_s23 + $0x3c] sm:$0xe] }
  0xb9   : > { %6444 = vmatmul.mubr.msk.bf16.gmra.mxu0 %vm658_vm3, %v7631_v62  ;;  %v2377_v62 = vsel %vm6774_vm4, %v2372_v19, %v2376_v42  ;;  %v2387_v38 = vsel %vm6774_vm4, %v2382_v33, %v2386_v2  ;;  %v7807_v9 = vrot.slane %v2395_v57, 4  ;;  %v2772_v46 = vrot.slane %v7291_v49, 5  ;;  %v6646_v57 = vld [vmem:[%s6730_s23 + $0x78] sm:$0xff]  }
  0xba   : > { %6447 = vmatprep.mubr.msk.bf16.mxu0 %vm658_vm3, %v5693_v18  ;;  %v7811_v43 = vcombine.low %v2305_v53, %v2315_v60  ;;  %v7813_v32 = vrot.slane %v2405_v48, 4  ;;  %v7815_v52 = vrot.slane %v2408_v58, 5  ;;  %v5735_v7 = vrot.slane %v5719_v13, 9  ;;  %v6647_v53 = vld [vmem:[%s6730_s23 + $0x84] sm:$0xff]   ;;  %v5724_v13 = vld [vmem:[%s6730_s23 + $0x60] sm:$0xe] }
  0xbb   : > { %v7818_v54 = vcombine.low %v2329_v25, %v2339_v10  ;;  %v7820_v42 = vcombine.low %v2353_v3, %v2363_v20  ;;  %v5733_v37 = vrot.slane %v7800_v12, 9  ;;  %v2786_v24 = vrot.slane %v7340_v44, 5  ;;  %v6653_v49 = vld [vmem:[%s6730_s23 + $0x18] sm:$0xff]  }
  0xbc   : > { %6410 = vmatmul.mubr.msk.bf16.gmra.mxu1 %vm658_vm3, %v6644_v23  ;;  %v7826_v15 = vcombine.low %v2377_v62, %v2387_v38  ;;  %v2775_v34 = vrot.slane %v7327_v47, 5  ;;  %v2789_v29 = vrot.slane %v7355_v21, 5  ;;  %v5736_v56 = vrot.slane %v5720_v55, 9  ;;  %v5726_v55 = vld [vmem:[%s6730_s23 + $0x78] sm:$0xe] }
  0xbd   : > { %6413 = vmatprep.mubr.msk.bf16.mxu1 %vm658_vm3, %v6645_v63  ;;  %v2401_v16 = vsel %vm6774_vm4, %v7807_v9, %v7747_v39  ;;  %v7837_v44 = vrot.slane %v2772_v46, 4  ;;  %v7841_v18 = vsel %vm7060_vm7, %v5735_v7, %v2786_v24  ;;  %v2788_v19 = vrot.slane %v2786_v24, 4 }
  0xbe   : > { %v2411_v21 = vsel %vm6774_vm4, %v7813_v32, %v7815_v52  ;;  %v2793_v33 = vrot.slane %v7378_v5, 5  ;;  %v2796_v2 = vrot.slane %v7386_v41, 5  ;;  %v5737_v59 = vrot.slane %v5721_v14, 9  ;;  %v6652_v52 = vld [vmem:[%s6730_s23 + $0xc0] sm:$0xff]  }
  0xbf   : > { %v7853_v11 = vsel %vm7060_vm7, %v2788_v19, %v2789_v29  ;;  %v2800_v58 = vrot.slane %v7395_v61, 5  ;;  %v2803_v23 = vrot.slane %v7447_v50, 5  ;;  %v5738_v36 = vrot.slane %v5722_v26, 9  ;;  %v5727_v19 = vld [vmem:[%s6730_s23 + $0x84] sm:$0xe] }
  0xc0   : > { %v5752_v5 = vcombine.low %v7841_v18, %v7853_v11  ;;  %v7863_v41 = vsel %vm7060_vm7, %v5736_v56, %v2793_v33  ;;  %v2795_v60 = vrot.slane %v2793_v33, 4  ;;  %v2807_v25 = vrot.slane %v7413_v1, 5 }
  0xc1   : > { %6448 = vmatmul.mubr.msk.bf16.gmra.mxu0 %vm658_vm3, %v5694_v17  ;;  %v7870_v61 = vsel %vm7060_vm7, %v5737_v59, %v2800_v58  ;;  %v2802_v50 = vrot.slane %v2800_v58, 4  ;;  %v2810_v17 = vrot.slane %v7461_v8, 5  ;;  %v5739_v63 = vrot.slane %v5723_v6, 9  ;;  %v9813_v59 = vld [vmem:[#allocation4_spill] sm:$0xff] }
  0xc2   : > { %6451 = vmatprep.mubr.msk.bf16.mxu0 %vm658_vm3, %v5695_v51  ;;  %v7875_v10 = vsel %vm7060_vm7, %v2795_v60, %v2796_v2  ;;  %v7879_v3 = vsel %vm7060_vm7, %v5738_v36, %v2807_v25  ;;  %v2809_v1 = vrot.slane %v2807_v25, 4  ;;  %v2814_v20 = vrot.slane %v7456_v40, 5  ;;  %v5725_v51 = vld [vmem:[%s6730_s23 + $0x6c] sm:$0xe]  ;;  %v6648_v58 = vld [vmem:[%s6730_s23 + $0x90] sm:$0xff]  }
  0xc3   : > { %v5753_v48 = vcombine.low %v7863_v41, %v7875_v10  ;;  %v7888_v8 = vsel %vm7060_vm7, %v2802_v50, %v2803_v23  ;;  %v2817_v62 = vrot.slane %v7478_v35, 5  ;;  %v5740_v38 = vrot.slane %v5724_v13, 9  ;;  %v9814_v36 = vld [vmem:[#allocation3_spill] sm:$0xff]  ;;  %v5728_v60 = vld [vmem:[%s6730_s23 + $0x90] sm:$0xe]  ;;  %v9815_v50 = vld [vmem:[#allocation6_spill] sm:$0xff] }
  0xc4   : > { %6414 = vmatmul.mubr.msk.bf16.gmra.mxu1 %vm658_vm3, %v6646_v57  ;;  %v5754_v40 = vcombine.low %v7870_v61, %v7888_v8  ;;  %v7897_v7 = vsel %vm7060_vm7, %v2809_v1, %v2810_v17  ;;  %v7901_v24 = vsel %vm7060_vm7, %v5739_v63, %v2814_v20  ;;  %v2816_v14 = vrot.slane %v2814_v20, 4 }
  0xc5   : > { %6417 = vmatprep.mubr.msk.bf16.mxu1 %vm658_vm3, %v6647_v53  ;;  %v5755_v35 = vcombine.low %v7879_v3, %v7897_v7  ;;  %v2821_v29 = vrot.slane %v7491_v28, 5  ;;  %v2824_v56 = vrot.slane %v7513_v30, 5  ;;  %v5741_v26 = vrot.slane %v5725_v51, 9  ;;  %v9816_v51 = vld [vmem:[#allocation5_spill] sm:$0xff]  ;;  %v5859_v3 = vld [vmem:[%s6730_s23 + $0x48] sm:$0xf] }
  0xc6   : > { %v7910_v33 = vsel %vm7060_vm7, %v2816_v14, %v2817_v62  ;;  %v2828_v2 = vrot.slane %v7510_v27, 5  ;;  %v2831_v6 = vrot.slane %v9813_v59, 5  ;;  %v5742_v57 = vrot.slane %v5726_v55, 9  ;;  %v6649_v27 = vld [vmem:[%s6730_s23 + $0x9c] sm:$0xff]   ;;  %v9824_v55 = vld [vmem:[#allocation15_spill] sm:$0xff] }
  0xc7   : > { %v5756_v23 = vcombine.low %v7901_v24, %v7910_v33  ;;  %v7919_v28 = vsel %vm7060_vm7, %v5740_v38, %v2821_v29  ;;  %v2823_v30 = vrot.slane %v2821_v29, 4  ;;  %v2835_v53 = vrot.slane %v9814_v36, 5  ;;  %v5729_v38 = vld [vmem:[%s6730_s23 + $0x9c] sm:$0xe]  ;;  %v9819_v36 = vld [vmem:[#allocation12_spill] sm:$0xff] }
  0xc8   : > { %v7928_v25 = vsel %vm7060_vm7, %v5741_v26, %v2828_v2  ;;  %v2830_v13 = vrot.slane %v2828_v2, 4  ;;  %v2838_v17 = vrot.slane %v9815_v50, 5  ;;  %v5743_v63 = vrot.slane %v5727_v19, 9  ;;  %v5730_v26 = vld [vmem:[%s6730_s23 + $0xa8] sm:$0xe] }
  0xc9   : > { %6452 = vmatmul.mubr.msk.bf16.gmra.mxu0 %vm658_vm3, %v7811_v43  ;;  %v7935_v1 = vsel %vm7060_vm7, %v2823_v30, %v2824_v56  ;;  %v7939_v43 = vsel %vm7060_vm7, %v5742_v57, %v2835_v53  ;;  %v2837_v20 = vrot.slane %v2835_v53, 4  ;;  %v2842_v62 = vrot.slane %v9816_v51, 5  ;;  %v5732_v57 = vld [vmem:[%s6730_s23 + $0xc0] sm:$0xe]  ;;  %v6650_v19 = vld [vmem:[%s6730_s23 + $0xa8] sm:$0xff]  }
  0xca   : > { %6455 = vmatprep.mubr.msk.bf16.mxu0 %vm658_vm3, %v7818_v54  ;;  %v7947_v14 = vsel %vm7060_vm7, %v2830_v13, %v2831_v6  ;;  %v9817_v54 = vld [vmem:[#allocation8_spill] sm:$0xff]  ;;  %v5744_v56 = vrot.slane %v5728_v60, 9  ;;  %v2852_v53 = vrot.slane %v9819_v36, 5  ;;  %v5745_v60 = vrot.slane %v5729_v38, 9  ;;  %v9822_v38 = vld [vmem:[#allocation13_spill] sm:$0xff] }
  0xcb   : > { %v2845_v29 = vrot.slane %v9817_v54, 5  ;;  %v7956_v2 = vsel %vm7060_vm7, %v2837_v20, %v2838_v17  ;;  %v7960_v59 = vsel %vm7060_vm7, %v5743_v63, %v2842_v62  ;;  %v2844_v6 = vrot.slane %v2842_v62, 4  ;;  %v5731_v13 = vld [vmem:[%s6730_s23 + $0xb4] sm:$0xe]  ;;  %v9820_v17 = vld [vmem:[#allocation10_spill] sm:$0xff] }
  0xcc   : > { %6418 = vmatmul.mubr.msk.bf16.gmra.mxu1 %vm658_vm3, %v6648_v58  ;;  %v9818_v58 = vld [vmem:[#allocation7_spill] sm:$0xff]  ;;  %v2856_v63 = vrot.slane %v9820_v17, 5  ;;  %v9821_v20 = vld [vmem:[#allocation2_spill] sm:$0xff]  ;;  %v5746_v62 = vrot.slane %v5730_v26, 9  ;;  %v2863_v36 = vrot.slane %v9822_v38, 5  ;;  %v5747_v26 = vrot.slane %v5731_v13, 9 }
  0xcd   : > { %6421 = vmatprep.mubr.msk.bf16.mxu1 %vm658_vm3, %v6649_v27  ;;  %v2849_v30 = vrot.slane %v9818_v58, 5  ;;  %v7970_v50 = vsel %vm7060_vm7, %v2844_v6, %v2845_v29  ;;  %v2859_v51 = vrot.slane %v9821_v20, 5  ;;  %v9823_v17 = vld [vmem:[#allocation14_spill] sm:$0xff]  ;;  %v6651_v27 = vld [vmem:[%s6730_s23 + $0xb4] sm:$0xff]   ;;  %v2776_v39 = vsel %vm7060_vm7, %v7837_v44, %v2775_v34  ;;  %v8187_v7 = vld [vmem:[%s6730_s23 + $0x4c] sm:$0xf] }
  0xce   : > { %v7985_v29 = vsel %vm7060_vm7, %v5745_v60, %v2856_v63  ;;  %v2858_v6 = vrot.slane %v2856_v63, 4  ;;  %v2866_v20 = vrot.slane %v9823_v17, 5  ;;  %v2865_v38 = vrot.slane %v2863_v36, 4  ;;  %v6670_v44 = vld [vmem:[%s6730_s23 + $0x20] sm:$0x1] }
  0xcf   : > { %v7978_v54 = vsel %vm7060_vm7, %v5744_v56, %v2849_v30  ;;  %v2851_v58 = vrot.slane %v2849_v30, 4  ;;  %v7997_v30 = vsel %vm7060_vm7, %v5746_v62, %v2863_v36  ;;  %v2870_v60 = vrot.slane %v9824_v55, 5 }
  0xd0   : > { %v5748_v63 = vrot.slane %v5732_v57, 9  ;;  %v8013_v55 = vsel %vm7060_vm7, %v2865_v38, %v2866_v20  ;;  %v2877_v57 = vrot.slane %v7732_v22, 5  ;;  %v2773_v22 = vsel %vm7060_vm7, %v5733_v37, %v2772_v46  ;;  %v6655_v38 = vld [vmem:[%s6730_s23 + $0x30] sm:$0xff]  }
  0xd1   : > { %6456 = vmatmul.mubr.msk.bf16.gmra.mxu0 %vm658_vm3, %v7820_v42  ;;  %v7993_v56 = vsel %vm7060_vm7, %v2851_v58, %v2852_v53  ;;  %v8006_v42 = vsel %vm7060_vm7, %v2858_v6, %v2859_v51  ;;  %v2873_v53 = vrot.slane %v7723_v4, 5  ;;  %v2872_v58 = vrot.slane %v2870_v60, 4 }
  0xd2   : > { %6459 = vmatprep.mubr.msk.bf16.mxu0 %vm658_vm3, %v7826_v15  ;;  %v8017_v15 = vsel %vm7060_vm7, %v5747_v26, %v2870_v60  ;;  %v2880_v51 = vrot.slane %v7744_v45, 5  ;;  %v5718_v45 = vld [vmem:[%s6730_s23 + $0x18] sm:$0xe]  ;;  %v8057_v9 = vsel %vm7060_vm7, %v5748_v63, %v2877_v57  ;;  %v2879_v46 = vrot.slane %v2877_v57, 4  ;;  %v6654_v26 = vld [vmem:[%s6730_s23 + $0x24] sm:$0xff]  }
  0xd3   : > { %v8045_v32 = vsel %vm7060_vm7, %v2872_v58, %v2873_v53  ;;  %v5734_v37 = vrot.slane %v5718_v45, 9  ;;  %v5750_v34 = vcombine.low %v2773_v22, %v2776_v39  ;;  %v9825_v60 = vld [vmem:[#allocation9_spill] sm:$0xff] }
  0xd4   : > { %6422 = vmatmul.mubr.msk.bf16.gmra.mxu1 %vm658_vm3, %v6650_v19  ;;  %v5700_v19 = vcombine.low %v2401_v16, %v2411_v21  ;;  %v8062_v47 = vsel %vm7060_vm7, %v2879_v46, %v2880_v51  ;;  %v2782_v21 = vrot.slane %v6670_v44, 5  ;;  %v4536_v53 = vsel %vm707_vm0, %v9825_v60, 0  ;;  %v5847_v63 = vld [vmem:[%s6730_s23 + $0x18] sm:$0xf]  ;;  %v5848_v57 = vld [vmem:[%s6730_s23 + $0x1c] sm:$0xf] }
  0xd5   : > { %6425 = vmatprep.mubr.msk.bf16.mxu1 %vm658_vm3, %v6651_v27  ;;  %v6669_v27 = vld [vmem:[%s6730_s23 + $0x1c] sm:$0xf]  ;;  %v5850_v51 = vld [vmem:[%s6730_s23 + $0x24] sm:$0xf]  ;;  %v3584_v45 = vshrl.u32 %v5847_v63, 16  ;;  %v3593_v39 = vshll.u32 %v5848_v57, 16 }
  0xd6   : > { %v2779_v36 = vrot.slane %v6669_v27, 5  ;;  %v3587_v27 = vshll.u32 %v5847_v63, 16  ;;  %v3608_v46 = vshrl.u32 %v5850_v51, 16  ;;  %v6657_v44 = vld [vmem:[%s6730_s23 + $0x48] sm:$0xff]   ;;  %v5928_v60 = vld [vmem:[%s6730_s23 + $0x18] sm:$0xe] }
  0xd7   : > { %v8103_v63 = vld [vmem:[%s6730_s23 + $0x2c] sm:$0x1] }
  0xd8   : > { %v2781_v16 = vrot.slane %v2779_v36, 4  ;;  %v2780_v17 = vsel %vm7060_vm7, %v5734_v37, %v2779_v36  ;;  %v8087_v36 = vld [vmem:[%s6730_s23 + $0x28] sm:$0xf]  ;;  %v6656_v37 = vld [vmem:[%s6730_s23 + $0x3c] sm:$0xff]   ;;  %v3610_v18 = vrot.slane %v3608_v46, 4 }
  0xd9   : > { %6460 = vmatmul.mubr.msk.bf16.gmra.mxu0 %vm658_vm3, %v5700_v19  ;;  %v9826_v19 = vld [vmem:[#allocation11_spill] sm:$0xff] }
  0xda   : > { %6499 = vmatprep.mubr.msk.bf16.mxu0 %vm658_vm3, %v6653_v49  ;;  %v2783_v20 = vsel %vm7060_vm7, %v2781_v16, %v2782_v21  ;;  %v4066_v22 = vsel %vm707_vm0, %v9826_v19, 0  ;;  %v3597_v49 = vshrl.u32 %v5848_v57, 16  ;;  %v3621_v16 = vshrl.u32 %v8087_v36, 16  ;;  %v5849_v21 = vld [vmem:[%s6730_s23 + $0x20] sm:$0x1] }
  0xdb   : > { %v5751_v58 = vcombine.low %v2780_v17, %v2783_v20  ;;  %v3586_v17 = vrot.slane %v3584_v45, 4  ;;  %v3589_v20 = vrot.slane %v3587_v27, 5  ;;  %v5853_v19 = vld [vmem:[%s6730_s23 + $0x30] sm:$0xf]  ;;  %v3603_v45 = vshll.u32 %v5849_v21, 16 }
  0xdc   : > { %6426 = vmatmul.mubr.msk.bf16.gmra.mxu1 %vm658_vm3, %v6652_v52  ;;  %v3611_v52 = vshll.u32 %v5850_v51, 16  ;;  %v3623_v51 = vrot.slane %v3621_v16, 4  ;;  %v5944_v27 = vrot.slane %v5928_v60, 9  ;;  %v4330_v46 = vrot.slane %v5849_v21, 5  ;;  %v5929_v16 = vld [vmem:[%s6730_s23 + $0x24] sm:$0xe] }
  0xdd   : > { %6465 = vmatprep.mubr.msk.bf16.mxu1 %vm658_vm3, %v5750_v34  ;;  %v3617_v34 = vshll.u32 %v8087_v36, 16  ;;  %v6658_v21 = vld [vmem:[%s6730_s23 + $0x54] sm:$0xff]   ;;  %v3635_v10 = vshll.u32 %v5853_v19, 16  ;;  %v6659_v60 = vld [vmem:[%s6730_s23 + $0x60] sm:$0xff]  }
  0xde   : > { %v3613_v11 = vrot.slane %v3611_v52, 5  ;;  %v3627_v52 = vshll.u32 %v8103_v63, 16 }
  0xe1   : > { %6500 = vmatmul.mubr.msk.bf16.vlgmr.msra.gmra.mxu0 %vm658_vm3, %v6654_v26  ;;  %v8099_v26 = vrot.slane %v3593_v39, 5 }
  0xe2   : > { %6566 = vmatpush3.bf16.msra.mxu0 %v4536_v53  ;;  %6503 = vmatprep.mubr.msk.bf16.mxu0 %vm658_vm3, %v6655_v38  ;;  %v3599_v38 = vrot.slane %v3597_v49, 4  ;;  %v4327_v53 = vrot.slane %v5848_v57, 5  ;;  %v8113_v57 = vld [vmem:[%s6730_s23 + $0x34] sm:$0xf] }
  0xe4   : > { %6466 = vmatmul.mubr.msk.bf16.vlgmr.msra.gmra.mxu1 %vm658_vm3, %v5751_v58  ;;  %v8108_v58 = vrot.slane %v3617_v34, 5  ;;  %v3600_v39 = vor.u32 %v3599_v38, %v8099_v26  ;;  %v4329_v49 = vrot.slane %v4327_v53, 4  ;;  %v3614_v34 = vor.u32 %v3613_v11, %v3610_v18 }
  0xe5   : > { %6532 = vmatpush3.bf16.msra.mxu1 %v4066_v22  ;;  %6469 = vmatprep.mubr.msk.bf16.mxu1 %vm658_vm3, %v5752_v5  ;;  %v8106_v5 = vpop.f32.mrf.mxu0  ;;  %v3590_v22 = vor.u32 %v3589_v20, %v3586_v17  ;;  %v3632_v17 = vshrl.u32 %v5853_v19, 16  ;;  %v3645_v38 = vshrl.u32 %v8113_v57, 16  ;;  %v8138_v61 = vsel %vm7060_vm7, %v5944_v27, %v4327_v53  ;;  %v5856_v19 = vld [vmem:[%s6730_s23 + $0x3c] sm:$0xf] }
  0xe6   : > { %v3624_v41 = vor.u32 %v3623_v51, %v8108_v58  ;;  %v3601_v8 = vrot.slane %v3600_v39, 4  ;;  %v3629_v11 = vrot.slane %v3627_v52, 5  ;;  %v5945_v51 = vrot.slane %v5929_v16, 9  ;;  %v8152_v39 = vld [vmem:[%s6730_s23 + $0x38] sm:$0x1] }
  0xe7   : > { %v8130_v20 = vpop.f32.mrf.mxu0  ;;  %v3591_v18 = vrot.slane %v3590_v22, 4  ;;  %v3615_v12 = vrot.slane %v3614_v34, 4  ;;  %v4337_v22 = vrot.slane %v8103_v63, 5  ;;  %v3647_v52 = vrot.slane %v3645_v38, 4 }
  0xe8   : > { %v3625_v27 = vrot.slane %v3624_v41, 4  ;;  %v3656_v34 = vshrl.u32 %v5856_v19, 16  ;;  %v3659_v16 = vshll.u32 %v5856_v19, 16  ;;  %v8165_v41 = vld [vmem:[%s6730_s23 + $0x40] sm:$0xf] }
  0xe9   : > { %6504 = vmatmul.mubr.msk.bf16.gmra.mxu0 %vm658_vm3, %v6656_v37  ;;  %v8149_v53 = vpop.f32.mrf.mxu0  ;;  %v3596_v63 = vsel %vm6774_vm4, %v3591_v18, %v8099_v26  ;;  %v3620_v26 = vsel %vm6774_vm4, %v3615_v12, %v8108_v58  ;;  %v5930_v18 = vld [vmem:[%s6730_s23 + $0x30] sm:$0xe]  ;;  %v3665_v24 = vshll.u32 %v8165_v41, 16  ;;  %v3669_v33 = vshrl.u32 %v8165_v41, 16 }
  0xea   : > { %6507 = vmatprep.mubr.msk.bf16.mxu0 %vm658_vm3, %v6657_v44  ;;  %v8121_v37 = vpop.f32.mrf.mxu1  ;;  %v4334_v44 = vrot.slane %v8087_v36, 5  ;;  %v3605_v36 = vrot.slane %v3603_v45, 5  ;;  %v3634_v45 = vrot.slane %v3632_v17, 4  ;;  %v3630_v58 = vsel %vm6774_vm4, %v3625_v27, %v3629_v11 }
  0xeb   : > { %9827 = vst [vmem:[#allocation4_spill] sm:$0xff] %v8121_v37  ;;  %v8194_v12 = vpop.f32.mrf.mxu0  ;;  %v3661_v19 = vrot.slane %v3659_v16, 5  ;;  %v3693_v11 = vshrl.u32 %v8187_v7, 16 }
  0xec   : > { %6470 = vmatmul.mubr.msk.bf16.gmra.mxu1 %vm658_vm3, %v5753_v48  ;;  %v3641_v48 = vshll.u32 %v8113_v57, 16  ;;  %v8145_v6 = vpop.f32.mrf.mxu1  ;;  %v4336_v4 = vrot.slane %v4334_v44, 4  ;;  %v3606_v17 = vsel %vm6774_vm4, %v3601_v8, %v3605_v36  ;;  %v4341_v36 = vrot.slane %v8113_v57, 5  ;;  %v6661_v8 = vld [vmem:[%s6730_s23 + $0x78] sm:$0xff]  }
  0xed   : > { %6473 = vmatprep.mubr.msk.bf16.mxu1 %vm658_vm3, %v5754_v40  ;;  %v8142_v40 = vsel %vm7060_vm7, %v4329_v49, %v4330_v46  ;;  %9828 = vst [vmem:[#allocation3_spill] sm:$0xff] %v8145_v6  ;;  %v3637_v49 = vrot.slane %v3635_v10, 5  ;;  %v8208_v27 = vcombine.low %v3596_v63, %v3606_v17  ;;  %v8210_v57 = vcombine.low %v3620_v26, %v3630_v58  ;;  %v8224_v17 = vld [vmem:[%s6730_s23 + $0x58] sm:$0xf]  ;;  %v8230_v58 = vld [vmem:[%s6730_s23 + $0x44] sm:$0x1] }
  0xee   : > { %v8154_v46 = vrot.slane %v3641_v48, 5  ;;  %v8171_v10 = vpop.f32.mrf.mxu1  ;;  %v8178_v48 = vsel %vm7060_vm7, %v5945_v51, %v4334_v44  ;;  %v8182_v38 = vsel %vm7060_vm7, %v4336_v4, %v4337_v22  ;;  %v3658_v51 = vrot.slane %v3656_v34, 4  ;;  %v5862_v34 = vld [vmem:[%s6730_s23 + $0x54] sm:$0xf] }
  0xef   : > { %9829 = vst [vmem:[#allocation6_spill] sm:$0xff] %v8171_v10  ;;  %v3638_v44 = vor.u32 %v3637_v49, %v3634_v45  ;;  %v3683_v22 = vshll.u32 %v5859_v3, 16  ;;  %v4343_v13 = vrot.slane %v4341_v36, 4  ;;  %v4344_v63 = vrot.slane %v8152_v39, 5  ;;  %v5931_v49 = vld [vmem:[%s6730_s23 + $0x3c] sm:$0xe] }
  0xf0   : > { %v3648_v4 = vor.u32 %v3647_v52, %v8154_v46  ;;  %v8206_v45 = vpop.f32.mrf.mxu1  ;;  %v5946_v52 = vrot.slane %v5930_v18, 9  ;;  %v3662_v18 = vor.u32 %v3661_v19, %v3658_v51  ;;  %v9832_v6 = vcombine.low %v7919_v28, %v7935_v1 }
  0xf1   : > { %6508 = vmatmul.mubr.msk.bf16.gmra.mxu0 %vm658_vm3, %v6658_v21  ;;  %v3689_v21 = vshll.u32 %v8187_v7, 16  ;;  %9830 = vst [vmem:[#allocation5_spill] sm:$0xff] %v8206_v45  ;;  %v3685_v45 = vrot.slane %v3683_v22, 5  ;;  %v3704_v51 = vshrl.u32 %v5862_v34, 16  ;;  %v3707_v19 = vshll.u32 %v5862_v34, 16 }
  0xf2   : > { %6511 = vmatprep.mubr.msk.bf16.mxu0 %vm658_vm3, %v6659_v60  ;;  %v3651_v60 = vshll.u32 %v8152_v39, 16  ;;  %v8227_v26 = vrot.slane %v3648_v4, 4  ;;  %v3695_v39 = vrot.slane %v3693_v11, 4  ;;  %v8265_v22 = vsel %vm7060_vm7, %v4343_v13, %v4344_v63 }
  0xf3   : > { %v8235_v10 = vrot.slane %v3689_v21, 5  ;;  %v9834_v21 = vcombine.low %v7928_v25, %v7947_v14  ;;  %v4348_v25 = vrot.slane %v8165_v41, 5  ;;  %v6663_v14 = vld [vmem:[%s6730_s23 + $0x90] sm:$0xff]   ;;  %v5947_v1 = vrot.slane %v5931_v49, 9  ;;  %v5865_v41 = vld [vmem:[%s6730_s23 + $0x60] sm:$0xf] }
  0xf4   : > { %6474 = vmatmul.mubr.msk.bf16.gmra.mxu1 %vm658_vm3, %v5755_v35  ;;  %v6660_v35 = vld [vmem:[%s6730_s23 + $0x6c] sm:$0xff]   ;;  %v8220_v62 = vrot.slane %v3651_v60, 5  ;;  %v3706_v37 = vrot.slane %v3704_v51, 4 }
  0xf5   : > { %6477 = vmatprep.mubr.msk.bf16.mxu1 %vm658_vm3, %v5756_v23  ;;  %v3680_v23 = vshrl.u32 %v5859_v3, 16  ;;  %v8218_v3 = vrot.slane %v3638_v44, 4  ;;  %v3671_v44 = vrot.slane %v3669_v33, 4  ;;  %v3717_v33 = vshrl.u32 %v8224_v17, 16 }
  0xf6   : > { %v8216_v16 = vpop.f32.mrf.mxu0  ;;  %v3696_v13 = vor.u32 %v3695_v39, %v8235_v10  ;;  %v4355_v39 = vrot.slane %v8187_v7, 5  ;;  %v9838_v7 = vcombine.low %v7939_v43, %v7956_v2  ;;  %v9840_v43 = vcombine.low %v7960_v59, %v7970_v50  ;;  %v6664_v2 = vld [vmem:[%s6730_s23 + $0x9c] sm:$0xff]  }
  0xf7   : > { %9831 = vst [vmem:[#allocation8_spill] sm:$0xff] %v8216_v16  ;;  %v3682_v60 = vrot.slane %v3680_v23, 4  ;;  %v6662_v23 = vld [vmem:[%s6730_s23 + $0x84] sm:$0xff]   ;;  %v8292_v16 = vld [vmem:[%s6730_s23 + $0x5c] sm:$0x1]  ;;  %v4362_v59 = vrot.slane %v8224_v17, 5 }
  0xf8   : > { %v8253_v28 = vpop.f32.mrf.mxu0 }
  0xf9   : > { %6512 = vmatmul.mubr.msk.bf16.gmra.mxu0 %vm658_vm3, %v6660_v35  ;;  %v8232_v35 = vrot.slane %v3665_v24, 5  ;;  %v3713_v24 = vshll.u32 %v8224_v17, 16  ;;  %9835 = vst [vmem:[#allocation12_spill] sm:$0xff] %v8253_v28  ;;  %v3709_v28 = vrot.slane %v3707_v19, 5 }
  0xfa   : > { %6515 = vmatprep.mubr.msk.bf16.mxu0 %vm658_vm3, %v6661_v8  ;;  %v8241_v4 = vpop.f32.mrf.mxu1  ;;  %v8244_v8 = vld [vmem:[%s6730_s23 + $0x50] sm:$0x1]  ;;  %v8285_v49 = vpop.f32.mrf.mxu0 }
  0xfb   : > { %9833 = vst [vmem:[#allocation7_spill] sm:$0xff] %v8241_v4  ;;  %v3672_v34 = vor.u32 %v3671_v44, %v8232_v35  ;;  %v8275_v4 = vrot.slane %v3662_v18, 4  ;;  %v8282_v11 = vrot.slane %v3713_v24, 5  ;;  %v3719_v44 = vrot.slane %v3717_v33, 4  ;;  %9837 = vst [vmem:[#allocation2_spill] sm:$0xff] %v8285_v49 }
  0xfc   : > { %6478 = vmatmul.mubr.msk.bf16.gmra.mxu1 %vm658_vm3, %v9832_v6  ;;  %v8261_v6 = vsel %vm7060_vm7, %v5946_v52, %v4341_v36  ;;  %v3686_v36 = vor.u32 %v3685_v45, %v3682_v60  ;;  %v3699_v52 = vshll.u32 %v8244_v8, 16  ;;  %v8280_v63 = vpop.f32.mrf.mxu1  ;;  %v4350_v18 = vrot.slane %v4348_v25, 4  ;;  %v5932_v24 = vld [vmem:[%s6730_s23 + $0x48] sm:$0xe] }
  0xfd   : > { %6481 = vmatprep.mubr.msk.bf16.mxu1 %vm658_vm3, %v9834_v21  ;;  %v3675_v21 = vshll.u32 %v8230_v58, 16  ;;  %9836 = vst [vmem:[#allocation10_spill] sm:$0xff] %v8280_v63  ;;  %v4351_v60 = vrot.slane %v8230_v58, 5  ;;  %v3673_v51 = vrot.slane %v3672_v34, 4  ;;  %v3728_v33 = vshrl.u32 %v5865_v41, 16 }
  0xfe   : > { %v8298_v63 = vsel %vm7060_vm7, %v5947_v1, %v4348_v25  ;;  %v3687_v45 = vrot.slane %v3686_v36, 4  ;;  %v3697_v49 = vrot.slane %v3696_v13, 4  ;;  %v3701_v58 = vrot.slane %v3699_v52, 5  ;;  %v8313_v36 = vld [vmem:[%s6730_s23 + $0x64] sm:$0xf]  ;;  %v8320_v13 = vpop.f32.mrf.mxu0 }
  0xff   : > { %v3677_v19 = vrot.slane %v3675_v21, 5  ;;  %v3668_v34 = vsel %vm6774_vm4, %v8275_v4, %v8232_v35  ;;  %v3710_v21 = vor.u32 %v3709_v28, %v3706_v37  ;;  %v3720_v1 = vor.u32 %v3719_v44, %v8282_v11  ;;  %9841 = vst [vmem:[#allocation14_spill] sm:$0xff] %v8320_v13  ;;  %v5933_v28 = vld [vmem:[%s6730_s23 + $0x54] sm:$0xe]  ;;  %v6668_v13 = vld [vmem:[%s6730_s23 + $0xcc] sm:$0xff]  }
 0x100   : > { %v3723_v25 = vshll.u32 %v8292_v16, 16  ;;  %v8324_v52 = vsel %vm7060_vm7, %v4350_v18, %v4351_v60  ;;  %v5948_v35 = vrot.slane %v5932_v24, 9  ;;  %v4357_v37 = vrot.slane %v4355_v39, 4 }
 0x101   : > { %6516 = vmatmul.mubr.msk.bf16.gmra.mxu0 %vm658_vm3, %v6662_v23  ;;  %v3731_v23 = vshll.u32 %v5865_v41, 16  ;;  %v4358_v4 = vrot.slane %v8244_v8, 5  ;;  %v6665_v41 = vld [vmem:[%s6730_s23 + $0xa8] sm:$0xff]   ;;  %v3678_v44 = vsel %vm6774_vm4, %v3673_v51, %v3677_v19  ;;  %v3730_v50 = vrot.slane %v3728_v33, 4 }
 0x102   : > { %6519 = vmatprep.mubr.msk.bf16.mxu0 %vm658_vm3, %v6663_v14  ;;  %v8304_v14 = vpop.f32.mrf.mxu1  ;;  %v3702_v18 = vsel %vm6774_vm4, %v3697_v49, %v3701_v58  ;;  %v3737_v60 = vshll.u32 %v8313_v36, 16  ;;  %v3741_v8 = vshrl.u32 %v8313_v36, 16  ;;  %v3721_v51 = vrot.slane %v3720_v1, 4  ;;  %v8342_v33 = vld [vmem:[%s6730_s23 + $0x68] sm:$0x1] }
 0x103   : > { %9839 = vst [vmem:[#allocation13_spill] sm:$0xff] %v8304_v14  ;;  %v3711_v14 = vrot.slane %v3710_v21, 4  ;;  %v3725_v17 = vrot.slane %v3723_v25, 5  ;;  %v5949_v19 = vrot.slane %v5933_v28, 9  ;;  %v9844_v49 = vsel %vm6774_vm4, %v8227_v26, %v8220_v62  ;;  %v5868_v25 = vld [vmem:[%s6730_s23 + $0x6c] sm:$0xf] }
 0x104   : > { %6482 = vmatmul.mubr.msk.bf16.gmra.mxu1 %vm658_vm3, %v9838_v7  ;;  %v3733_v7 = vrot.slane %v3731_v23, 5  ;;  %v8339_v24 = vpop.f32.mrf.mxu1  ;;  %v8363_v21 = vsel %vm7060_vm7, %v5948_v35, %v4355_v39  ;;  %v8367_v1 = vsel %vm7060_vm7, %v4357_v37, %v4358_v4  ;;  %v8370_v62 = vcombine.low %v3668_v34, %v3678_v44  ;;  %v5934_v4 = vld [vmem:[%s6730_s23 + $0x60] sm:$0xe]  ;;  %v5874_v44 = vld [vmem:[%s6730_s23 + $0x84] sm:$0xf] }
 0x105   : > { %6485 = vmatprep.mubr.msk.bf16.mxu1 %vm658_vm3, %v9840_v43  ;;  %v3692_v43 = vsel %vm6774_vm4, %v3687_v45, %v8235_v10  ;;  %9842 = vst [vmem:[#allocation15_spill] sm:$0xff] %v8339_v24  ;;  %v9845_v45 = vsel %vm6774_vm4, %v8218_v3, %v8154_v46  ;;  %v4364_v46 = vrot.slane %v4362_v59, 4  ;;  %v4365_v3 = vrot.slane %v8292_v16, 5 }
 0x106   : > { %v8357_v23 = vcombine.low %v9845_v45, %v9844_v49  ;;  %9846 = vst [vmem:[#allocation11_spill] sm:$0xff] %v8370_v62  ;;  %v3734_v26 = vor.u32 %v3733_v7, %v3730_v50  ;;  %v8377_v28 = vcombine.low %v3692_v43, %v3702_v18  ;;  %v8379_v39 = vrot.slane %v3737_v60, 5 }
 0x107   : > { %v8345_v10 = vpop.f32.mrf.mxu0  ;;  %v8381_v35 = vrot.slane %v3741_v8, 4  ;;  %v3747_v37 = vshll.u32 %v8342_v33, 16  ;;  %v9848_v34 = vcombine.low %v7978_v54, %v7993_v56  ;;  %v3716_v50 = vsel %vm6774_vm4, %v3711_v14, %v8282_v11  ;;  %v5871_v54 = vld [vmem:[%s6730_s23 + $0x78] sm:$0xf] }
 0x108   : > { %9843 = vst [vmem:[#allocation9_spill] sm:$0xff] %v8345_v10  ;;  %9847 = vst [vmem:[#allocation16_spill] sm:$0xff] %v8377_v28  ;;  %v3726_v7 = vsel %vm6774_vm4, %v3721_v51, %v3725_v17  ;;  %v8401_v43 = vsel %vm7060_vm7, %v5949_v19, %v4362_v59  ;;  %v9850_v56 = vcombine.low %v7985_v29, %v8006_v42  ;;  %v3752_v60 = vshrl.u32 %v5868_v25, 16  ;;  %v8413_v51 = vld [vmem:[%s6730_s23 + $0x7c] sm:$0xf]  ;;  %v6667_v59 = vld [vmem:[%s6730_s23 + $0xc0] sm:$0xff]  }
 0x109   : > { %6520 = vmatmul.mubr.msk.bf16.gmra.mxu0 %vm658_vm3, %v6664_v2  ;;  %v8375_v2 = vld [vmem:[%s6730_s23 + $0x70] sm:$0xf]  ;;  %v8408_v18 = vpop.f32.mrf.mxu0  ;;  %v3755_v8 = vshll.u32 %v5868_v25, 16  ;;  %v8418_v17 = vsel %vm7060_vm7, %v4364_v46, %v4365_v3  ;;  %v8420_v29 = vrot.slane %v3734_v26, 4  ;;  %v5950_v42 = vrot.slane %v5934_v4, 9 }
 0x10a   : > { %6523 = vmatprep.mubr.msk.bf16.mxu0 %vm658_vm3, %v6665_v41  ;;  %v6666_v41 = vld [vmem:[%s6730_s23 + $0xb4] sm:$0xff]   ;;  %9851 = vst [vmem:[#allocation18_spill] sm:$0xff] %v8408_v18  ;;  %v3761_v11 = vshll.u32 %v8375_v2, 16  ;;  %v3765_v14 = vshrl.u32 %v8375_v2, 16  ;;  %v4369_v19 = vrot.slane %v8313_v36, 5  ;;  %v8423_v49 = vcombine.low %v3716_v50, %v3726_v7 }
 0x10b   : > { %v3744_v45 = vor.u32 %v8381_v35, %v8379_v39  ;;  %v8427_v25 = vrot.slane %v3747_v37, 5  ;;  %v3776_v46 = vshrl.u32 %v5871_v54, 16  ;;  %v3779_v3 = vshll.u32 %v5871_v54, 16  ;;  %v8439_v4 = vld [vmem:[%s6730_s23 + $0x88] sm:$0xf]  ;;  %v8442_v35 = vpop.f32.mrf.mxu0 }
 0x10c   : > { %6486 = vmatmul.mubr.msk.bf16.gmra.mxu1 %vm658_vm3, %v9848_v34  ;;  %v8389_v16 = vpop.f32.mrf.mxu1  ;;  %9852 = vst [vmem:[#allocation19_spill] sm:$0xff] %v8423_v49  ;;  %v4372_v34 = vrot.slane %v8342_v33, 5  ;;  %v3785_v36 = vshll.u32 %v8413_v51, 16  ;;  %v3789_v26 = vshrl.u32 %v8413_v51, 16  ;;  %9854 = vst [vmem:[#allocation21_spill] sm:$0xff] %v8442_v35  ;;  %v3754_v33 = vrot.slane %v3752_v60, 4 }
 0x10d   : > { %9849 = vst [vmem:[#allocation17_spill] sm:$0xff] %v8389_v16  ;;  %6489 = vmatprep.mubr.msk.bf16.mxu1 %vm658_vm3, %v9850_v56  ;;  %v8431_v56 = vld [vmem:[%s6730_s23 + $0x74] sm:$0x1]  ;;  %v3757_v37 = vrot.slane %v3755_v8, 5  ;;  %v8444_v50 = vrot.slane %v3761_v11, 5  ;;  %v3767_v7 = vrot.slane %v3765_v14, 4  ;;  %v9855_v54 = vcombine.low %v7997_v30, %v8013_v55  ;;  %v8472_v49 = vpop.f32.mrf.mxu0 }
 0x10e   : > { %v8434_v58 = vpop.f32.mrf.mxu1  ;;  %v4371_v16 = vrot.slane %v4369_v19, 4  ;;  %v8457_v60 = vld [vmem:[%s6730_s23 + $0x80] sm:$0x1]  ;;  %v8460_v8 = vld [vmem:[%s6730_s23 + $0x6c] sm:$0xe]  ;;  %v3800_v11 = vshrl.u32 %v5874_v44, 16 }
 0x10f   : > { %9853 = vst [vmem:[#allocation20_spill] sm:$0xff] %v8434_v58  ;;  %v8453_v58 = vsel %vm7060_vm7, %v5950_v42, %v4369_v19  ;;  %v3803_v14 = vshll.u32 %v5874_v44, 16  ;;  %v3813_v24 = vshrl.u32 %v8439_v4, 16  ;;  %v3778_v19 = vrot.slane %v3776_v46, 4  ;;  %9857 = vst [vmem:[#allocation23_spill] sm:$0xff] %v8472_v49 }
 0x110   : > { %v8468_v42 = vpop.f32.mrf.mxu1  ;;  %v3781_v35 = vrot.slane %v3779_v3, 5  ;;  %v8470_v18 = vrot.slane %v3785_v36, 5  ;;  %v3791_v10 = vrot.slane %v3789_v26, 4  ;;  %v9858_v44 = vcombine.low %v8017_v15, %v8045_v32  ;;  %v8491_v32 = vld [vmem:[%s6730_s23 + $0x8c] sm:$0x1] }
 0x111   : > { %6524 = vmatmul.mubr.msk.bf16.gmra.mxu0 %vm658_vm3, %v6666_v41  ;;  %v3771_v41 = vshll.u32 %v8431_v56, 16  ;;  %9856 = vst [vmem:[#allocation22_spill] sm:$0xff] %v8468_v42  ;;  %v3758_v30 = vor.u32 %v3757_v37, %v3754_v33  ;;  %v3768_v55 = vor.u32 %v3767_v7, %v8444_v50  ;;  %v3795_v46 = vshll.u32 %v8457_v60, 16  ;;  %v5936_v33 = vld [vmem:[%s6730_s23 + $0x78] sm:$0xe] }
 0x112   : > { %6527 = vmatprep.mubr.msk.bf16.mxu0 %vm658_vm3, %v6667_v59  ;;  %v3809_v59 = vshll.u32 %v8439_v4, 16  ;;  %v8482_v3 = vrot.slane %v3744_v45, 4  ;;  %v8486_v36 = vsel %vm7060_vm7, %v4371_v16, %v4372_v34  ;;  %v5951_v26 = vrot.slane %v8460_v8, 9  ;;  %v8496_v42 = vpop.f32.mrf.mxu1  ;;  %v5877_v8 = vld [vmem:[%s6730_s23 + $0x90] sm:$0xf] }
 0x113   : > { %v4383_v15 = vrot.slane %v8413_v51, 5  ;;  %v3802_v37 = vrot.slane %v3800_v11, 4  ;;  %v3805_v7 = vrot.slane %v3803_v14, 5  ;;  %9859 = vst [vmem:[#allocation24_spill] sm:$0xff] %v8496_v42  ;;  %v3773_v45 = vrot.slane %v3771_v41, 5 }
 0x114   : > { %6490 = vmatmul.mubr.msk.bf16.gmra.mxu1 %vm658_vm3, %v9855_v54  ;;  %v4376_v54 = vrot.slane %v8375_v2, 5  ;;  %v8494_v2 = vrot.slane %v3809_v59, 5  ;;  %v4379_v49 = vrot.slane %v8431_v56, 5  ;;  %v3782_v16 = vor.u32 %v3781_v35, %v3778_v19  ;;  %v8505_v59 = vld [vmem:[%s6730_s23 + $0x94] sm:$0xf] }
 0x115   : > { %6493 = vmatprep.mubr.msk.bf16.mxu1 %vm658_vm3, %v9858_v44  ;;  %v3815_v44 = vrot.slane %v3813_v24, 4  ;;  %v3792_v34 = vor.u32 %v3791_v10, %v8470_v18  ;;  %v3759_v51 = vrot.slane %v3758_v30, 4  ;;  %v3769_v11 = vrot.slane %v3768_v55, 4 }
 0x116   : > { %v4378_v62 = vrot.slane %v4376_v54, 4  ;;  %v3797_v14 = vrot.slane %v3795_v46, 5  ;;  %v9860_v24 = vcombine.low %v8138_v61, %v8142_v40  ;;  %v5952_v56 = vrot.slane %v5936_v33, 9 }
 0x117   : > { %v4385_v35 = vrot.slane %v4383_v15, 4  ;;  %v4386_v10 = vrot.slane %v8457_v60, 5  ;;  %v3819_v41 = vshll.u32 %v8491_v32, 16  ;;  %v3816_v30 = vor.u32 %v3815_v44, %v8494_v2 }
 0x118   : > { %v3824_v55 = vshrl.u32 %v5877_v8, 16  ;;  %v3827_v46 = vshll.u32 %v5877_v8, 16  ;;  %v9862_v61 = vcombine.low %v8057_v9, %v8062_v47  ;;  %v3783_v40 = vrot.slane %v3782_v16, 4 }
 0x119   : > { %v8501_v28 = vpop.f32.mrf.mxu0  ;;  %6528 = vmatmul.mubr.msk.bf16.gmra.mxu0 %vm658_vm3, %v6668_v13  ;;  %v3806_v13 = vor.u32 %v3805_v7, %v3802_v37  ;;  %v3793_v33 = vrot.slane %v3792_v34, 4  ;;  %v3833_v60 = vshll.u32 %v8505_v59, 16  ;;  %v3750_v37 = vsel %vm6774_vm4, %v8482_v3, %v8427_v25 }
 0x11a   : > { %6567 = vmatprep.mubr.msk.bf16.mxu0 %vm658_vm3, %v9860_v24  ;;  %v3837_v24 = vshrl.u32 %v8505_v59, 16  ;;  %v3764_v9 = vsel %vm6774_vm4, %v3759_v51, %v8444_v50  ;;  %v8537_v47 = vsel %vm7060_vm7, %v5951_v26, %v4376_v54  ;;  %v8541_v7 = vsel %vm7060_vm7, %v4378_v62, %v4379_v49  ;;  %v5937_v54 = vld [vmem:[%s6730_s23 + $0x84] sm:$0xe]  ;;  %v9901_v31 = vld [vmem:[#allocation24_spill] sm:$0xff] }
 0x11b   : > { %v8513_v19 = vpop.f32.mrf.mxu0  ;;  %v8549_v25 = vsel %vm7060_vm7, %v5952_v56, %v4383_v15  ;;  %v8553_v50 = vsel %vm7060_vm7, %v4385_v35, %v4386_v10  ;;  %v3821_v3 = vrot.slane %v3819_v41, 5  ;;  %v3807_v62 = vrot.slane %v3806_v13, 4  ;;  %v8577_v13 = vld [vmem:[%s6730_s23 + $0x98] sm:$0x1] }
 0x11c   : > { %9861 = vst [vmem:[#allocation25_spill] sm:$0xff] %v8513_v19  ;;  %v8516_v42 = vpop.f32.mrf.mxu1  ;;  %6494 = vmatmul.mubr.msk.bf16.gmra.mxu1 %vm658_vm3, %v9862_v61  ;;  %v3817_v49 = vrot.slane %v3816_v30, 4  ;;  %v3826_v16 = vrot.slane %v3824_v55, 4  ;;  %v3829_v34 = vrot.slane %v3827_v46, 5  ;;  %v3788_v15 = vsel %vm6774_vm4, %v3783_v40, %v8470_v18  ;;  %v5880_v30 = vld [vmem:[%s6730_s23 + $0x9c] sm:$0xf] }
 0x11d   : > { %v8524_v19 = vpop.f32.mrf.mxu0  ;;  %6533 = vmatprep.mubr.msk.bf16.mxu1 %vm658_vm3, %v8208_v27  ;;  %v3774_v27 = vsel %vm6774_vm4, %v3769_v11, %v3773_v45  ;;  %v3798_v45 = vsel %vm6774_vm4, %v3793_v33, %v3797_v14  ;;  %v8565_v51 = vrot.slane %v3833_v60, 5  ;;  %v3839_v11 = vrot.slane %v3837_v24, 4  ;;  %v8608_v24 = vld [vmem:[%s6730_s23 + $0xa0] sm:$0xf] }
 0x11e   : > { %v8543_v44 = vpop.f32.mrf.mxu1  ;;  %v9863_v35 = vcombine.low %v8178_v48, %v8182_v38  ;;  %v5966_v10 = vcombine.low %v8401_v43, %v8418_v17  ;;  %v5967_v41 = vcombine.low %v8453_v58, %v8486_v36  ;;  %v5953_v18 = vrot.slane %v5937_v54, 9 }
 0x11f   : > { %v8556_v26 = vpop.f32.mrf.mxu0  ;;  %v4390_v14 = vrot.slane %v8439_v4, 5  ;;  %v9864_v48 = vcombine.low %v8261_v6, %v8265_v22  ;;  %v9865_v38 = vsel %vm6774_vm4, %v8420_v29, %v8379_v39  ;;  %v8593_v61 = vcombine.low %v3764_v9, %v3774_v27  ;;  %v5938_v29 = vld [vmem:[%s6730_s23 + $0x90] sm:$0xe]  ;;  %v9872_v4 = vld [vmem:[#allocation2_spill] sm:$0xff] }
 0x120   : > { %v8558_v8 = vpop.f32.mrf.mxu1  ;;  %v8591_v46 = vcombine.low %v9865_v38, %v3750_v37  ;;  %v8599_v60 = vcombine.low %v3788_v15, %v3798_v45  ;;  %v3812_v6 = vsel %vm6774_vm4, %v3807_v62, %v8494_v2  ;;  %v3822_v22 = vsel %vm6774_vm4, %v3817_v49, %v3821_v3 }
 0x121   : > { %v6365_v56 = vpop.f32.mrf.mxu0  ;;  %6568 = vmatmul.mubr.msk.bf16.vlgmr.msra.gmra.mxu0 %vm658_vm3, %v9863_v35  ;;  %v3830_v39 = vor.u32 %v3829_v34, %v3826_v16  ;;  %v3840_v9 = vor.u32 %v3839_v11, %v8565_v51  ;;  %v3843_v27 = vshll.u32 %v8577_v13, 16  ;;  %v3848_v54 = vshrl.u32 %v5880_v30, 16 }
 0x122   : > { %v8580_v55 = vpop.f32.mrf.mxu1  ;;  %6571 = vmatprep.mubr.msk.bf16.mxu0 %vm658_vm3, %v9864_v48  ;;  %v3851_v15 = vshll.u32 %v5880_v30, 16  ;;  %v8619_v3 = vsel %vm7060_vm7, %v5953_v18, %v4390_v14  ;;  %v4392_v62 = vrot.slane %v4390_v14, 4  ;;  %v4393_v49 = vrot.slane %v8491_v32, 5 }
 0x123   : > { %v1462_v33 = vpop.f32.mrf.mxu0  ;;  %v5954_v16 = vrot.slane %v5938_v29, 9  ;;  %v4397_v34 = vrot.slane %v8505_v59, 5  ;;  %v3857_v11 = vshll.u32 %v8608_v24, 16  ;;  %v3861_v35 = vshrl.u32 %v8608_v24, 16 }
 0x124   : > { %v6331_v37 = vpop.f32.mrf.mxu1  ;;  %6534 = vmatmul.mubr.msk.bf16.vlgmr.msra.gmra.mxu1 %vm658_vm3, %v8210_v57  ;;  %v8628_v48 = vcombine.low %v3812_v6, %v3822_v22  ;;  %v8630_v18 = vrot.slane %v3830_v39, 4  ;;  %v3841_v32 = vrot.slane %v3840_v9, 4  ;;  %v3845_v38 = vrot.slane %v3843_v27, 5  ;;  %v5883_v22 = vld [vmem:[%s6730_s23 + $0xa8] sm:$0xf] }
 0x125   : > { %v1046_v45 = vadd.f32 %v6331_v37, %v8106_v5  ;;  %v6366_v2 = vpop.f32.mrf.mxu0  ;;  %6537 = vmatprep.mubr.msk.bf16.mxu1 %vm658_vm3, %v8357_v23  ;;  %v3850_v29 = vrot.slane %v3848_v54, 4  ;;  %v3853_v59 = vrot.slane %v3851_v15, 5  ;;  %v4400_v6 = vrot.slane %v8577_v13, 5  ;;  %v8656_v27 = vld [vmem:[%s6730_s23 + $0xac] sm:$0xf] }
 0x126   : > { %v1037_v57 = vpop.f32.mrf.mxu1  ;;  %v3863_v9 = vrot.slane %v3861_v35, 4  ;;  %v9869_v35 = vld [vmem:[#allocation8_spill] sm:$0xff] }
 0x127   : > { %v8625_v5 = vadd.f32 %v6365_v56, %v1046_v45  ;;  %v1038_v23 = vadd.f32 %v1037_v57, %v8130_v20  ;;  %v1465_v30 = vpop.f32.mrf.mxu0  ;;  %v9866_v45 = vcombine.low %v8298_v63, %v8324_v52  ;;  %v8641_v20 = vsel %vm7060_vm7, %v4392_v62, %v4393_v49  ;;  %v5939_v62 = vld [vmem:[%s6730_s23 + $0x9c] sm:$0xe] }
 0x128   : > { %v6332_v14 = vpop.f32.mrf.mxu1  ;;  %v4399_v63 = vrot.slane %v4397_v34, 4  ;;  %v8653_v52 = vrot.slane %v3857_v11, 5  ;;  %v4404_v49 = vrot.slane %v8608_v24, 5  ;;  %v3881_v24 = vshll.u32 %v8656_v27, 16 }
 0x129   : > { %v8632_v37 = vadd.f32 %v1462_v33, %v1038_v23  ;;  %v1049_v40 = vadd.f32 %v6332_v14, %v8149_v53  ;;  %v6369_v56 = vpop.f32.mrf.mxu0  ;;  %6572 = vmatmul.mubr.msk.bf16.gmra.mxu0 %vm658_vm3, %v9866_v45  ;;  %v9867_v33 = vcombine.low %v8363_v21, %v8367_v1  ;;  %v8651_v53 = vsel %vm7060_vm7, %v5954_v16, %v4397_v34  ;;  %v5882_v1 = vld [vmem:[%s6730_s23 + $0xa4] sm:$0x1]  ;;  %v9868_v16 = vld [vmem:[#allocation11_spill] sm:$0xff] }
 0x12a   : > { %v1040_v39 = vpop.f32.mrf.mxu1  ;;  %v3836_v21 = vsel %vm6774_vm4, %v8630_v18, %v8565_v51  ;;  %v3872_v34 = vshrl.u32 %v5883_v22, 16  ;;  %v9870_v51 = vld [vmem:[#allocation16_spill] sm:$0xff]  ;;  %v3885_v18 = vshrl.u32 %v8656_v27, 16 }
 0x12b   : > { %6575 = vmatprep.mubr.msk.bf16.mxu0 %vm658_vm3, %v9867_v33  ;;  %v8658_v54 = vadd.f32 %v6366_v2, %v1049_v40  ;;  %v1041_v13 = vadd.f32 %v1040_v39, %v8194_v12  ;;  %v1478_v15 = vpop.f32.mrf.mxu0  ;;  %v3846_v40 = vsel %vm6774_vm4, %v3841_v32, %v3845_v38  ;;  %v3854_v2 = vor.u32 %v3853_v59, %v3850_v29  ;;  %v9871_v59 = vld [vmem:[#allocation12_spill] sm:$0xff] }
 0x12c   : > { %v6335_v57 = vpop.f32.mrf.mxu1  ;;  %6538 = vmatmul.mubr.msk.bf16.gmra.mxu1 %vm658_vm3, %v9868_v16  ;;  %v3875_v12 = vshll.u32 %v5883_v22, 16  ;;  %v8681_v39 = vsel %vm7060_vm7, %v4399_v63, %v4400_v6  ;;  %v3864_v32 = vor.u32 %v3863_v9, %v8653_v52  ;;  %v3867_v38 = vshll.u32 %v5882_v1, 16 }
 0x12d   : > { %v8672_v11 = vadd.f32 %v1465_v30, %v1041_v13  ;;  %v1062_v23 = vadd.f32 %v6335_v57, %v9869_v35  ;;  %v6370_v14 = vpop.f32.mrf.mxu0  ;;  %6541 = vmatprep.mubr.msk.bf16.mxu1 %vm658_vm3, %v9870_v51  ;;  %v5955_v30 = vrot.slane %v5939_v62, 9  ;;  %v4406_v13 = vrot.slane %v4404_v49, 4 }
 0x12e   : > { %v1053_v45 = vpop.f32.mrf.mxu1  ;;  %v4407_v57 = vrot.slane %v5882_v1, 5  ;;  %v8689_v51 = vrot.slane %v3854_v2, 4  ;;  %v3874_v6 = vrot.slane %v3872_v34, 4  ;;  %v3877_v63 = vrot.slane %v3875_v12, 5  ;;  %v8699_v1 = vld [vmem:[%s6730_s23 + $0xb0] sm:$0x1] }
 0x12f   : > { %v8684_v29 = vadd.f32 %v6369_v56, %v1062_v23  ;;  %v1054_v22 = vadd.f32 %v1053_v45, %v9871_v59  ;;  %v1481_v33 = vpop.f32.mrf.mxu0  ;;  %v8701_v23 = vrot.slane %v3881_v24, 5  ;;  %v3887_v2 = vrot.slane %v3885_v18, 4  ;;  %v9873_v12 = vld [vmem:[#allocation14_spill] sm:$0xff] }
 0x130   : > { %v6336_v16 = vpop.f32.mrf.mxu1  ;;  %v8711_v43 = vrot.slane %v3864_v32, 4  ;;  %v8713_v17 = vrot.slane %v3867_v38, 5  ;;  %v8721_v58 = vsel %vm7060_vm7, %v5955_v30, %v4404_v49  ;;  %v8725_v36 = vsel %vm7060_vm7, %v4406_v13, %v4407_v57  ;;  %v8737_v30 = vld [vmem:[%s6730_s23 + $0xb8] sm:$0xf] }
 0x131   : > { %v8691_v9 = vadd.f32 %v1478_v15, %v1054_v22  ;;  %v1065_v62 = vadd.f32 %v6336_v16, %v9872_v4  ;;  %v6373_v56 = vpop.f32.mrf.mxu0  ;;  %6576 = vmatmul.mubr.msk.bf16.gmra.mxu0 %vm658_vm3, %v5966_v10  ;;  %v8707_v15 = vcombine.low %v3836_v21, %v3846_v40  ;;  %v5940_v10 = vld [vmem:[%s6730_s23 + $0xa8] sm:$0xe]  ;;  %v3878_v32 = vor.u32 %v3877_v63, %v3874_v6  ;;  %v9875_v22 = vld [vmem:[#allocation9_spill] sm:$0xff] }
 0x132   : > { %v1056_v45 = vpop.f32.mrf.mxu1  ;;  %6579 = vmatprep.mubr.msk.bf16.mxu0 %vm658_vm3, %v5967_v41  ;;  %v5886_v41 = vld [vmem:[%s6730_s23 + $0xb4] sm:$0xf]  ;;  %v9874_v40 = vld [vmem:[#allocation19_spill] sm:$0xff]  ;;  %v3891_v38 = vshll.u32 %v8699_v1, 16  ;;  %v4411_v49 = vrot.slane %v8656_v27, 5  ;;  %v3888_v16 = vor.u32 %v3887_v2, %v8701_v23  ;;  %v3870_v27 = vsel %vm6774_vm4, %v8711_v43, %v8713_v17 }
 0x133   : > { %v8716_v34 = vadd.f32 %v6370_v14, %v1065_v62  ;;  %v1057_v24 = vadd.f32 %v1056_v45, %v9873_v12  ;;  %v1494_v18 = vpop.f32.mrf.mxu0  ;;  %v5956_v62 = vrot.slane %v5940_v10, 9  ;;  %v3896_v6 = vshrl.u32 %v5886_v41, 16 }
 0x134   : > { %v6339_v21 = vpop.f32.mrf.mxu1  ;;  %6542 = vmatmul.mubr.msk.bf16.gmra.mxu1 %vm658_vm3, %v9874_v40  ;;  %v3899_v63 = vshll.u32 %v5886_v41, 16  ;;  %v3905_v2 = vshll.u32 %v8737_v30, 16  ;;  %v3909_v10 = vshrl.u32 %v8737_v30, 16  ;;  %v5889_v40 = vld [vmem:[%s6730_s23 + $0xc0] sm:$0xf]  ;;  %v3879_v4 = vrot.slane %v3878_v32, 4 }
 0x135   : > { %v8739_v59 = vadd.f32 %v1481_v33, %v1057_v24  ;;  %v1078_v13 = vadd.f32 %v6339_v21, %v9875_v22  ;;  %v6374_v57 = vpop.f32.mrf.mxu0  ;;  %6545 = vmatprep.mubr.msk.bf16.mxu1 %vm658_vm3, %v8591_v46  ;;  %v9877_v24 = vld [vmem:[#allocation18_spill] sm:$0xff]  ;;  %v3893_v43 = vrot.slane %v3891_v38, 5  ;;  %v4413_v17 = vrot.slane %v4411_v49, 4 }
 0x136   : > { %v1069_v45 = vpop.f32.mrf.mxu1  ;;  %v4414_v33 = vrot.slane %v8699_v1, 5  ;;  %v8767_v14 = vsel %vm7060_vm7, %v5956_v62, %v4411_v49  ;;  %v8770_v32 = vld [vmem:[%s6730_s23 + $0xc4] sm:$0xf]  ;;  %v9881_v1 = vcombine.low %v8549_v25, %v8553_v50  ;;  %v8782_v62 = vrot.slane %v3905_v2, 5 }
 0x137   : > { %v8751_v12 = vadd.f32 %v6373_v56, %v1078_v13  ;;  %v1070_v21 = vadd.f32 %v1069_v45, %v9877_v24  ;;  %v1497_v46 = vpop.f32.mrf.mxu0  ;;  %v9879_v56 = vld [vmem:[#allocation21_spill] sm:$0xff]  ;;  %v9880_v45 = vcombine.low %v8537_v47, %v8541_v7  ;;  %v3889_v24 = vrot.slane %v3888_v16, 4  ;;  %v9882_v16 = vld [vmem:[#allocation23_spill] sm:$0xff] }
 0x138   : > { %v6340_v22 = vpop.f32.mrf.mxu1  ;;  %v3920_v47 = vshrl.u32 %v5889_v40, 16  ;;  %v3923_v7 = vshll.u32 %v5889_v40, 16  ;;  %v3884_v25 = vsel %vm6774_vm4, %v3879_v4, %v8701_v23  ;;  %v8791_v50 = vsel %vm7060_vm7, %v4413_v17, %v4414_v33  ;;  %v5941_v40 = vld [vmem:[%s6730_s23 + $0xb4] sm:$0xe] }
 0x139   : > { %9876 = vst [vmem:[#allocation11_spill] sm:$0xff] %v8751_v12  ;;  %v8758_v35 = vadd.f32 %v1494_v18, %v1070_v21  ;;  %v1081_v41 = vadd.f32 %v6340_v22, %v9879_v56  ;;  %v6377_v13 = vpop.f32.mrf.mxu0  ;;  %6580 = vmatmul.mubr.msk.bf16.gmra.mxu0 %vm658_vm3, %v9880_v45  ;;  %v8777_v18 = vld [vmem:[%s6730_s23 + $0xbc] sm:$0x1]  ;;  %v3898_v21 = vrot.slane %v3896_v6, 4  ;;  %v3901_v22 = vrot.slane %v3899_v63, 5 }
 0x13a   : > { %v1072_v38 = vpop.f32.mrf.mxu1  ;;  %6583 = vmatprep.mubr.msk.bf16.mxu0 %vm658_vm3, %v9881_v1  ;;  %v3933_v6 = vshrl.u32 %v8770_v32, 16  ;;  %v3915_v23 = vshll.u32 %v8777_v18, 16  ;;  %v4418_v17 = vrot.slane %v8737_v30, 5  ;;  %v9883_v1 = vld [vmem:[#allocation25_spill] sm:$0xff] }
 0x13b   : > { %9878 = vst [vmem:[#allocation8_spill] sm:$0xff] %v8758_v35  ;;  %v8779_v56 = vadd.f32 %v6374_v57, %v1081_v41  ;;  %v1073_v45 = vadd.f32 %v1072_v38, %v9882_v16  ;;  %v1510_v49 = vpop.f32.mrf.mxu0  ;;  %v3911_v35 = vrot.slane %v3909_v10, 4  ;;  %v3929_v57 = vshll.u32 %v8770_v32, 16 }
 0x13c   : > { %v6343_v12 = vpop.f32.mrf.mxu1  ;;  %6546 = vmatmul.mubr.msk.bf16.gmra.mxu1 %vm658_vm3, %v8593_v61  ;;  %v3894_v61 = vsel %vm6774_vm4, %v3889_v24, %v3893_v43  ;;  %v3902_v33 = vor.u32 %v3901_v22, %v3898_v21  ;;  %v3922_v41 = vrot.slane %v3920_v47, 4  ;;  %v3925_v38 = vrot.slane %v3923_v7, 5 }
 0x13d   : > { %v8795_v63 = vadd.f32 %v1497_v46, %v1073_v45  ;;  %v1094_v2 = vadd.f32 %v6343_v12, %v8501_v28  ;;  %v6378_v10 = vpop.f32.mrf.mxu0  ;;  %6549 = vmatprep.mubr.msk.bf16.mxu1 %vm658_vm3, %v8599_v60  ;;  %v9884_v60 = vsel %vm6774_vm4, %v8689_v51, %v8653_v52  ;;  %v3912_v24 = vor.u32 %v3911_v35, %v8782_v62 }
 0x13e   : > { %v1085_v4 = vpop.f32.mrf.mxu1  ;;  %v8813_v43 = vcombine.low %v9884_v60, %v3870_v27  ;;  %v8816_v30 = vcombine.low %v3884_v25, %v3894_v61  ;;  %v8820_v22 = vrot.slane %v3929_v57, 5  ;;  %v3935_v47 = vrot.slane %v3933_v6, 4  ;;  %v5891_v27 = vld [vmem:[%s6730_s23 + $0xc8] sm:$0x1] }
 0x13f   : > { %v8805_v46 = vadd.f32 %v6377_v13, %v1094_v2  ;;  %v1086_v28 = vadd.f32 %v1085_v4, %v9883_v1  ;;  %v1513_v12 = vpop.f32.mrf.mxu0  ;;  %v5973_v13 = vcombine.low %v8767_v14, %v8791_v50  ;;  %v9885_v52 = vcombine.low %v8619_v3, %v8641_v20  ;;  %v5892_v14 = vld [vmem:[%s6730_s23 + $0xcc] sm:$0xf]  ;;  %v8841_v20 = vld [vmem:[%s6730_s23 + $0xd0] sm:$0xf]  ;;  %v5942_v4 = vld [vmem:[%s6730_s23 + $0xc0] sm:$0xe] }
 0x140   : > { %v6344_v21 = vpop.f32.mrf.mxu1  ;;  %v8829_v35 = vrot.slane %v3915_v23, 5  ;;  %v5957_v51 = vrot.slane %v5941_v40, 9  ;;  %v9886_v50 = vcombine.low %v8651_v53, %v8681_v39  ;;  %v4421_v57 = vrot.slane %v8777_v18, 5 }
 0x141   : > { %v8822_v7 = vadd.f32 %v1510_v49, %v1086_v28  ;;  %v1097_v16 = vadd.f32 %v6344_v21, %v8524_v19  ;;  %v6381_v45 = vpop.f32.mrf.mxu0  ;;  %6584 = vmatmul.mubr.msk.bf16.gmra.mxu0 %vm658_vm3, %v9885_v52  ;;  %v8837_v49 = vrot.slane %v3902_v33, 4  ;;  %v4420_v19 = vrot.slane %v4418_v17, 4 }
 0x142   : > { %v1088_v25 = vpop.f32.mrf.mxu1  ;;  %6587 = vmatprep.mubr.msk.bf16.mxu0 %vm658_vm3, %v9886_v50  ;;  %v3926_v3 = vor.u32 %v3925_v38, %v3922_v41  ;;  %v8846_v23 = vrot.slane %v3912_v24, 4  ;;  %v4425_v53 = vrot.slane %v8770_v32, 5  ;;  %v3936_v33 = vor.u32 %v3935_v47, %v8820_v22 }
 0x143   : > { %v8843_v6 = vadd.f32 %v6378_v10, %v1097_v16  ;;  %v1089_v2 = vadd.f32 %v1088_v25, %v8556_v26  ;;  %v1526_v61 = vpop.f32.mrf.mxu0  ;;  %v3939_v18 = vshll.u32 %v5891_v27, 16  ;;  %v3944_v40 = vshrl.u32 %v5892_v14, 16  ;;  %v9889_v10 = vld [vmem:[#allocation4_spill] sm:$0xff]  ;;  %v9890_v16 = vld [vmem:[#allocation3_spill] sm:$0xff] }
 0x144   : > { %v6347_v39 = vpop.f32.mrf.mxu1  ;;  %6550 = vmatmul.mubr.msk.bf16.gmra.mxu1 %vm658_vm3, %v8628_v48  ;;  %v3947_v41 = vshll.u32 %v5892_v14, 16  ;;  %v3953_v28 = vshll.u32 %v8841_v20, 16  ;;  %v3957_v32 = vshrl.u32 %v8841_v20, 16  ;;  %v4419_v48 = vsel %vm7060_vm7, %v5957_v51, %v4418_v17  ;;  %v9891_v17 = vld [vmem:[#allocation6_spill] sm:$0xff] }
 0x145   : > { %9887 = vst [vmem:[#allocation16_spill] sm:$0xff] %v8843_v6  ;;  %v8853_v38 = vadd.f32 %v1513_v12, %v1089_v2  ;;  %v1110_v1 = vadd.f32 %v6347_v39, %v9889_v10  ;;  %v6382_v26 = vpop.f32.mrf.mxu0  ;;  %6553 = vmatprep.mubr.msk.bf16.mxu1 %vm658_vm3, %v8707_v15  ;;  %v4422_v24 = vsel %vm7060_vm7, %v4420_v19, %v4421_v57  ;;  %v3927_v21 = vrot.slane %v3926_v3, 4 }
 0x146   : > { %v1101_v60 = vpop.f32.mrf.mxu1  ;;  %v5958_v12 = vrot.slane %v5942_v4, 9  ;;  %v4427_v25 = vrot.slane %v4425_v53, 4  ;;  %v4428_v15 = vrot.slane %v5891_v27, 5  ;;  %v3937_v2 = vrot.slane %v3936_v33, 4  ;;  %v5894_v33 = vld [vmem:[%s6730_s23 + $0xd4] sm:$0x1] }
 0x147   : > { %9888 = vst [vmem:[#allocation12_spill] sm:$0xff] %v8853_v38  ;;  %v8864_v47 = vadd.f32 %v6381_v45, %v1110_v1  ;;  %v1102_v52 = vadd.f32 %v1101_v60, %v9890_v16  ;;  %v1529_v14 = vpop.f32.mrf.mxu0  ;;  %v3941_v39 = vrot.slane %v3939_v18, 5  ;;  %v3946_v10 = vrot.slane %v3944_v40, 4  ;;  %v9893_v18 = vld [vmem:[#allocation5_spill] sm:$0xff] }
 0x148   : > { %v6348_v50 = vpop.f32.mrf.mxu1  ;;  %v3949_v38 = vrot.slane %v3947_v41, 5  ;;  %v9892_v45 = vcombine.low %v8721_v58, %v8725_v36  ;;  %v8874_v57 = vrot.slane %v3953_v28, 5  ;;  %v3959_v27 = vrot.slane %v3957_v32, 4 }
 0x149   : > { %v8867_v6 = vadd.f32 %v1526_v61, %v1102_v52  ;;  %v1113_v51 = vadd.f32 %v6348_v50, %v9891_v17  ;;  %v6385_v19 = vpop.f32.mrf.mxu0  ;;  %v3908_v61 = vsel %vm6774_vm4, %v8837_v49, %v8782_v62  ;;  %v3918_v4 = vsel %vm6774_vm4, %v8846_v23, %v8829_v35  ;;  %v5943_v62 = vld [vmem:[%s6730_s23 + $0xcc] sm:$0xe] }
 0x14a   : > { %6588 = vmatmul.mubr.msk.bf16.gmra.mxu0 %vm658_vm3, %v9892_v45  ;;  %v1104_v3 = vpop.f32.mrf.mxu1  ;;  %v4432_v58 = vrot.slane %v8841_v20, 5  ;;  %v4429_v1 = vsel %vm7060_vm7, %v4427_v25, %v4428_v15  ;;  %v5974_v35 = vcombine.low %v4419_v48, %v4422_v24  ;;  %v3932_v20 = vsel %vm6774_vm4, %v3927_v21, %v8820_v22  ;;  %v9895_v25 = vld [vmem:[#allocation10_spill] sm:$0xff] }
 0x14b   : > { %6591 = vmatprep.mubr.msk.bf16.mxu0 %vm658_vm3, %v5973_v13  ;;  %v8887_v36 = vadd.f32 %v6382_v26, %v1113_v51  ;;  %v1105_v40 = vadd.f32 %v1104_v3, %v9893_v18  ;;  %v1542_v41 = vpop.f32.mrf.mxu0  ;;  %v4426_v13 = vsel %vm7060_vm7, %v5958_v12, %v4425_v53  ;;  %v3942_v23 = vsel %vm6774_vm4, %v3937_v2, %v3941_v39  ;;  %v9894_v53 = vld [vmem:[#allocation7_spill] sm:$0xff] }
 0x14c   : > { %v6351_v49 = vpop.f32.mrf.mxu1  ;;  %6554 = vmatmul.mubr.msk.bf16.gmra.mxu1 %vm658_vm3, %v8813_v43  ;;  %v3950_v26 = vor.u32 %v3949_v38, %v3946_v10  ;;  %v3960_v12 = vor.u32 %v3959_v27, %v8874_v57  ;;  %v3963_v43 = vshll.u32 %v5894_v33, 16  ;;  %v5975_v24 = vcombine.low %v4426_v13, %v4429_v1 }
 0x14d   : > { %v8902_v28 = vadd.f32 %v1529_v14, %v1105_v40  ;;  %v1126_v32 = vadd.f32 %v6351_v49, %v9894_v53  ;;  %v6386_v60 = vpop.f32.mrf.mxu0  ;;  %6557 = vmatprep.mubr.msk.bf16.mxu1 %vm658_vm3, %v8816_v30  ;;  %v5959_v16 = vrot.slane %v5943_v62, 9  ;;  %v4434_v52 = vrot.slane %v4432_v58, 4  ;;  %v9896_v30 = vld [vmem:[#allocation13_spill] sm:$0xff] }
 0x14e   : > { %v1117_v48 = vpop.f32.mrf.mxu1  ;;  %v4435_v22 = vrot.slane %v5894_v33, 5  ;;  %v5909_v50 = vcombine.low %v3908_v61, %v3918_v4  ;;  %v5910_v2 = vcombine.low %v3932_v20, %v3942_v23  ;;  %v3951_v39 = vrot.slane %v3950_v26, 4  ;;  %v9897_v33 = vld [vmem:[#allocation15_spill] sm:$0xff]  ;;  %v9898_v62 = vld [vmem:[#allocation17_spill] sm:$0xff]  ;;  %v9899_v26 = vld [vmem:[#allocation20_spill] sm:$0xff] }
 0x14f   : > { %v8908_v21 = vadd.f32 %v6385_v19, %v1126_v32  ;;  %v1118_v38 = vadd.f32 %v1117_v48, %v9895_v25  ;;  %v1545_v14 = vpop.f32.mrf.mxu0  ;;  %v3961_v45 = vrot.slane %v3960_v12, 4  ;;  %v3965_v27 = vrot.slane %v3963_v43, 5  ;;  %v9900_v43 = vld [vmem:[#allocation22_spill] sm:$0xff] }
 0x150   : > { %v6352_v15 = vpop.f32.mrf.mxu1  ;;  %v4433_v19 = vsel %vm7060_vm7, %v5959_v16, %v4432_v58  ;;  %v4436_v61 = vsel %vm7060_vm7, %v4434_v52, %v4435_v22  ;;  %v3956_v13 = vsel %vm6774_vm4, %v3951_v39, %v8874_v57 }
 0x151   : > { %v8911_v10 = vadd.f32 %v1542_v41, %v1118_v38  ;;  %v1129_v17 = vadd.f32 %v6352_v15, %v9896_v30  ;;  %v6389_v51 = vpop.f32.mrf.mxu0  ;;  %v3966_v0 = vsel %vm6774_vm4, %v3961_v45, %v3965_v27 }
 0x152   : > { %6592 = vmatmul.mubr.msk.bf16.gmra.mxu0 %vm658_vm3, %v5974_v35  ;;  %v1120_v3 = vpop.f32.mrf.mxu1  ;;  %v5976_v35 = vcombine.low %v4433_v19, %v4436_v61  ;;  %v5911_v12 = vcombine.low %v3956_v13, %v3966_v0 }
 0x153   : > { %6595 = vmatprep.mubr.msk.bf16.mxu0 %vm658_vm3, %v5975_v24  ;;  %v8920_v4 = vadd.f32 %v6386_v60, %v1129_v17  ;;  %v1121_v18 = vadd.f32 %v1120_v3, %v9897_v33  ;;  %v1558_v40 = vpop.f32.mrf.mxu0 }
 0x154   : > { %v6355_v41 = vpop.f32.mrf.mxu1  ;;  %6558 = vmatmul.mubr.msk.bf16.gmra.mxu1 %vm658_vm3, %v5909_v50 }
 0x155   : > { %v8927_v1 = vadd.f32 %v1545_v14, %v1121_v18  ;;  %v1142_v49 = vadd.f32 %v6355_v41, %v9898_v62  ;;  %v6390_v58 = vpop.f32.mrf.mxu0  ;;  %6561 = vmatprep.mubr.msk.bf16.mxu1 %vm658_vm3, %v5910_v2 }
 0x156   : > { %v1133_v20 = vpop.f32.mrf.mxu1 }
 0x157   : > { %v8933_v23 = vadd.f32 %v6389_v51, %v1142_v49  ;;  %v1134_v53 = vadd.f32 %v1133_v20, %v9899_v26  ;;  %v1561_v32 = vpop.f32.mrf.mxu0 }
 0x158   : > { %v6356_v60 = vpop.f32.mrf.mxu1 }
 0x159   : > { %v8936_v57 = vadd.f32 %v1558_v40, %v1134_v53  ;;  %v1145_v48 = vadd.f32 %v6356_v60, %v9900_v43  ;;  %v6393_v24 = vpop.f32.mrf.mxu0  ;;  %v6679_v53 = vmov 0  }
 0x15a   : > { %6596 = vmatmul.mubr.msk.bf16.gmra.mxu0 %vm658_vm3, %v5976_v35  ;;  %v1136_v16 = vpop.f32.mrf.mxu1  ;;  %4826 = vst.msk [vmem:[%s8970_s11 + $0x18] sm:$0xf] %vm4818_vm8, %v6679_v53  ;;  %4819 = vst.msk [vmem:[%s8970_s11] sm:$0xf] %vm4818_vm8, %v6679_v53 }
 0x15b   : > { %v8940_v52 = vadd.f32 %v6390_v58, %v1145_v48  ;;  %v1137_v22 = vadd.f32 %v1136_v16, %v9901_v31  ;;  %v1574_v25 = vpop.f32.mrf.mxu0  ;;  %4820 = vst.msk [vmem:[%s8970_s11 + $0x4] sm:$0xf] %vm4818_vm8, %v6679_v53  ;;  %4823 = vst.msk [vmem:[%s8970_s11 + $0xc] sm:$0xf] %vm4818_vm8, %v6679_v53 }
 0x15c   : > { %v6359_v38 = vpop.f32.mrf.mxu1  ;;  %6562 = vmatmul.mubr.msk.bf16.gmra.mxu1 %vm658_vm3, %v5911_v12  ;;  %4824 = vst.msk [vmem:[%s8970_s11 + $0x10] sm:$0xf] %vm4818_vm8, %v6679_v53  ;;  %4827 = vst.msk [vmem:[%s8970_s11 + $0x1c] sm:$0xf] %vm4818_vm8, %v6679_v53 }
 0x15d   : > { %v8944_v14 = vadd.f32 %v1561_v32, %v1137_v22  ;;  %v1158_v15 = vadd.f32 %v6359_v38, %v8516_v42  ;;  %v6394_v50 = vpop.f32.mrf.mxu0  ;;  %4829 = vst.msk [vmem:[%s8970_s11 + $0x24] sm:$0xf] %vm4818_vm8, %v6679_v53  ;;  %4830 = vst.msk [vmem:[%s8970_s11 + $0x28] sm:$0xf] %vm4818_vm8, %v6679_v53 }
 0x15e   : > { %v1149_v2 = vpop.f32.mrf.mxu1  ;;  %4832 = vst.msk [vmem:[%s8970_s11 + $0x30] sm:$0xf] %vm4818_vm8, %v6679_v53  ;;  %4833 = vst.msk [vmem:[%s8970_s11 + $0x34] sm:$0xf] %vm4818_vm8, %v6679_v53 }
 0x15f   : > { %v8947_v39 = vadd.f32 %v6393_v24, %v1158_v15  ;;  %v1150_v30 = vadd.f32 %v1149_v2, %v8543_v44  ;;  %v1577_v17 = vpop.f32.mrf.mxu0  ;;  %4835 = vst.msk [vmem:[%s8970_s11 + $0x3c] sm:$0xf] %vm4818_vm8, %v6679_v53  ;;  %4836 = vst.msk [vmem:[%s8970_s11 + $0x40] sm:$0xf] %vm4818_vm8, %v6679_v53  ;;  %v9902_v2 = vld [vmem:[#allocation11_spill] sm:$0xff] }
 0x160   : > { %v6360_v51 = vpop.f32.mrf.mxu1  ;;  %4838 = vst.msk [vmem:[%s8970_s11 + $0x48] sm:$0xf] %vm4818_vm8, %v6679_v53  ;;  %4839 = vst.msk [vmem:[%s8970_s11 + $0x4c] sm:$0xf] %vm4818_vm8, %v6679_v53 }
 0x161   : > { %v8950_v45 = vadd.f32 %v1574_v25, %v1150_v30  ;;  %v1161_v27 = vadd.f32 %v6360_v51, %v8558_v8  ;;  %v6433_v3 = vpop.f32.mrf.mxu0  ;;  %4841 = vst.msk [vmem:[%s8970_s11 + $0x54] sm:$0xf] %vm4818_vm8, %v6679_v53  ;;  %4842 = vst.msk [vmem:[%s8970_s11 + $0x58] sm:$0xf] %vm4818_vm8, %v6679_v53 }
 0x162   : > { %v1152_v19 = vpop.f32.mrf.mxu1  ;;  %4844 = vst.msk [vmem:[%s8970_s11 + $0x60] sm:$0xf] %vm4818_vm8, %v6679_v53  ;;  %4845 = vst.msk [vmem:[%s8970_s11 + $0x64] sm:$0xf] %vm4818_vm8, %v6679_v53 }
 0x163   : > { %v8953_v61 = vadd.f32 %v6394_v50, %v1161_v27  ;;  %v1153_v33 = vadd.f32 %v1152_v19, %v8580_v55  ;;  %v2547_v42 = vpop.f32.mrf.mxu0  ;;  %4847 = vst.msk [vmem:[%s8970_s11 + $0x6c] sm:$0xf] %vm4818_vm8, %v6679_v53  ;;  %4848 = vst.msk [vmem:[%s8970_s11 + $0x70] sm:$0xf] %vm4818_vm8, %v6679_v53 }
 0x164   : > { %v6399_v18 = vpop.f32.mrf.mxu1  ;;  %4850 = vst.msk [vmem:[%s8970_s11 + $0x78] sm:$0xf] %vm4818_vm8, %v6679_v53  ;;  %4851 = vst.msk [vmem:[%s8970_s11 + $0x7c] sm:$0xf] %vm4818_vm8, %v6679_v53 }
 0x165   : > { %v8956_v40 = vadd.f32 %v1577_v17, %v1153_v33  ;;  %v1950_v41 = vadd.f32 %v6399_v18, %v8625_v5  ;;  %v6434_v44 = vpop.f32.mrf.mxu0  ;;  %4853 = vst.msk [vmem:[%s8970_s11 + $0x84] sm:$0xf] %vm4818_vm8, %v6679_v53  ;;  %4854 = vst.msk [vmem:[%s8970_s11 + $0x88] sm:$0xf] %vm4818_vm8, %v6679_v53 }
 0x166   : > { %v1821_v13 = vpop.f32.mrf.mxu1  ;;  %4856 = vst.msk [vmem:[%s8970_s11 + $0x90] sm:$0xf] %vm4818_vm8, %v6679_v53  ;;  %4857 = vst.msk [vmem:[%s8970_s11 + $0x94] sm:$0xf] %vm4818_vm8, %v6679_v53 }
 0x167   : > { %v8959_v62 = vadd.f32 %v6433_v3, %v1950_v41  ;;  %v1948_v49 = vadd.f32 %v1821_v13, %v8632_v37  ;;  %v2550_v8 = vpop.f32.mrf.mxu0  ;;  %4859 = vst.msk [vmem:[%s8970_s11 + $0x9c] sm:$0xf] %vm4818_vm8, %v6679_v53  ;;  %4860 = vst.msk [vmem:[%s8970_s11 + $0xa0] sm:$0xf] %vm4818_vm8, %v6679_v53  ;;  %v9903_v3 = vld [vmem:[#allocation8_spill] sm:$0xff] }
 0x168   : > { %v6400_v58 = vpop.f32.mrf.mxu1  ;;  %4862 = vst.msk [vmem:[%s8970_s11 + $0xa8] sm:$0xf] %vm4818_vm8, %v6679_v53  ;;  %4863 = vst.msk [vmem:[%s8970_s11 + $0xac] sm:$0xf] %vm4818_vm8, %v6679_v53 }
 0x169   : > { %v8962_v0 = vadd.f32 %v2547_v42, %v1948_v49  ;;  %v1951_v35 = vadd.f32 %v6400_v58, %v8658_v54  ;;  %v6437_v20 = vpop.f32.mrf.mxu0  ;;  %4865 = vst.msk [vmem:[%s8970_s11 + $0xb4] sm:$0xf] %vm4818_vm8, %v6679_v53  ;;  %4866 = vst.msk [vmem:[%s8970_s11 + $0xb8] sm:$0xf] %vm4818_vm8, %v6679_v53 }
 0x16a   : > { %v1824_v55 = vpop.f32.mrf.mxu1  ;;  %4868 = vst.msk [vmem:[%s8970_s11 + $0xc0] sm:$0xf] %vm4818_vm8, %v6679_v53  ;;  %4869 = vst.msk [vmem:[%s8970_s11 + $0xc4] sm:$0xf] %vm4818_vm8, %v6679_v53 }
 0x16b   : > { %v8972_v5 = vadd.f32 %v6434_v44, %v1951_v35  ;;  %v1949_v37 = vadd.f32 %v1824_v55, %v8672_v11  ;;  %v2563_v54 = vpop.f32.mrf.mxu0  ;;  %4871 = vst.msk [vmem:[%s8970_s11 + $0xcc] sm:$0xf] %vm4818_vm8, %v6679_v53  ;;  %4872 = vst.msk [vmem:[%s8970_s11 + $0xd0] sm:$0xf] %vm4818_vm8, %v6679_v53 }
 0x16c   : > { %v6403_v26 = vpop.f32.mrf.mxu1  ;;  %4828 = vst.msk [vmem:[%s8970_s11 + $0x20] sm:$0x1] %vm4821_vm9, %v6679_v53  ;;  %4822 = vst.msk [vmem:[%s8970_s11 + $0x8] sm:$0x1] %vm4821_vm9, %v6679_v53 }
 0x16d   : > { %v9083_v11 = vadd.f32 %v2550_v8, %v1949_v37  ;;  %v1954_v32 = vadd.f32 %v6403_v26, %v8684_v29  ;;  %v6438_v60 = vpop.f32.mrf.mxu0  ;;  %4825 = vst.msk [vmem:[%s8970_s11 + $0x14] sm:$0x1] %vm4821_vm9, %v6679_v53  ;;  %4831 = vst.msk [vmem:[%s8970_s11 + $0x2c] sm:$0x1] %vm4821_vm9, %v6679_v53 }
 0x16e   : > { %v1837_v12 = vpop.f32.mrf.mxu1  ;;  %4834 = vst.msk [vmem:[%s8970_s11 + $0x38] sm:$0x1] %vm4821_vm9, %v6679_v53  ;;  %4837 = vst.msk [vmem:[%s8970_s11 + $0x44] sm:$0x1] %vm4821_vm9, %v6679_v53 }
 0x16f   : > { %v9086_v43 = vadd.f32 %v6437_v20, %v1954_v32  ;;  %v1952_v48 = vadd.f32 %v1837_v12, %v8691_v9  ;;  %v2566_v24 = vpop.f32.mrf.mxu0  ;;  %4840 = vst.msk [vmem:[%s8970_s11 + $0x50] sm:$0x1] %vm4821_vm9, %v6679_v53  ;;  %4843 = vst.msk [vmem:[%s8970_s11 + $0x5c] sm:$0x1] %vm4821_vm9, %v6679_v53 }
 0x170   : > { %v6404_v16 = vpop.f32.mrf.mxu1  ;;  %4846 = vst.msk [vmem:[%s8970_s11 + $0x68] sm:$0x1] %vm4821_vm9, %v6679_v53  ;;  %4849 = vst.msk [vmem:[%s8970_s11 + $0x74] sm:$0x1] %vm4821_vm9, %v6679_v53 }
 0x171   : > { %v9089_v31 = vadd.f32 %v2563_v54, %v1952_v48  ;;  %v1955_v29 = vadd.f32 %v6404_v16, %v8716_v34  ;;  %v6441_v22 = vpop.f32.mrf.mxu0  ;;  %4852 = vst.msk [vmem:[%s8970_s11 + $0x80] sm:$0x1] %vm4821_vm9, %v6679_v53  ;;  %4855 = vst.msk [vmem:[%s8970_s11 + $0x8c] sm:$0x1] %vm4821_vm9, %v6679_v53  ;;  %v9905_v16 = vld [vmem:[#allocation12_spill] sm:$0xff] }
 0x172   : > { %4858 = vst.msk [vmem:[%s8970_s11 + $0x98] sm:$0x1] %vm4821_vm9, %v6679_v53  ;;  %4861 = vst.msk [vmem:[%s8970_s11 + $0xa4] sm:$0x1] %vm4821_vm9, %v6679_v53  ;;  %v1840_v9 = vpop.f32.mrf.mxu1 }
 0x173   : > { %4864 = vst.msk [vmem:[%s8970_s11 + $0xb0] sm:$0x1] %vm4821_vm9, %v6679_v53  ;;  %4867 = vst.msk [vmem:[%s8970_s11 + $0xbc] sm:$0x1] %vm4821_vm9, %v6679_v53  ;;  %v9146_v34 = vadd.f32 %v6438_v60, %v1955_v29  ;;  %v1953_v25 = vadd.f32 %v1840_v9, %v8739_v59  ;;  %v2579_v38 = vpop.f32.mrf.mxu0  ;;  %v9904_v60 = vld [vmem:[#allocation16_spill] sm:$0xff] }
 0x174   : > { %4870 = vst.msk [vmem:[%s8970_s11 + $0xc8] sm:$0x1] %vm4821_vm9, %v6679_v53  ;;  %4873 = vst.msk [vmem:[%s8970_s11 + $0xd4] sm:$0x1] %vm4821_vm9, %v6679_v53  ;;  %v6407_v15 = vpop.f32.mrf.mxu1 }
 0x175   : > { %v9149_v50 = vadd.f32 %v2566_v24, %v1953_v25  ;;  %v1958_v30 = vadd.f32 %v6407_v15, %v9902_v2  ;;  %v6442_v17 = vpop.f32.mrf.mxu0 }
 0x176   : > { %v1853_v51 = vpop.f32.mrf.mxu1 }
 0x177   : > { %v9152_v27 = vadd.f32 %v6441_v22, %v1958_v30  ;;  %v1956_v19 = vadd.f32 %v1853_v51, %v9903_v3  ;;  %v2582_v33 = vpop.f32.mrf.mxu0 }
 0x178   : > { %v6408_v42 = vpop.f32.mrf.mxu1 }
 0x179   : > { %v9155_v18 = vadd.f32 %v2579_v38, %v1956_v19  ;;  %v1959_v41 = vadd.f32 %v6408_v42, %v8779_v56  ;;  %v6445_v44 = vpop.f32.mrf.mxu0 }
 0x17a   : > { %v1856_v59 = vpop.f32.mrf.mxu1 }
 0x17b   : > { %v9158_v13 = vadd.f32 %v6442_v17, %v1959_v41  ;;  %v1957_v49 = vadd.f32 %v1856_v59, %v8795_v63  ;;  %v2595_v8 = vpop.f32.mrf.mxu0 }
 0x17c   : > { %v6411_v58 = vpop.f32.mrf.mxu1 }
 0x17d   : > { %v9161_v35 = vadd.f32 %v2582_v33, %v1957_v49  ;;  %v1962_v20 = vadd.f32 %v6411_v58, %v8805_v46  ;;  %v6446_v55 = vpop.f32.mrf.mxu0 }
 0x17e   : > { %v1869_v37 = vpop.f32.mrf.mxu1 }
 0x17f   : > { %v9164_v54 = vadd.f32 %v6445_v44, %v1962_v20  ;;  %v1960_v26 = vadd.f32 %v1869_v37, %v8822_v7  ;;  %v2598_v53 = vpop.f32.mrf.mxu0 }
 0x180   : > { %v6412_v56 = vpop.f32.mrf.mxu1 }
 0x181   : > { %v9167_v32 = vadd.f32 %v2595_v8, %v1960_v26  ;;  %v1963_v12 = vadd.f32 %v6412_v56, %v9904_v60  ;;  %v6449_v48 = vpop.f32.mrf.mxu0 }
 0x182   : > { %v1872_v63 = vpop.f32.mrf.mxu1 }
 0x183   : > { %v9170_v24 = vadd.f32 %v6446_v55, %v1963_v12  ;;  %v1961_v29 = vadd.f32 %v1872_v63, %v9905_v16  ;;  %v2611_v22 = vpop.f32.mrf.mxu0 }
 0x184   : > { %v6415_v46 = vpop.f32.mrf.mxu1 }
 0x185   : > { %v9173_v9 = vadd.f32 %v2598_v53, %v1961_v29  ;;  %v1966_v25 = vadd.f32 %v6415_v46, %v8864_v47  ;;  %v6450_v38 = vpop.f32.mrf.mxu0 }
 0x186   : > { %v1885_v7 = vpop.f32.mrf.mxu1 }
 0x187   : > { %v9176_v15 = vadd.f32 %v6449_v48, %v1966_v25  ;;  %v1964_v2 = vadd.f32 %v1885_v7, %v8867_v6  ;;  %v2614_v30 = vpop.f32.mrf.mxu0 }
 0x188   : > { %v6416_v17 = vpop.f32.mrf.mxu1 }
 0x189   : > { %v9179_v51 = vadd.f32 %v2611_v22, %v1964_v2  ;;  %v1967_v3 = vadd.f32 %v6416_v17, %v8887_v36  ;;  %v6453_v19 = vpop.f32.mrf.mxu0 }
 0x18a   : > { %v1888_v33 = vpop.f32.mrf.mxu1 }
 0x18b   : > { %v9182_v42 = vadd.f32 %v6450_v38, %v1967_v3  ;;  %v1965_v41 = vadd.f32 %v1888_v33, %v8902_v28  ;;  %v2627_v44 = vpop.f32.mrf.mxu0 }
 0x18c   : > { %v6419_v47 = vpop.f32.mrf.mxu1 }
 0x18d   : > { %v9185_v59 = vadd.f32 %v2614_v30, %v1965_v41  ;;  %v1970_v49 = vadd.f32 %v6419_v47, %v8908_v21  ;;  %v6454_v8 = vpop.f32.mrf.mxu0 }
 0x18e   : > { %v1901_v6 = vpop.f32.mrf.mxu1 }
 0x18f   : > { %v9188_v58 = vadd.f32 %v6453_v19, %v1970_v49  ;;  %v1968_v20 = vadd.f32 %v1901_v6, %v8911_v10  ;;  %v2630_v55 = vpop.f32.mrf.mxu0 }
 0x190   : > { %v6420_v36 = vpop.f32.mrf.mxu1 }
 0x191   : > { %v9191_v37 = vadd.f32 %v2627_v44, %v1968_v20  ;;  %v1971_v26 = vadd.f32 %v6420_v36, %v8920_v4  ;;  %v6457_v53 = vpop.f32.mrf.mxu0 }
 0x192   : > { %v1904_v28 = vpop.f32.mrf.mxu1 }
 0x193   : > { %v9194_v56 = vadd.f32 %v6454_v8, %v1971_v26  ;;  %v1969_v60 = vadd.f32 %v1904_v28, %v8927_v1  ;;  %v2643_v12 = vpop.f32.mrf.mxu0 }
 0x194   : > { %v6423_v21 = vpop.f32.mrf.mxu1 }
 0x195   : > { %v9197_v48 = vadd.f32 %v2630_v55, %v1969_v60  ;;  %v1974_v63 = vadd.f32 %v6423_v21, %v8933_v23  ;;  %v6458_v16 = vpop.f32.mrf.mxu0 }
 0x196   : > { %v1917_v10 = vpop.f32.mrf.mxu1 }
 0x197   : > { %v9200_v29 = vadd.f32 %v6457_v53, %v1974_v63  ;;  %v1972_v22 = vadd.f32 %v1917_v10, %v8936_v57  ;;  %v2646_v46 = vpop.f32.mrf.mxu0 }
 0x198   : > { %v6424_v4 = vpop.f32.mrf.mxu1 }
 0x199   : > { %v9203_v25 = vadd.f32 %v2643_v12, %v1972_v22  ;;  %v1975_v38 = vadd.f32 %v6424_v4, %v8940_v52  ;;  %v6461_v7 = vpop.f32.mrf.mxu0 }
 0x19a   : > { %v1920_v1 = vpop.f32.mrf.mxu1 }
 0x19b   : > { %v9206_v2 = vadd.f32 %v6458_v16, %v1975_v38  ;;  %v1973_v30 = vadd.f32 %v1920_v1, %v8944_v14  ;;  %v2659_v17 = vpop.f32.mrf.mxu0 }
 0x19c   : > { %v6427_v23 = vpop.f32.mrf.mxu1 }
 0x19d   : > { %v9209_v3 = vadd.f32 %v2646_v46, %v1973_v30  ;;  %v1978_v19 = vadd.f32 %v6427_v23, %v8947_v39  ;;  %v6462_v33 = vpop.f32.mrf.mxu0 }
 0x19e   : > { %v1933_v57 = vpop.f32.mrf.mxu1 }
 0x19f   : > { %v9212_v41 = vadd.f32 %v6461_v7, %v1978_v19  ;;  %v1976_v44 = vadd.f32 %v1933_v57, %v8950_v45  ;;  %v2662_v47 = vpop.f32.mrf.mxu0 }
 0x1a0   : > { %v6428_v52 = vpop.f32.mrf.mxu1 }
 0x1a1   : > { %v9215_v49 = vadd.f32 %v2659_v17, %v1976_v44  ;;  %v1979_v8 = vadd.f32 %v6428_v52, %v8953_v61  ;;  %v9218_v6 = vpop.f32.mrf.mxu0 }
 0x1a2   : > { %v1936_v14 = vpop.f32.mrf.mxu1 }
 0x1a3   : > { %v9220_v20 = vadd.f32 %v6462_v33, %v1979_v8  ;;  %v1977_v55 = vadd.f32 %v1936_v14, %v8956_v40  ;;  %v9223_v39 = vpop.f32.mrf.mxu0 }
 0x1a4   : > { %v9225_v36 = vpop.f32.mrf.mxu1 }
 0x1a5   : > { %v9227_v26 = vadd.f32 %v2662_v47, %v1977_v55  ;;  %v9229_v45 = vpop.f32.mrf.mxu0 }
 0x1a6   : > { %v9231_v53 = vpop.f32.mrf.mxu1 }
 0x1a7   : > { %v9233_v28 = vpop.f32.mrf.mxu0 }
 0x1a8   : > { %v9235_v61 = vpop.f32.mrf.mxu1 }
 0x1a9   : > { %v9237_v60 = vpop.f32.mrf.mxu0 }
 0x1aa   : > { %v9239_v12 = vpop.f32.mrf.mxu1 }
 0x1ab   : > { %v9241_v21 = vpop.f32.mrf.mxu0 }
 0x1ac   : > { %v9243_v40 = vpop.f32.mrf.mxu1 }
 0x1ad   : > { %v6506_v63 = vpop.f32.mrf.mxu0 }
 0x1ae   : > { %v9245_v16 = vpop.f32.mrf.mxu1 }
 0x1af   : > { %v3395_v10 = vpop.f32.mrf.mxu0 }
 0x1b0   : > { %v6472_v22 = vpop.f32.mrf.mxu1 }
 0x1b1   : > { %v3151_v46 = vadd.f32 %v6472_v22, %v9146_v34  ;;  %v6509_v4 = vpop.f32.mrf.mxu0 }
 0x1b2   : > { %v3036_v38 = vpop.f32.mrf.mxu1 }
 0x1b3   : > { %v9248_v7 = vadd.f32 %v6506_v63, %v3151_v46  ;;  %v3149_v1 = vadd.f32 %v3036_v38, %v9149_v50  ;;  %v3408_v30 = vpop.f32.mrf.mxu0 }
 0x1b4   : > { %v6475_v17 = vpop.f32.mrf.mxu1 }
 0x1b5   : > { %v9251_v23 = vadd.f32 %v3395_v10, %v3149_v1  ;;  %v3154_v19 = vadd.f32 %v6475_v17, %v9152_v27  ;;  %v6510_v33 = vpop.f32.mrf.mxu0 }
 0x1b6   : > { %v3049_v57 = vpop.f32.mrf.mxu1 }
 0x1b7   : > { %v9254_v44 = vadd.f32 %v6509_v4, %v3154_v19  ;;  %v3152_v47 = vadd.f32 %v3049_v57, %v9155_v18  ;;  %v3411_v52 = vpop.f32.mrf.mxu0 }
 0x1b8   : > { %v6476_v34 = vpop.f32.mrf.mxu1 }
 0x1b9   : > { %v9257_v8 = vadd.f32 %v3408_v30, %v3152_v47  ;;  %v3155_v14 = vadd.f32 %v6476_v34, %v9158_v13  ;;  %v6513_v55 = vpop.f32.mrf.mxu0 }
 0x1ba   : > { %v3052_v50 = vpop.f32.mrf.mxu1 }
 0x1bb   : > { %v9260_v63 = vadd.f32 %v6510_v33, %v3155_v14  ;;  %v3153_v10 = vadd.f32 %v3052_v50, %v9161_v35  ;;  %v3424_v22 = vpop.f32.mrf.mxu0 }
 0x1bc   : > { %v6479_v27 = vpop.f32.mrf.mxu1 }
 0x1bd   : > { %v9263_v46 = vadd.f32 %v3411_v52, %v3153_v10  ;;  %v3158_v4 = vadd.f32 %v6479_v27, %v9164_v54  ;;  %v6514_v38 = vpop.f32.mrf.mxu0 }
 0x1be   : > { %v3065_v18 = vpop.f32.mrf.mxu1 }
 0x1bf   : > { %v9266_v1 = vadd.f32 %v6513_v55, %v3158_v4  ;;  %v3156_v30 = vadd.f32 %v3065_v18, %v9167_v32  ;;  %v3427_v17 = vpop.f32.mrf.mxu0 }
 0x1c0   : > { %v6480_v13 = vpop.f32.mrf.mxu1 }
 0x1c1   : > { %v9269_v19 = vadd.f32 %v3424_v22, %v3156_v30  ;;  %v3159_v33 = vadd.f32 %v6480_v13, %v9170_v24  ;;  %v6517_v57 = vpop.f32.mrf.mxu0 }
 0x1c2   : > { %v3068_v35 = vpop.f32.mrf.mxu1 }
 0x1c3   : > { %v9272_v47 = vadd.f32 %v6514_v38, %v3159_v33  ;;  %v3157_v52 = vadd.f32 %v3068_v35, %v9173_v9  ;;  %v3440_v34 = vpop.f32.mrf.mxu0 }
 0x1c4   : > { %v6483_v54 = vpop.f32.mrf.mxu1 }
 0x1c5   : > { %v9275_v14 = vadd.f32 %v3427_v17, %v3157_v52  ;;  %v3162_v55 = vadd.f32 %v6483_v54, %v9176_v15  ;;  %v6518_v50 = vpop.f32.mrf.mxu0 }
 0x1c6   : > { %v3081_v32 = vpop.f32.mrf.mxu1 }
 0x1c7   : > { %v9278_v10 = vadd.f32 %v6517_v57, %v3162_v55  ;;  %v3160_v22 = vadd.f32 %v3081_v32, %v9179_v51  ;;  %v3443_v27 = vpop.f32.mrf.mxu0 }
 0x1c8   : > { %v6484_v24 = vpop.f32.mrf.mxu1 }
 0x1c9   : > { %v9281_v4 = vadd.f32 %v3440_v34, %v3160_v22  ;;  %v3163_v38 = vadd.f32 %v6484_v24, %v9182_v42  ;;  %v6521_v18 = vpop.f32.mrf.mxu0 }
 0x1ca   : > { %v3084_v9 = vpop.f32.mrf.mxu1 }
 0x1cb   : > { %v9284_v30 = vadd.f32 %v6518_v50, %v3163_v38  ;;  %v3161_v17 = vadd.f32 %v3084_v9, %v9185_v59  ;;  %v3456_v13 = vpop.f32.mrf.mxu0 }
 0x1cc   : > { %v6487_v15 = vpop.f32.mrf.mxu1 }
 0x1cd   : > { %v9287_v33 = vadd.f32 %v3443_v27, %v3161_v17  ;;  %v3166_v57 = vadd.f32 %v6487_v15, %v9188_v58  ;;  %v6522_v35 = vpop.f32.mrf.mxu0 }
 0x1ce   : > { %v3097_v51 = vpop.f32.mrf.mxu1 }
 0x1cf   : > { %v9290_v52 = vadd.f32 %v6521_v18, %v3166_v57  ;;  %v3164_v34 = vadd.f32 %v3097_v51, %v9191_v37  ;;  %v3459_v54 = vpop.f32.mrf.mxu0 }
 0x1d0   : > { %v6488_v42 = vpop.f32.mrf.mxu1 }
 0x1d1   : > { %v9293_v55 = vadd.f32 %v3456_v13, %v3164_v34  ;;  %v3167_v50 = vadd.f32 %v6488_v42, %v9194_v56  ;;  %v6525_v32 = vpop.f32.mrf.mxu0 }
 0x1d2   : > { %v3100_v59 = vpop.f32.mrf.mxu1 }
 0x1d3   : > { %v9296_v22 = vadd.f32 %v6522_v35, %v3167_v50  ;;  %v3165_v27 = vadd.f32 %v3100_v59, %v9197_v48  ;;  %v3472_v24 = vpop.f32.mrf.mxu0 }
 0x1d4   : > { %v6491_v58 = vpop.f32.mrf.mxu1 }
 0x1d5   : > { %v9299_v38 = vadd.f32 %v3459_v54, %v3165_v27  ;;  %v3170_v18 = vadd.f32 %v6491_v58, %v9200_v29  ;;  %v6526_v9 = vpop.f32.mrf.mxu0  ;;  %v3146_v27 = vadd.f32 %v9225_v36, %v8959_v62  ;;  %v3147_v62 = vadd.f32 %v9235_v61, %v8972_v5 }
 0x1d6   : > { %v3113_v37 = vpop.f32.mrf.mxu1 }
 0x1d7   : > { %v9302_v17 = vadd.f32 %v6525_v32, %v3170_v18  ;;  %v3168_v13 = vadd.f32 %v3113_v37, %v9203_v25  ;;  %v3475_v15 = vpop.f32.mrf.mxu0  ;;  %v3506_v61 = vadd.f32 %v9229_v45, %v3147_v62 }
 0x1d8   : > { %v6492_v56 = vpop.f32.mrf.mxu1 }
 0x1d9   : > { %v9305_v57 = vadd.f32 %v3472_v24, %v3168_v13  ;;  %v3171_v35 = vadd.f32 %v6492_v56, %v9206_v2  ;;  %v6529_v51 = vpop.f32.mrf.mxu0 }
 0x1da   : > { %v3116_v48 = vpop.f32.mrf.mxu1 }
 0x1db   : > { %v9308_v34 = vadd.f32 %v6526_v9, %v3171_v35  ;;  %v3169_v54 = vadd.f32 %v3116_v48, %v9209_v3  ;;  %v3488_v42 = vpop.f32.mrf.mxu0  ;;  %v3144_v3 = vadd.f32 %v9231_v53, %v8962_v0  ;;  %v3145_v0 = vadd.f32 %v9239_v12, %v9083_v11 }
 0x1dc   : > { %v6495_v29 = vpop.f32.mrf.mxu1 }
 0x1dd   : > { %v9311_v50 = vadd.f32 %v3475_v15, %v3169_v54  ;;  %v3174_v32 = vadd.f32 %v6495_v29, %v9212_v41  ;;  %v6530_v59 = vpop.f32.mrf.mxu0  ;;  %v3505_v15 = vadd.f32 %v9218_v6, %v3146_v27  ;;  %v9338_v6 = vld [vmem:[%s9714_s2] ss:$0 sm:$0xff]  ;;  %v3504_v11 = vadd.f32 %v9233_v28, %v3145_v0 }
 0x1de   : > { %v3129_v25 = vpop.f32.mrf.mxu1  ;;  %v3148_v27 = vadd.f32 %v9245_v16, %v9089_v31 }
 0x1df   : > { %v9316_v24 = vadd.f32 %v6529_v51, %v3174_v32  ;;  %v3172_v2 = vadd.f32 %v3129_v25, %v9215_v49  ;;  %v3491_v58 = vpop.f32.mrf.mxu0  ;;  %v3503_v51 = vadd.f32 %v9223_v39, %v3144_v3  ;;  %v3150_v39 = vadd.f32 %v9243_v40, %v9086_v43 }
 0x1e0   : > { %v6496_v18 = vpop.f32.mrf.mxu1 }
 0x1e1   : > { %v9321_v9 = vadd.f32 %v3488_v42, %v3172_v2  ;;  %v3175_v37 = vadd.f32 %v6496_v18, %v9220_v20  ;;  %v6569_v13 = vpop.f32.mrf.mxu0  ;;  %v3509_v43 = vadd.f32 %v9237_v60, %v3150_v39 }
 0x1e2   : > { %v3132_v41 = vpop.f32.mrf.mxu1 }
 0x1e3   : > { %v9327_v36 = vadd.f32 %v6530_v59, %v3175_v37  ;;  %v3173_v49 = vadd.f32 %v3132_v41, %v9227_v26  ;;  %v4572_v56 = vpop.f32.mrf.mxu0 }
 0x1e4   : > { %v6535_v35 = vpop.f32.mrf.mxu1 }
 0x1e5   : > { %v9333_v53 = vadd.f32 %v3491_v58, %v3173_v49  ;;  %v4231_v20 = vadd.f32 %v6535_v35, %v3505_v15  ;;  %v6570_v48 = vpop.f32.mrf.mxu0  ;;  %v3507_v49 = vadd.f32 %v9241_v21, %v3148_v27 }
 0x1e6   : > { %v4102_v5 = vpop.f32.mrf.mxu1 }
 0x1e7   : > { %v4701_v26 = vadd.f32 %v6569_v13, %v4231_v20  ;;  %v4229_v54 = vadd.f32 %v4102_v5, %v3503_v51  ;;  %v4575_v42 = vpop.f32.mrf.mxu0 }
 0x1e8   : > { %v6536_v29 = vpop.f32.mrf.mxu1 }
 0x1e9   : > { %v4740_v12 = vadd.f32 %v9338_v6, %v4701_v26  ;;  %v4699_v32 = vadd.f32 %v4572_v56, %v4229_v54  ;;  %v4232_v59 = vadd.f32 %v6536_v29, %v3506_v61  ;;  %v6573_v25 = vpop.f32.mrf.mxu0 }
 0x1ea   : > { %v4105_v2 = vpop.f32.mrf.mxu1 }
 0x1eb   : > { %v4772_v58 = vmax.f32 %v4740_v12, 0.0  ;;  %v4738_v45 = vadd.f32 %v9338_v6, %v4699_v32  ;;  %v4702_v18 = vadd.f32 %v6570_v48, %v4232_v59  ;;  %v4230_v3 = vadd.f32 %v4105_v2, %v3504_v11  ;;  %v4588_v37 = vpop.f32.mrf.mxu0  ;;  %v6031_v11 = vld [vmem:[%s8970_s11 + $0x18] sm:$0xf] }
 0x1ec   : > { %v6539_v40 = vpop.f32.mrf.mxu1 }
 0x1ed   : > { %v6110_v13 = vpack.c.bf16 %v4772_v58, %v4772_v58  ;;  %v4770_v28 = vmax.f32 %v4738_v45, 0.0  ;;  %v4741_v41 = vadd.f32 %v9338_v6, %v4702_v18  ;;  %v4700_v15 = vadd.f32 %v4575_v42, %v4230_v3  ;;  %v6574_v62 = vpop.f32.mrf.mxu0 }
 0x1ee   : > { %v4235_v31 = vadd.f32 %v6539_v40, %v3509_v43  ;;  %v4118_v16 = vpop.f32.mrf.mxu1  ;;  %v6026_v43 = vld [vmem:[%s8970_s11 + $0xc] sm:$0xf] }
 0x1ef   : > { %v4975_v56 = vshrl.u32 %v6110_v13, 16  ;;  %v6108_v35 = vpack.c.bf16 %v4770_v28, %v4770_v28  ;;  %v4773_v51 = vmax.f32 %v4741_v41, 0.0  ;;  %v9351_v0 = vpop.f32.mrf.mxu0  ;;  %v4978_v60 = vshll.u32 %v6110_v13, 16 }
 0x1f0   : > { %v4739_v20 = vadd.f32 %v9338_v6, %v4700_v15  ;;  %v4705_v48 = vadd.f32 %v6573_v25, %v4235_v31  ;;  %v4233_v5 = vadd.f32 %v4118_v16, %v3507_v49  ;;  %v6540_v61 = vpop.f32.mrf.mxu1 }
 0x1f1   : > { %v4977_v26 = vrot.slane %v4975_v56, 7  ;;  %v4958_v54 = vshrl.u32 %v6108_v35, 16  ;;  %v4961_v21 = vshll.u32 %v6108_v35, 16  ;;  %v6111_v42 = vpack.c.bf16 %v4773_v51, %v4773_v51  ;;  %v9354_v39 = vpop.f32.mrf.mxu0  ;;  %v6034_v51 = vld [vmem:[%s8970_s11 + $0x20] sm:$0x1] }
 0x1f2   : > { %v4771_v12 = vmax.f32 %v4739_v20, 0.0  ;;  %v4744_v32 = vadd.f32 %v9338_v6, %v4705_v48  ;;  %v4703_v59 = vadd.f32 %v4588_v37, %v4233_v5  ;;  %v4236_v25 = vadd.f32 %v6540_v61, %v9248_v7  ;;  %v4121_v27 = vpop.f32.mrf.mxu1 }
 0x1f3   : > { %v4980_v2 = vor.u32 %v4978_v60, %v4977_v26  ;;  %v4981_v58 = vrot.slane %v4977_v26, 4  ;;  %v4960_v45 = vrot.slane %v4958_v54, 7  ;;  %v4983_v18 = vshrl.u32 %v6111_v42, 16  ;;  %v9365_v3 = vpop.f32.mrf.mxu0 }
 0x1f4   : > { %v4986_v40 = vshll.u32 %v6111_v42, 16  ;;  %v6109_v13 = vpack.c.bf16 %v4771_v12, %v4771_v12  ;;  %v4776_v28 = vmax.f32 %v4744_v32, 0.0  ;;  %v4742_v41 = vadd.f32 %v9338_v6, %v4703_v59  ;;  %v6543_v15 = vpop.f32.mrf.mxu1 }
 0x1f5   : > { %v5291_v37 = vsel %vm9358_vm13, %v4980_v2, %v6031_v11  ;;  %v4963_v7 = vor.u32 %v4961_v21, %v4960_v45  ;;  %v4964_v49 = vrot.slane %v4960_v45, 4  ;;  %v4985_v16 = vrot.slane %v4983_v18, 7  ;;  %v9377_v56 = vpop.f32.mrf.mxu0 }
 0x1f6   : > { %6032 = vst [vmem:[%s8970_s11 + $0x18] sm:$0xf] %v5291_v37  ;;  %v4966_v60 = vshrl.u32 %v6109_v13, 16  ;;  %v4969_v20 = vshll.u32 %v6109_v13, 16  ;;  %v6114_v48 = vpack.c.bf16 %v4776_v28, %v4776_v28  ;;  %v4774_v5 = vmax.f32 %v4742_v41, 0.0  ;;  %v4134_v61 = vpop.f32.mrf.mxu1 }
 0x1f7   : > { %v5282_v26 = vsel %vm9358_vm13, %v4963_v7, %v6026_v43  ;;  %v4988_v54 = vor.u32 %v4986_v40, %v4985_v16  ;;  %v4990_v21 = vrot.slane %v4985_v16, 4  ;;  %v4706_v42 = vadd.f32 %v6574_v62, %v4236_v25  ;;  %v4607_v11 = vpop.f32.mrf.mxu0  ;;  %v6029_v43 = vld [vmem:[%s8970_s11 + $0x14] sm:$0x1] }
 0x1f8   : > { %6027 = vst [vmem:[%s8970_s11 + $0xc] sm:$0xf] %v5282_v26  ;;  %v4968_v12 = vrot.slane %v4966_v60, 7  ;;  %v5009_v32 = vshrl.u32 %v6114_v48, 16  ;;  %v5012_v59 = vshll.u32 %v6114_v48, 16  ;;  %v6112_v2 = vpack.c.bf16 %v4774_v5, %v4774_v5  ;;  %v6544_v45 = vpop.f32.mrf.mxu1 }
 0x1f9   : > { %v4989_v18 = vsel %vm9373_vm14, %v4981_v58, %v4988_v54  ;;  %v5295_v13 = vsel %vm9382_vm15, %v4990_v21, %v6034_v51  ;;  %v4745_v40 = vadd.f32 %v9338_v6, %v4706_v42  ;;  %v4234_v28 = vadd.f32 %v4121_v27, %v9251_v23  ;;  %v6581_v62 = vpop.f32.mrf.mxu0  ;;  %v6041_v58 = vld [vmem:[%s8970_s11 + $0x30] sm:$0xf] }
 0x1fa   : > { %6033 = vst.msk [vmem:[%s8970_s11 + $0x1c] sm:$0xf] %vm4818_vm8, %v4989_v18  ;;  %6035 = vst [vmem:[%s8970_s11 + $0x20] sm:$0x1] %v5295_v13  ;;  %v4971_v25 = vor.u32 %v4969_v20, %v4968_v12  ;;  %v4973_v41 = vrot.slane %v4968_v12, 4  ;;  %v5011_v37 = vrot.slane %v5009_v32, 7  ;;  %v4137_v16 = vpop.f32.mrf.mxu1  ;;  %v4239_v5 = vadd.f32 %v6543_v15, %v9254_v44 }
 0x1fb   : > { %v4992_v7 = vshrl.u32 %v6112_v2, 16  ;;  %v4995_v60 = vshll.u32 %v6112_v2, 16  ;;  %v4777_v48 = vmax.f32 %v4745_v40, 0.0  ;;  %v4704_v51 = vadd.f32 %v9351_v0, %v4234_v28  ;;  %v9403_v23 = vpop.f32.mrf.mxu0  ;;  %v6036_v32 = vld [vmem:[%s8970_s11 + $0x24] sm:$0xf] }
 0x1fc   : > { %v4972_v27 = vsel %vm9373_vm14, %v4964_v49, %v4971_v25  ;;  %v5288_v20 = vsel %vm9382_vm15, %v4973_v41, %v6029_v43  ;;  %v5014_v26 = vor.u32 %v5012_v59, %v5011_v37  ;;  %v5015_v54 = vrot.slane %v5011_v37, 4  ;;  %v6547_v21 = vpop.f32.mrf.mxu1 }
 0x1fd   : > { %6028 = vst.msk [vmem:[%s8970_s11 + $0x10] sm:$0xf] %vm4818_vm8, %v4972_v27  ;;  %6030 = vst [vmem:[%s8970_s11 + $0x14] sm:$0x1] %v5288_v20  ;;  %v9412_v42 = vrot.slane %v4992_v7, 7  ;;  %v6115_v0 = vpack.c.bf16 %v4777_v48, %v4777_v48  ;;  %v4743_v44 = vadd.f32 %v9338_v6, %v4704_v51  ;;  %v4709_v15 = vadd.f32 %v9354_v39, %v4239_v5  ;;  %v9416_v12 = vpop.f32.mrf.mxu0 }
 0x1fe   : > { %v5305_v49 = vsel %vm9358_vm13, %v5014_v26, %v6041_v58  ;;  %v4237_v59 = vadd.f32 %v4134_v61, %v9257_v8  ;;  %v4240_v2 = vadd.f32 %v6544_v45, %v9260_v63  ;;  %v4238_v18 = vadd.f32 %v4137_v16, %v9263_v46  ;;  %v4150_v13 = vpop.f32.mrf.mxu1 }
 0x1ff   : > { %6042 = vst [vmem:[%s8970_s11 + $0x30] sm:$0xf] %v5305_v49  ;;  %v4997_v43 = vor.u32 %v4995_v60, %v9412_v42  ;;  %v4998_v39 = vrot.slane %v9412_v42, 4  ;;  %v5017_v40 = vshrl.u32 %v6115_v0, 16  ;;  %v5020_v28 = vshll.u32 %v6115_v0, 16  ;;  %v9427_v25 = vpop.f32.mrf.mxu0 }
 0x200   : > { %v4775_v41 = vmax.f32 %v4743_v44, 0.0  ;;  %v4748_v37 = vadd.f32 %v9338_v6, %v4709_v15  ;;  %v4707_v8 = vadd.f32 %v9365_v3, %v4237_v59  ;;  %v4710_v63 = vadd.f32 %v9377_v56, %v4240_v2  ;;  %v9432_v46 = vpop.f32.mrf.mxu1  ;;  %v6044_v60 = vld [vmem:[%s8970_s11 + $0x38] sm:$0x1] }
 0x201   : > { %v5298_v61 = vsel %vm9358_vm13, %v4997_v43, %v6036_v32  ;;  %v5019_v45 = vrot.slane %v5017_v40, 7  ;;  %v4708_v7 = vadd.f32 %v4607_v11, %v4238_v18  ;;  %v4243_v16 = vadd.f32 %v6547_v21, %v9266_v1  ;;  %v9437_v58 = vpop.f32.mrf.mxu0 }
 0x202   : > { %6037 = vst [vmem:[%s8970_s11 + $0x24] sm:$0xf] %v5298_v61  ;;  %v6113_v48 = vpack.c.bf16 %v4775_v41, %v4775_v41  ;;  %v4780_v51 = vmax.f32 %v4748_v37, 0.0  ;;  %v4746_v5 = vadd.f32 %v9338_v6, %v4707_v8  ;;  %v4749_v3 = vadd.f32 %v9338_v6, %v4710_v63  ;;  %v9443_v56 = vpop.f32.mrf.mxu1  ;;  %v6039_v37 = vld [vmem:[%s8970_s11 + $0x2c] sm:$0x1] }
 0x203   : > { %v5022_v27 = vor.u32 %v5020_v28, %v5019_v45  ;;  %v5024_v20 = vrot.slane %v5019_v45, 4  ;;  %v4747_v11 = vadd.f32 %v9338_v6, %v4708_v7  ;;  %v4713_v26 = vadd.f32 %v6581_v62, %v4243_v16  ;;  %v9446_v1 = vpop.f32.mrf.mxu0 }
 0x204   : > { %v5000_v21 = vshrl.u32 %v6113_v48, 16  ;;  %v5003_v42 = vshll.u32 %v6113_v48, 16  ;;  %v6118_v0 = vpack.c.bf16 %v4780_v51, %v4780_v51  ;;  %v4778_v44 = vmax.f32 %v4746_v5, 0.0  ;;  %v9448_v15 = vpop.f32.mrf.mxu1  ;;  %v6051_v51 = vld [vmem:[%s8970_s11 + $0x48] sm:$0xf] }
 0x205   : > { %v5023_v49 = vsel %vm9373_vm14, %v5015_v54, %v5022_v27  ;;  %v5309_v32 = vsel %vm9382_vm15, %v5024_v20, %v6044_v60  ;;  %v4781_v59 = vmax.f32 %v4749_v3, 0.0  ;;  %v4779_v2 = vmax.f32 %v4747_v11, 0.0  ;;  %v9454_v18 = vpop.f32.mrf.mxu0 }
 0x206   : > { %6043 = vst.msk [vmem:[%s8970_s11 + $0x34] sm:$0xf] %vm4818_vm8, %v5023_v49  ;;  %6045 = vst [vmem:[%s8970_s11 + $0x38] sm:$0x1] %v5309_v32  ;;  %v5002_v62 = vrot.slane %v5000_v21, 7  ;;  %v5043_v43 = vshrl.u32 %v6118_v0, 16  ;;  %v6116_v28 = vpack.c.bf16 %v4778_v44, %v4778_v44  ;;  %v9459_v41 = vpop.f32.mrf.mxu1  ;;  %v4752_v63 = vadd.f32 %v9338_v6, %v4713_v26 }
 0x207   : > { %v5046_v40 = vshll.u32 %v6118_v0, 16  ;;  %v6119_v8 = vpack.c.bf16 %v4781_v59, %v4781_v59  ;;  %v6117_v54 = vpack.c.bf16 %v4779_v2, %v4779_v2  ;;  %v4241_v61 = vadd.f32 %v4150_v13, %v9269_v19  ;;  %v9465_v11 = vpop.f32.mrf.mxu0  ;;  %v6046_v2 = vld [vmem:[%s8970_s11 + $0x3c] sm:$0xf] }
 0x208   : > { %v5005_v45 = vor.u32 %v5003_v42, %v5002_v62  ;;  %v5007_v7 = vrot.slane %v5002_v62, 4  ;;  %v5045_v16 = vrot.slane %v5043_v43, 7  ;;  %v5026_v60 = vshrl.u32 %v6116_v28, 16  ;;  %v6552_v48 = vpop.f32.mrf.mxu1 }
 0x209   : > { %v5029_v5 = vshll.u32 %v6116_v28, 16  ;;  %v5051_v3 = vshrl.u32 %v6119_v8, 16  ;;  %v5054_v27 = vshll.u32 %v6119_v8, 16  ;;  %v5034_v20 = vshrl.u32 %v6117_v54, 16 }
 0x20a   : > { %v5006_v26 = vsel %vm9373_vm14, %v4998_v39, %v5005_v45  ;;  %v5302_v19 = vsel %vm9382_vm15, %v5007_v7, %v6039_v37  ;;  %v5048_v13 = vor.u32 %v5046_v40, %v5045_v16  ;;  %v5049_v21 = vrot.slane %v5045_v16, 4  ;;  %v4169_v42 = vpop.f32.mrf.mxu1  ;;  %v6054_v39 = vld [vmem:[%s8970_s11 + $0x50] sm:$0x1]  ;;  %v6049_v7 = vld [vmem:[%s8970_s11 + $0x44] sm:$0x1]  ;;  %v9485_v16 = vpop.f32.mrf.mxu0 }
 0x20b   : > { %6038 = vst.msk [vmem:[%s8970_s11 + $0x28] sm:$0xf] %vm4818_vm8, %v5006_v26  ;;  %6040 = vst [vmem:[%s8970_s11 + $0x2c] sm:$0x1] %v5302_v19  ;;  %v5028_v0 = vrot.slane %v5026_v60, 7  ;;  %v5053_v44 = vrot.slane %v5051_v3, 7  ;;  %v4711_v43 = vadd.f32 %v9403_v23, %v4241_v61  ;;  %v4244_v40 = vadd.f32 %v9432_v46, %v9272_v47 }
 0x20c   : > { %v5036_v49 = vrot.slane %v5034_v20, 7  ;;  %v5037_v32 = vshll.u32 %v6117_v54, 16  ;;  %v5319_v59 = vsel %vm9358_vm13, %v5048_v13, %v6051_v51  ;;  %v4784_v62 = vmax.f32 %v4752_v63, 0.0  ;;  %v9481_v28 = vpop.f32.mrf.mxu1 }
 0x20d   : > { %6052 = vst [vmem:[%s8970_s11 + $0x48] sm:$0xf] %v5319_v59  ;;  %v5031_v37 = vor.u32 %v5029_v5, %v5028_v0  ;;  %v5032_v8 = vrot.slane %v5028_v0, 4  ;;  %v5056_v54 = vor.u32 %v5054_v27, %v5053_v44  ;;  %v5058_v45 = vrot.slane %v5053_v44, 4 }
 0x20e   : > { %v5039_v60 = vor.u32 %v5037_v32, %v5036_v49  ;;  %v5041_v63 = vrot.slane %v5036_v49, 4  ;;  %v6122_v23 = vpack.c.bf16 %v4784_v62, %v4784_v62  ;;  %v4750_v47 = vadd.f32 %v9338_v6, %v4711_v43  ;;  %v9488_v46 = vpop.f32.mrf.mxu1  ;;  %v9515_v49 = vpop.f32.mrf.mxu0  ;;  %v6061_v62 = vld [vmem:[%s8970_s11 + $0x60] sm:$0xf] }
 0x20f   : > { %v5312_v61 = vsel %vm9358_vm13, %v5031_v37, %v6046_v2  ;;  %v5057_v51 = vsel %vm9373_vm14, %v5049_v21, %v5056_v54  ;;  %v5323_v5 = vsel %vm9382_vm15, %v5058_v45, %v6054_v39  ;;  %v4714_v3 = vadd.f32 %v9416_v12, %v4244_v40 }
 0x210   : > { %6047 = vst [vmem:[%s8970_s11 + $0x3c] sm:$0xf] %v5312_v61  ;;  %6053 = vst.msk [vmem:[%s8970_s11 + $0x4c] sm:$0xf] %vm4818_vm8, %v5057_v51  ;;  %v5040_v27 = vsel %vm9373_vm14, %v5032_v8, %v5039_v60  ;;  %v5316_v20 = vsel %vm9382_vm15, %v5041_v63, %v6049_v7  ;;  %v5077_v26 = vshrl.u32 %v6122_v23, 16  ;;  %v5080_v19 = vshll.u32 %v6122_v23, 16  ;;  %v9505_v13 = vpop.f32.mrf.mxu1 }
 0x211   : > { %6055 = vst [vmem:[%s8970_s11 + $0x50] sm:$0x1] %v5323_v5  ;;  %6048 = vst.msk [vmem:[%s8970_s11 + $0x40] sm:$0xf] %vm4818_vm8, %v5040_v27  ;;  %v4782_v21 = vmax.f32 %v4750_v47, 0.0  ;;  %v4753_v12 = vadd.f32 %v9338_v6, %v4714_v3  ;;  %v4242_v0 = vadd.f32 %v9443_v56, %v9275_v14  ;;  %v4247_v44 = vadd.f32 %v9448_v15, %v9278_v10 }
 0x212   : > { %6050 = vst [vmem:[%s8970_s11 + $0x44] sm:$0x1] %v5316_v20  ;;  %v5079_v32 = vrot.slane %v5077_v26, 7  ;;  %v4245_v59 = vadd.f32 %v9459_v41, %v9281_v4  ;;  %v4248_v2 = vadd.f32 %v6552_v48, %v9284_v30  ;;  %v4246_v39 = vadd.f32 %v4169_v42, %v9287_v33  ;;  %v9526_v4 = vpop.f32.mrf.mxu1  ;;  %v9529_v42 = vpop.f32.mrf.mxu0  ;;  %v6056_v63 = vld [vmem:[%s8970_s11 + $0x54] sm:$0xf] }
 0x213   : > { %v6120_v43 = vpack.c.bf16 %v4782_v21, %v4782_v21  ;;  %v4785_v40 = vmax.f32 %v4753_v12, 0.0  ;;  %v4712_v37 = vadd.f32 %v9427_v25, %v4242_v0  ;;  %v4717_v14 = vadd.f32 %v9437_v58, %v4247_v44  ;;  %v6064_v21 = vld [vmem:[%s8970_s11 + $0x68] sm:$0x1] }
 0x214   : > { %v5082_v56 = vor.u32 %v5080_v19, %v5079_v32  ;;  %v5083_v10 = vrot.slane %v5079_v32, 4  ;;  %v4715_v15 = vadd.f32 %v9446_v1, %v4245_v59  ;;  %v4718_v8 = vadd.f32 %v9454_v18, %v4248_v2  ;;  %v9539_v5 = vpop.f32.mrf.mxu1  ;;  %v9541_v19 = vpop.f32.mrf.mxu0 }
 0x215   : > { %v5060_v30 = vshrl.u32 %v6120_v43, 16  ;;  %v5063_v41 = vshll.u32 %v6120_v43, 16  ;;  %v6123_v33 = vpack.c.bf16 %v4785_v40, %v4785_v40  ;;  %v4751_v48 = vadd.f32 %v9338_v6, %v4712_v37 }
 0x216   : > { %v5333_v25 = vsel %vm9358_vm13, %v5082_v56, %v6061_v62  ;;  %v4756_v58 = vadd.f32 %v9338_v6, %v4717_v14  ;;  %v4754_v54 = vadd.f32 %v9338_v6, %v4715_v15  ;;  %v4757_v1 = vadd.f32 %v9338_v6, %v4718_v8  ;;  %v4198_v14 = vpop.f32.mrf.mxu1 }
 0x217   : > { %6062 = vst [vmem:[%s8970_s11 + $0x60] sm:$0xf] %v5333_v25  ;;  %v5062_v18 = vrot.slane %v5060_v30, 7  ;;  %v5085_v45 = vshrl.u32 %v6123_v33, 16  ;;  %v5088_v7 = vshll.u32 %v6123_v33, 16  ;;  %v4783_v60 = vmax.f32 %v4751_v48, 0.0 }
 0x218   : > { %v4788_v23 = vmax.f32 %v4756_v58, 0.0  ;;  %v4786_v47 = vmax.f32 %v4754_v54, 0.0  ;;  %v4789_v61 = vmax.f32 %v4757_v1, 0.0  ;;  %v4716_v51 = vadd.f32 %v9465_v11, %v4246_v39  ;;  %v6059_v33 = vld [vmem:[%s8970_s11 + $0x5c] sm:$0x1] }
 0x219   : > { %v5065_v3 = vor.u32 %v5063_v41, %v5062_v18  ;;  %v5066_v27 = vrot.slane %v5062_v18, 4  ;;  %v5087_v20 = vrot.slane %v5085_v45, 7  ;;  %v6121_v26 = vpack.c.bf16 %v4783_v60, %v4783_v60  ;;  %v6593_v41 = vpop.f32.mrf.mxu0  ;;  %v6071_v45 = vld [vmem:[%s8970_s11 + $0x78] sm:$0xf] }
 0x21a   : > { %v6126_v12 = vpack.c.bf16 %v4788_v23, %v4788_v23  ;;  %v6124_v0 = vpack.c.bf16 %v4786_v47, %v4786_v47  ;;  %v6127_v44 = vpack.c.bf16 %v4789_v61, %v4789_v61  ;;  %v4755_v32 = vadd.f32 %v9338_v6, %v4716_v51  ;;  %v6560_v51 = vpop.f32.mrf.mxu1 }
 0x21b   : > { %v5326_v59 = vsel %vm9358_vm13, %v5065_v3, %v6056_v63  ;;  %v5090_v11 = vor.u32 %v5088_v7, %v5087_v20  ;;  %v5092_v2 = vrot.slane %v5087_v20, 4  ;;  %v5068_v39 = vshrl.u32 %v6121_v26, 16 }
 0x21c   : > { %6057 = vst [vmem:[%s8970_s11 + $0x54] sm:$0xf] %v5326_v59  ;;  %v5071_v62 = vshll.u32 %v6121_v26, 16  ;;  %v5111_v43 = vshrl.u32 %v6126_v12, 16  ;;  %v5114_v40 = vshll.u32 %v6126_v12, 16  ;;  %v5094_v37 = vshrl.u32 %v6124_v0, 16  ;;  %v4668_v12 = vpop.f32.mrf.mxu0 }
 0x21d   : > { %v5091_v56 = vsel %vm9373_vm14, %v5083_v10, %v5090_v11  ;;  %v5337_v15 = vsel %vm9382_vm15, %v5092_v2, %v6064_v21  ;;  %v5070_v8 = vrot.slane %v5068_v39, 7  ;;  %v5097_v30 = vshll.u32 %v6124_v0, 16  ;;  %v6066_v10 = vld [vmem:[%s8970_s11 + $0x6c] sm:$0xf]  ;;  %v6074_v0 = vld [vmem:[%s8970_s11 + $0x80] sm:$0x1] }
 0x21e   : > { %6063 = vst.msk [vmem:[%s8970_s11 + $0x64] sm:$0xf] %vm4818_vm8, %v5091_v56  ;;  %6065 = vst [vmem:[%s8970_s11 + $0x68] sm:$0x1] %v5337_v15  ;;  %v5113_v48 = vrot.slane %v5111_v43, 7  ;;  %v5096_v25 = vrot.slane %v5094_v37, 7  ;;  %v4251_v60 = vadd.f32 %v9481_v28, %v9290_v52  ;;  %v4252_v43 = vadd.f32 %v9505_v13, %v9296_v22  ;;  %v6594_v15 = vpop.f32.mrf.mxu0 }
 0x21f   : > { %v5119_v58 = vshrl.u32 %v6127_v44, 16  ;;  %v5122_v54 = vshll.u32 %v6127_v44, 16  ;;  %v5073_v1 = vor.u32 %v5071_v62, %v5070_v8  ;;  %v5075_v18 = vrot.slane %v5070_v8, 4  ;;  %v6069_v22 = vld [vmem:[%s8970_s11 + $0x74] sm:$0x1] }
 0x220   : > { %v4787_v7 = vmax.f32 %v4755_v32, 0.0  ;;  %v5116_v63 = vor.u32 %v5114_v40, %v5113_v48  ;;  %v5117_v23 = vrot.slane %v5113_v48, 4  ;;  %v5099_v47 = vor.u32 %v5097_v30, %v5096_v25 }
 0x221   : > { %v5100_v61 = vrot.slane %v5096_v25, 4  ;;  %v5074_v3 = vsel %vm9373_vm14, %v5066_v27, %v5073_v1  ;;  %v5330_v20 = vsel %vm9382_vm15, %v5075_v18, %v6059_v33  ;;  %v5121_v26 = vrot.slane %v5119_v58, 7 }
 0x222   : > { %v6125_v21 = vpack.c.bf16 %v4787_v7, %v4787_v7  ;;  %6058 = vst.msk [vmem:[%s8970_s11 + $0x58] sm:$0xf] %vm4818_vm8, %v5074_v3  ;;  %6060 = vst [vmem:[%s8970_s11 + $0x5c] sm:$0x1] %v5330_v20  ;;  %v5347_v52 = vsel %vm9358_vm13, %v5116_v63, %v6071_v45  ;;  %v5340_v28 = vsel %vm9358_vm13, %v5099_v47, %v6066_v10 }
 0x223   : > { %v4721_v44 = vadd.f32 %v9485_v16, %v4251_v60  ;;  %v4249_v27 = vadd.f32 %v9488_v46, %v9293_v55  ;;  %6072 = vst [vmem:[%s8970_s11 + $0x78] sm:$0xf] %v5347_v52  ;;  %6067 = vst [vmem:[%s8970_s11 + $0x6c] sm:$0xf] %v5340_v28  ;;  %v5124_v32 = vor.u32 %v5122_v54, %v5121_v26  ;;  %v5126_v59 = vrot.slane %v5121_v26, 4  ;;  %v9583_v55 = vpop.f32.mrf.mxu1 }
 0x224   : > { %v5102_v11 = vshrl.u32 %v6125_v21, 16  ;;  %v5105_v2 = vshll.u32 %v6125_v21, 16  ;;  %v4250_v16 = vadd.f32 %v9526_v4, %v9299_v38  ;;  %v4255_v56 = vadd.f32 %v9539_v5, %v9302_v17  ;;  %v6081_v26 = vld [vmem:[%s8970_s11 + $0x90] sm:$0xf] }
 0x225   : > { %v4760_v39 = vadd.f32 %v9338_v6, %v4721_v44  ;;  %v4719_v62 = vadd.f32 %v9515_v49, %v4249_v27  ;;  %v5125_v46 = vsel %vm9373_vm14, %v5117_v23, %v5124_v32  ;;  %v5351_v40 = vsel %vm9382_vm15, %v5126_v59, %v6074_v0  ;;  %v9601_v54 = vpop.f32.mrf.mxu1 }
 0x226   : > { %v5104_v37 = vrot.slane %v5102_v11, 7  ;;  %6073 = vst.msk [vmem:[%s8970_s11 + $0x7c] sm:$0xf] %vm4818_vm8, %v5125_v46  ;;  %6075 = vst [vmem:[%s8970_s11 + $0x80] sm:$0x1] %v5351_v40  ;;  %v4722_v49 = vadd.f32 %v9529_v42, %v4252_v43  ;;  %v4720_v4 = vadd.f32 %v9541_v19, %v4250_v16  ;;  %v4725_v33 = vadd.f32 %v6593_v41, %v4255_v56  ;;  %v9608_v41 = vpop.f32.mrf.mxu0 }
 0x227   : > { %v4792_v13 = vmax.f32 %v4760_v39, 0.0  ;;  %v4758_v38 = vadd.f32 %v9338_v6, %v4719_v62  ;;  %v4253_v48 = vadd.f32 %v4198_v14, %v9305_v57  ;;  %v4256_v63 = vadd.f32 %v6560_v51, %v9308_v34  ;;  %v4214_v20 = vpop.f32.mrf.mxu1  ;;  %v6076_v34 = vld [vmem:[%s8970_s11 + $0x84] sm:$0xf] }
 0x228   : > { %v5107_v8 = vor.u32 %v5105_v2, %v5104_v37  ;;  %v5109_v30 = vrot.slane %v5104_v37, 4  ;;  %v4761_v25 = vadd.f32 %v9338_v6, %v4722_v49  ;;  %v4759_v58 = vadd.f32 %v9338_v6, %v4720_v4  ;;  %v6597_v0 = vpop.f32.mrf.mxu0  ;;  %v6084_v37 = vld [vmem:[%s8970_s11 + $0x98] sm:$0x1] }
 0x229   : > { %v6130_v17 = vpack.c.bf16 %v4792_v13, %v4792_v13  ;;  %v4790_v5 = vmax.f32 %v4758_v38, 0.0  ;;  %v4764_v1 = vadd.f32 %v9338_v6, %v4725_v33  ;;  %v4723_v18 = vadd.f32 %v4668_v12, %v4253_v48  ;;  %v6564_v40 = vpop.f32.mrf.mxu1  ;;  %v6091_v33 = vld [vmem:[%s8970_s11 + $0xa8] sm:$0xf] }
 0x22a   : > { %v5108_v42 = vsel %vm9373_vm14, %v5100_v61, %v5107_v8  ;;  %v5344_v19 = vsel %vm9382_vm15, %v5109_v30, %v6069_v22  ;;  %v4793_v45 = vmax.f32 %v4761_v25, 0.0  ;;  %v4791_v10 = vmax.f32 %v4759_v58, 0.0  ;;  %v4684_v38 = vpop.f32.mrf.mxu0  ;;  %v6079_v30 = vld [vmem:[%s8970_s11 + $0x8c] sm:$0x1] }
 0x22b   : > { %6068 = vst.msk [vmem:[%s8970_s11 + $0x70] sm:$0xf] %vm4818_vm8, %v5108_v42  ;;  %6070 = vst [vmem:[%s8970_s11 + $0x74] sm:$0x1] %v5344_v19  ;;  %v5145_v57 = vshrl.u32 %v6130_v17, 16  ;;  %v6128_v14 = vpack.c.bf16 %v4790_v5, %v4790_v5  ;;  %v4796_v7 = vmax.f32 %v4764_v1, 0.0  ;;  %v4762_v60 = vadd.f32 %v9338_v6, %v4723_v18 }
 0x22c   : > { %v5148_v47 = vshll.u32 %v6130_v17, 16  ;;  %v6131_v3 = vpack.c.bf16 %v4793_v45, %v4793_v45  ;;  %v6129_v12 = vpack.c.bf16 %v4791_v10, %v4791_v10  ;;  %v4726_v59 = vadd.f32 %v6594_v15, %v4256_v63 }
 0x22d   : > { %v5147_v23 = vrot.slane %v5145_v57, 7  ;;  %v5128_v61 = vshrl.u32 %v6128_v14, 16  ;;  %v5131_v21 = vshll.u32 %v6128_v14, 16  ;;  %v6134_v52 = vpack.c.bf16 %v4796_v7, %v4796_v7  ;;  %v4217_v57 = vpop.f32.mrf.mxu1 }
 0x22e   : > { %v4794_v28 = vmax.f32 %v4762_v60, 0.0  ;;  %v5153_v32 = vshrl.u32 %v6131_v3, 16  ;;  %v5156_v51 = vshll.u32 %v6131_v3, 16  ;;  %v5136_v2 = vshrl.u32 %v6129_v12, 16  ;;  %v6598_v60 = vpop.f32.mrf.mxu0  ;;  %v6086_v3 = vld [vmem:[%s8970_s11 + $0x9c] sm:$0xf] }
 0x22f   : > { %v5150_v44 = vor.u32 %v5148_v47, %v5147_v23  ;;  %v5130_v27 = vrot.slane %v5128_v61, 7  ;;  %v5151_v11 = vrot.slane %v5147_v23, 4  ;;  %v5179_v39 = vshrl.u32 %v6134_v52, 16 }
 0x230   : > { %v5155_v16 = vrot.slane %v5153_v32, 7  ;;  %v5139_v46 = vshll.u32 %v6129_v12, 16  ;;  %v5138_v56 = vrot.slane %v5136_v2, 7  ;;  %v5182_v15 = vshll.u32 %v6134_v52, 16  ;;  %v4687_v32 = vpop.f32.mrf.mxu0 }
 0x231   : > { %v5361_v62 = vsel %vm9358_vm13, %v5150_v44, %v6081_v26  ;;  %v5133_v43 = vor.u32 %v5131_v21, %v5130_v27  ;;  %v9621_v22 = vrot.slane %v5179_v39, 7  ;;  %v6132_v13 = vpack.c.bf16 %v4794_v28, %v4794_v28 }
 0x232   : > { %6082 = vst [vmem:[%s8970_s11 + $0x90] sm:$0xf] %v5361_v62  ;;  %v5158_v4 = vor.u32 %v5156_v51, %v5155_v16  ;;  %v5160_v8 = vrot.slane %v5155_v16, 4  ;;  %v4765_v48 = vadd.f32 %v9338_v6, %v4726_v59  ;;  %v5134_v17 = vrot.slane %v5130_v27, 4 }
 0x233   : > { %v5354_v49 = vsel %vm9358_vm13, %v5133_v43, %v6076_v34  ;;  %v5141_v5 = vor.u32 %v5139_v46, %v5138_v56  ;;  %v5143_v25 = vrot.slane %v5138_v56, 4  ;;  %v5184_v58 = vor.u32 %v5182_v15, %v9621_v22 }
 0x234   : > { %6077 = vst [vmem:[%s8970_s11 + $0x84] sm:$0xf] %v5354_v49  ;;  %v5159_v42 = vsel %vm9373_vm14, %v5151_v11, %v5158_v4  ;;  %v5365_v19 = vsel %vm9382_vm15, %v5160_v8, %v6084_v37  ;;  %v5162_v1 = vshrl.u32 %v6132_v13, 16  ;;  %v5165_v18 = vshll.u32 %v6132_v13, 16  ;;  %v6094_v11 = vld [vmem:[%s8970_s11 + $0xb0] sm:$0x1] }
 0x235   : > { %6083 = vst.msk [vmem:[%s8970_s11 + $0x94] sm:$0xf] %vm4818_vm8, %v5159_v42  ;;  %6085 = vst [vmem:[%s8970_s11 + $0x98] sm:$0x1] %v5365_v19  ;;  %v5142_v14 = vsel %vm9373_vm14, %v5134_v17, %v5141_v5  ;;  %v5358_v45 = vsel %vm9382_vm15, %v5143_v25, %v6079_v30  ;;  %v5375_v10 = vsel %vm9358_vm13, %v5184_v58, %v6091_v33  ;;  %v4797_v7 = vmax.f32 %v4765_v48, 0.0 }
 0x236   : > { %6078 = vst.msk [vmem:[%s8970_s11 + $0x88] sm:$0xf] %vm4818_vm8, %v5142_v14  ;;  %6080 = vst [vmem:[%s8970_s11 + $0x8c] sm:$0x1] %v5358_v45  ;;  %v9647_v63 = vrot.slane %v5162_v1, 7  ;;  %v4254_v23 = vadd.f32 %v9583_v55, %v9311_v50  ;;  %v4259_v47 = vadd.f32 %v9601_v54, %v9316_v24  ;;  %v4257_v61 = vadd.f32 %v4214_v20, %v9321_v9 }
 0x237   : > { %6092 = vst [vmem:[%s8970_s11 + $0xa8] sm:$0xf] %v5375_v10  ;;  %v6135_v26 = vpack.c.bf16 %v4797_v7, %v4797_v7  ;;  %v4260_v21 = vadd.f32 %v6564_v40, %v9327_v36  ;;  %v4258_v12 = vadd.f32 %v4217_v57, %v9333_v53  ;;  %v6089_v33 = vld [vmem:[%s8970_s11 + $0xa4] sm:$0x1]  ;;  %v6101_v25 = vld [vmem:[%s8970_s11 + $0xc0] sm:$0xf] }
 0x238   : > { %v5167_v52 = vor.u32 %v5165_v18, %v9647_v63  ;;  %v4724_v28 = vadd.f32 %v9608_v41, %v4254_v23  ;;  %v4729_v44 = vadd.f32 %v6597_v0, %v4259_v47  ;;  %v4727_v50 = vadd.f32 %v4684_v38, %v4257_v61  ;;  %v6096_v10 = vld [vmem:[%s8970_s11 + $0xb4] sm:$0xf]  ;;  %v6104_v7 = vld [vmem:[%s8970_s11 + $0xc8] sm:$0x1] }
 0x239   : > { %v5187_v27 = vshrl.u32 %v6135_v26, 16  ;;  %v4730_v55 = vadd.f32 %v6598_v60, %v4260_v21  ;;  %v4728_v36 = vadd.f32 %v4687_v32, %v4258_v12  ;;  %v5190_v20 = vshll.u32 %v6135_v26, 16 }
 0x23a   : > { %v5368_v24 = vsel %vm9358_vm13, %v5167_v52, %v6086_v3  ;;  %v4763_v9 = vadd.f32 %v9338_v6, %v4724_v28  ;;  %v4768_v54 = vadd.f32 %v9338_v6, %v4729_v44  ;;  %v4766_v59 = vadd.f32 %v9338_v6, %v4727_v50  ;;  %v6099_v50 = vld [vmem:[%s8970_s11 + $0xbc] sm:$0x1] }
 0x23b   : > { %6087 = vst [vmem:[%s8970_s11 + $0x9c] sm:$0xf] %v5368_v24  ;;  %v5189_v53 = vrot.slane %v5187_v27, 7  ;;  %v4769_v41 = vadd.f32 %v9338_v6, %v4730_v55  ;;  %v5185_v0 = vrot.slane %v9621_v22, 4  ;;  %v4767_v2 = vadd.f32 %v9338_v6, %v4728_v36 }
 0x23c   : > { %v4795_v34 = vmax.f32 %v4763_v9, 0.0  ;;  %v4800_v51 = vmax.f32 %v4768_v54, 0.0  ;;  %v4798_v43 = vmax.f32 %v4766_v59, 0.0  ;;  %v5168_v18 = vrot.slane %v9647_v63, 4 }
 0x23d   : > { %v5192_v39 = vor.u32 %v5190_v20, %v5189_v53  ;;  %v5194_v62 = vrot.slane %v5189_v53, 4  ;;  %v4801_v16 = vmax.f32 %v4769_v41, 0.0  ;;  %v4799_v37 = vmax.f32 %v4767_v2, 0.0 }
 0x23e   : > { %v6133_v46 = vpack.c.bf16 %v4795_v34, %v4795_v34  ;;  %v6138_v40 = vpack.c.bf16 %v4800_v51, %v4800_v51  ;;  %v6136_v15 = vpack.c.bf16 %v4798_v43, %v4798_v43 }
 0x23f   : > { %v5193_v56 = vsel %vm9373_vm14, %v5185_v0, %v5192_v39  ;;  %v5379_v22 = vsel %vm9382_vm15, %v5194_v62, %v6094_v11  ;;  %v6139_v13 = vpack.c.bf16 %v4801_v16, %v4801_v16  ;;  %v6137_v5 = vpack.c.bf16 %v4799_v37, %v4799_v37 }
 0x240   : > { %6093 = vst.msk [vmem:[%s8970_s11 + $0xac] sm:$0xf] %vm4818_vm8, %v5193_v56  ;;  %6095 = vst [vmem:[%s8970_s11 + $0xb0] sm:$0x1] %v5379_v22  ;;  %v5170_v6 = vshrl.u32 %v6133_v46, 16  ;;  %v5213_v38 = vshrl.u32 %v6138_v40, 16 }
 0x241   : > { %v5173_v49 = vshll.u32 %v6133_v46, 16  ;;  %v5196_v4 = vshrl.u32 %v6136_v15, 16  ;;  %v5221_v8 = vshrl.u32 %v6139_v13, 16  ;;  %v5216_v17 = vshll.u32 %v6138_v40, 16 }
 0x242   : > { %v5172_v30 = vrot.slane %v5170_v6, 7  ;;  %v5215_v48 = vrot.slane %v5213_v38, 7  ;;  %v5199_v42 = vshll.u32 %v6136_v15, 16  ;;  %v5224_v1 = vshll.u32 %v6139_v13, 16 }
 0x243   : > { %v5198_v58 = vrot.slane %v5196_v4, 7  ;;  %v5223_v19 = vrot.slane %v5221_v8, 7  ;;  %v5204_v21 = vshrl.u32 %v6137_v5, 16  ;;  %v5207_v27 = vshll.u32 %v6137_v5, 16 }
 0x244   : > { %v5175_v57 = vor.u32 %v5173_v49, %v5172_v30  ;;  %v5177_v14 = vrot.slane %v5172_v30, 4  ;;  %v5218_v45 = vor.u32 %v5216_v17, %v5215_v48  ;;  %v5219_v60 = vrot.slane %v5215_v48, 4 }
 0x245   : > { %v5201_v23 = vor.u32 %v5199_v42, %v5198_v58  ;;  %v5226_v47 = vor.u32 %v5224_v1, %v5223_v19  ;;  %v5228_v61 = vrot.slane %v5223_v19, 4  ;;  %v5206_v44 = vrot.slane %v5204_v21, 7 }
 0x246   : > { %v5176_v3 = vsel %vm9373_vm14, %v5168_v18, %v5175_v57  ;;  %v5372_v63 = vsel %vm9382_vm15, %v5177_v14, %v6089_v33  ;;  %v5389_v26 = vsel %vm9358_vm13, %v5218_v45, %v6101_v25  ;;  %v5202_v55 = vrot.slane %v5198_v58, 4 }
 0x247   : > { %6088 = vst.msk [vmem:[%s8970_s11 + $0xa0] sm:$0xf] %vm4818_vm8, %v5176_v3  ;;  %6090 = vst [vmem:[%s8970_s11 + $0xa4] sm:$0x1] %v5372_v63  ;;  %v5382_v12 = vsel %vm9358_vm13, %v5201_v23, %v6096_v10  ;;  %v5227_v52 = vsel %vm9373_vm14, %v5219_v60, %v5226_v47  ;;  %v5393_v28 = vsel %vm9382_vm15, %v5228_v61, %v6104_v7  ;;  %v5211_v24 = vrot.slane %v5206_v44, 4 }
 0x248   : > { %6102 = vst [vmem:[%s8970_s11 + $0xc0] sm:$0xf] %v5389_v26  ;;  %6097 = vst [vmem:[%s8970_s11 + $0xb4] sm:$0xf] %v5382_v12  ;;  %v5209_v32 = vor.u32 %v5207_v27, %v5206_v44 }
 0x249   : > { %6103 = vst.msk [vmem:[%s8970_s11 + $0xc4] sm:$0xf] %vm4818_vm8, %v5227_v52  ;;  %6105 = vst [vmem:[%s8970_s11 + $0xc8] sm:$0x1] %v5393_v28  ;;  %v5386_v9 = vsel %vm9382_vm15, %v5211_v24, %v6099_v50 }
 0x24a   : > { %v5210_v29 = vsel %vm9373_vm14, %v5202_v55, %v5209_v32  ;;  %6100 = vst [vmem:[%s8970_s11 + $0xbc] sm:$0x1] %v5386_v9 }
 0x24b   : > { %6098 = vst.msk [vmem:[%s8970_s11 + $0xb8] sm:$0xf] %vm4818_vm8, %v5210_v29 }
 0x24c PF: > { %s13_s12 = sadd.s32 1, %s6677_s12  }
 0x24d   : > { %p10_p4 = scmp.ge.s32.totalorder %s13_s12, 4  }
 0x24f   :  { %12 = sbr.rel (!%p10_p4) target bundleno = 1 (0x1), region = 73 }

</bundles_post_ra>
